<compile_context>
chip_gen: v5e
topology: v5e:2x2
jax: 0.10.0
libtpu: 0.0.40
codegen_flags: <defaults>
</compile_context>

<pallas_src>
import functools

import jax
import jax.numpy as jnp
from jax.experimental import pallas as pl
from jax.experimental.pallas import tpu as pltpu

EPS = 1e-5


def _reflect_pad_hw(img, H, W):
    """(C, H, W) -> (C, H+2, W+2) reflect-padded (PyTorch ReflectionPad2d(1))."""
    rows = jnp.concatenate([img[:, 1:2, :], img, img[:, H - 2:H - 1, :]], axis=1)
    return jnp.concatenate([rows[:, :, 1:2], rows, rows[:, :, W - 2:W - 1]], axis=2)


def _im2col_3x3(patch_ref, img, H, W):
    """Write the nine 3x3 taps of reflect-padded `img` into patch_ref (9*C, H*W)."""
    C = img.shape[0]
    pad = _reflect_pad_hw(img, H, W)                       # stays in vregs/VMEM
    for t in range(9):
        dh, dw = divmod(t, 3)
        patch_ref[t * C:(t + 1) * C, :] = (
            pad[:, dh:dh + H, dw:dw + W].reshape(C, H * W).astype(patch_ref.dtype))


def _instance_norm(acc, hw):
    """One-pass biased InstanceNorm (no affine), f32 in / f32 out."""
    inv = 1.0 / hw
    mean = jnp.sum(acc, axis=1, keepdims=True) * inv
    ex2 = jnp.sum(acc * acc, axis=1, keepdims=True) * inv
    var = ex2 - mean * mean
    return (acc - mean) * jax.lax.rsqrt(var + EPS)


def _fused_kernel(x_ref, w1_ref, w2_ref, out_ref, patch_ref, *, H, W):
    # x_ref: (Bt, C, H*W)   w1_ref: (C, 9*C)   w2_ref: (C_out, 9*C)
    # out_ref: (Bt, C_out, H*W)   patch_ref: (9*C, H*W) VMEM scratch (im2col buffer)
    Bt, C, HW = x_ref.shape
    for n in range(Bt):
        x_flat = x_ref[n].astype(jnp.float32)              # (C, HW), lane-dense

        # Stage 1: reflect-pad -> conv1 (single MXU dot) -> IN -> ReLU
        _im2col_3x3(patch_ref, x_flat.reshape(C, H, W), H, W)
        acc1 = jnp.dot(w1_ref[...], patch_ref[...],
                       preferred_element_type=jnp.float32)
        y1 = jnp.maximum(_instance_norm(acc1, HW), 0.0)

        # Stage 2: reflect-pad -> conv2 -> IN -> +residual -> ReLU
        _im2col_3x3(patch_ref, y1.reshape(C, H, W), H, W)
        acc2 = jnp.dot(w2_ref[...], patch_ref[...],
                       preferred_element_type=jnp.float32)
        y2 = _instance_norm(acc2, HW) + x_flat
        out_ref[n] = jnp.maximum(y2, 0.0).astype(out_ref.dtype)


def cycle_residual_block(x, w1, b1, w2, b2, *, batch_block=1,
                         compute_dtype=jnp.float32):
    """x: (B, C, H, W) f32; w*: (C_out, C_in, 3, 3) PyTorch OIHW; b*: (C_out,).

    The conv biases are accepted for API parity but not used: InstanceNorm (no affine)
    subtracts the per-channel mean, so a per-channel bias added before it cancels
    exactly -- same math as the PyTorch module, minus dead compute/DMA.
    """
    B, C, H, W = x.shape
    C_out = w2.shape[0]
    assert C_out == C, "residual add requires out_channels == in_channels"
    assert B % batch_block == 0
    del b1, b2  # cancelled by affine-free InstanceNorm
    HW = H * W

    # OIHW -> (C_out, 9*C_in) matching the im2col row order (tap-major, channel-minor).
    w1m = jnp.transpose(w1, (0, 2, 3, 1)).reshape(C, 9 * C).astype(compute_dtype)
    w2m = jnp.transpose(w2, (0, 2, 3, 1)).reshape(C_out, 9 * C).astype(compute_dtype)

    # Lane-dense activation layout: last dim is H*W (>=128 and a multiple of 128 here).
    x_flat = x.reshape(B, C, HW)

    out_flat = pl.pallas_call(
        functools.partial(_fused_kernel, H=H, W=W),
        out_shape=jax.ShapeDtypeStruct((B, C_out, HW), x.dtype),
        grid=(B // batch_block,),
        in_specs=[
            pl.BlockSpec((batch_block, C, HW), lambda b: (b, 0, 0)),
            pl.BlockSpec((C, 9 * C), lambda b: (0, 0)),
            pl.BlockSpec((C_out, 9 * C), lambda b: (0, 0)),
        ],
        out_specs=pl.BlockSpec((batch_block, C_out, HW), lambda b: (b, 0, 0)),
        scratch_shapes=[pltpu.VMEM((9 * C, HW), compute_dtype)],
        compiler_params=pltpu.CompilerParams(
            dimension_semantics=("parallel",),          # batch across TCs on v7x
            vmem_limit_bytes=64 * 1024 * 1024),         # re-derive for v7x at prod sizes
    )(x_flat, w1m, w2m)
    return out_flat.reshape(B, C_out, H, W)


def _reference_forward(x, w1, b1, w2, b2):
    """Pure-JAX reference mirroring the PyTorch forward (biases included)."""
    def rpad(z):
        return jnp.pad(z, ((0, 0), (0, 0), (1, 1), (1, 1)), mode="reflect")

    def conv(z, w, b):
        y = jax.lax.conv_general_dilated(
            rpad(z), w, window_strides=(1, 1), padding="VALID",
            dimension_numbers=("NCHW", "OIHW", "NCHW"))
        return y + b[None, :, None, None]

    def inorm(z):
        mean = jnp.mean(z, axis=(2, 3), keepdims=True)
        var = jnp.mean((z - mean) ** 2, axis=(2, 3), keepdims=True)
        return (z - mean) * jax.lax.rsqrt(var + EPS)

    out = jax.nn.relu(inorm(conv(x, w1, b1)))
    out = inorm(conv(out, w2, b2)) + x
    return jax.nn.relu(out)


if __name__ == "__main__":
    B, C, H, W = 2, 4, 16, 16  # in_channels == out_channels (module default)
    key = jax.random.PRNGKey(0)
    kx, kw1, kb1, kw2, kb2 = jax.random.split(key, 5)

    x = jax.random.normal(kx, (B, C, H, W), dtype=jnp.float32)
    fan_in = C * 3 * 3
    bound = 1.0 / jnp.sqrt(fan_in)
    w1 = jax.random.uniform(kw1, (C, C, 3, 3), jnp.float32, -bound, bound)
    b1 = jax.random.uniform(kb1, (C,), jnp.float32, -bound, bound)
    w2 = jax.random.uniform(kw2, (C, C, 3, 3), jnp.float32, -bound, bound)
    b2 = jax.random.uniform(kb2, (C,), jnp.float32, -bound, bound)

    ref = jax.block_until_ready(_reference_forward(x, w1, b1, w2, b2))

    # f32 MXU path, one image per grid step.
    out = jax.block_until_ready(cycle_residual_block(x, w1, b1, w2, b2))
    assert out.shape == (B, C, H, W)
    assert jnp.allclose(out, ref, atol=2e-4, rtol=2e-4), (
        f"f32 max abs err {jnp.max(jnp.abs(out - ref))}")

    # Two images per grid step (amortizes per-step pipeline overhead at toy sizes).
    out_b2 = jax.block_until_ready(
        cycle_residual_block(x, w1, b1, w2, b2, batch_block=2))
    assert jnp.allclose(out_b2, ref, atol=2e-4, rtol=2e-4), (
        f"batch_block=2 max abs err {jnp.max(jnp.abs(out_b2 - ref))}")

    # bf16 MXU inputs with f32 accumulation (native MXU precision); InstanceNorm
    # re-normalizes so the error stays small -- loose tolerance accordingly.
    out_bf16 = jax.block_until_ready(
        cycle_residual_block(x, w1, b1, w2, b2, compute_dtype=jnp.bfloat16))
    assert jnp.max(jnp.abs(out_bf16 - ref)) < 0.25, (
        f"bf16 max abs err {jnp.max(jnp.abs(out_bf16 - ref))}")

    print("KERNEL_OK")
</pallas_src>

<mosaic_0001>
module attributes {stable_mosaic.version = 11 : i64} {
  func.func @_fused_kernel(%arg0: i32, %arg1: memref<1x4x256xf32, #tpu.memory_space<vmem>>, %arg2: memref<4x36xf32, #tpu.memory_space<vmem>>, %arg3: memref<4x36xf32, #tpu.memory_space<vmem>>, %arg4: memref<1x4x256xf32, #tpu.memory_space<vmem>>, %arg5: memref<36x256xf32, #tpu.memory_space<vmem>>) attributes {dimension_semantics = [#tpu.dimension_semantics<parallel>], iteration_bounds = array<i64: 2>, scalar_prefetch = 0 : i64, scratch_operands = 1 : i64, tpu.core_type = #tpu.core_type<tc>, window_params = [{transform_indices = @transform_0, window_bounds = array<i64: 1, 4, 256>}, {pipeline_mode = #tpu.pipeline_mode<synchronous>, transform_indices = @transform_1, window_bounds = array<i64: 4, 36>}, {pipeline_mode = #tpu.pipeline_mode<synchronous>, transform_indices = @transform_2, window_bounds = array<i64: 4, 36>}, {transform_indices = @transform_3, window_bounds = array<i64: 1, 4, 256>}]} {
    %c0 = arith.constant 0 : index
    %c0_0 = arith.constant 0 : index
    %c0_1 = arith.constant 0 : index
    %0 = vector.load %arg1[%c0, %c0_0, %c0_1] : memref<1x4x256xf32, #tpu.memory_space<vmem>>, vector<1x4x256xf32>
    %1 = vector.shape_cast %0 : vector<1x4x256xf32> to vector<4x256xf32>
    %2 = vector.shape_cast %1 : vector<4x256xf32> to vector<4x16x16xf32>
    %3 = vector.extract_strided_slice %2 {offsets = [0, 1, 0], sizes = [4, 1, 16], strides = [1, 1, 1]} : vector<4x16x16xf32> to vector<4x1x16xf32>
    %4 = vector.extract_strided_slice %2 {offsets = [0, 14, 0], sizes = [4, 1, 16], strides = [1, 1, 1]} : vector<4x16x16xf32> to vector<4x1x16xf32>
    %5 = tpu.concatenate %3, %2, %4 in 1 : vector<4x1x16xf32>, vector<4x16x16xf32>, vector<4x1x16xf32> -> vector<4x18x16xf32>
    %6 = vector.extract_strided_slice %5 {offsets = [0, 0, 1], sizes = [4, 18, 1], strides = [1, 1, 1]} : vector<4x18x16xf32> to vector<4x18x1xf32>
    %7 = vector.extract_strided_slice %5 {offsets = [0, 0, 14], sizes = [4, 18, 1], strides = [1, 1, 1]} : vector<4x18x16xf32> to vector<4x18x1xf32>
    %8 = tpu.concatenate %6, %5, %7 in 2 : vector<4x18x1xf32>, vector<4x18x16xf32>, vector<4x18x1xf32> -> vector<4x18x18xf32>
    %9 = vector.extract_strided_slice %8 {offsets = [0, 0, 0], sizes = [4, 16, 16], strides = [1, 1, 1]} : vector<4x18x18xf32> to vector<4x16x16xf32>
    %10 = vector.shape_cast %9 : vector<4x16x16xf32> to vector<4x256xf32>
    %c0_2 = arith.constant 0 : index
    %c0_3 = arith.constant 0 : index
    %11 = vector.load %arg5[%c0_2, %c0_3] : memref<36x256xf32, #tpu.memory_space<vmem>>, vector<4x256xf32>
    tpu.vector_store %arg5[%c0_2, %c0_3], %10 {strides = array<i32>} : memref<36x256xf32, #tpu.memory_space<vmem>>, vector<4x256xf32>,
    %12 = vector.extract_strided_slice %8 {offsets = [0, 0, 1], sizes = [4, 16, 16], strides = [1, 1, 1]} : vector<4x18x18xf32> to vector<4x16x16xf32>
    %13 = vector.shape_cast %12 : vector<4x16x16xf32> to vector<4x256xf32>
    %c4 = arith.constant 4 : index
    %c0_4 = arith.constant 0 : index
    %14 = vector.load %arg5[%c4, %c0_4] : memref<36x256xf32, #tpu.memory_space<vmem>>, vector<4x256xf32>
    tpu.vector_store %arg5[%c4, %c0_4], %13 {strides = array<i32>} : memref<36x256xf32, #tpu.memory_space<vmem>>, vector<4x256xf32>,
    %15 = vector.extract_strided_slice %8 {offsets = [0, 0, 2], sizes = [4, 16, 16], strides = [1, 1, 1]} : vector<4x18x18xf32> to vector<4x16x16xf32>
    %16 = vector.shape_cast %15 : vector<4x16x16xf32> to vector<4x256xf32>
    %c8 = arith.constant 8 : index
    %c0_5 = arith.constant 0 : index
    %17 = vector.load %arg5[%c8, %c0_5] : memref<36x256xf32, #tpu.memory_space<vmem>>, vector<4x256xf32>
    tpu.vector_store %arg5[%c8, %c0_5], %16 {strides = array<i32>} : memref<36x256xf32, #tpu.memory_space<vmem>>, vector<4x256xf32>,
    %18 = vector.extract_strided_slice %8 {offsets = [0, 1, 0], sizes = [4, 16, 16], strides = [1, 1, 1]} : vector<4x18x18xf32> to vector<4x16x16xf32>
    %19 = vector.shape_cast %18 : vector<4x16x16xf32> to vector<4x256xf32>
    %c12 = arith.constant 12 : index
    %c0_6 = arith.constant 0 : index
    %20 = vector.load %arg5[%c12, %c0_6] : memref<36x256xf32, #tpu.memory_space<vmem>>, vector<4x256xf32>
    tpu.vector_store %arg5[%c12, %c0_6], %19 {strides = array<i32>} : memref<36x256xf32, #tpu.memory_space<vmem>>, vector<4x256xf32>,
    %21 = vector.extract_strided_slice %8 {offsets = [0, 1, 1], sizes = [4, 16, 16], strides = [1, 1, 1]} : vector<4x18x18xf32> to vector<4x16x16xf32>
    %22 = vector.shape_cast %21 : vector<4x16x16xf32> to vector<4x256xf32>
    %c16 = arith.constant 16 : index
    %c0_7 = arith.constant 0 : index
    %23 = vector.load %arg5[%c16, %c0_7] : memref<36x256xf32, #tpu.memory_space<vmem>>, vector<4x256xf32>
    tpu.vector_store %arg5[%c16, %c0_7], %22 {strides = array<i32>} : memref<36x256xf32, #tpu.memory_space<vmem>>, vector<4x256xf32>,
    %24 = vector.extract_strided_slice %8 {offsets = [0, 1, 2], sizes = [4, 16, 16], strides = [1, 1, 1]} : vector<4x18x18xf32> to vector<4x16x16xf32>
    %25 = vector.shape_cast %24 : vector<4x16x16xf32> to vector<4x256xf32>
    %c20 = arith.constant 20 : index
    %c0_8 = arith.constant 0 : index
    %26 = vector.load %arg5[%c20, %c0_8] : memref<36x256xf32, #tpu.memory_space<vmem>>, vector<4x256xf32>
    tpu.vector_store %arg5[%c20, %c0_8], %25 {strides = array<i32>} : memref<36x256xf32, #tpu.memory_space<vmem>>, vector<4x256xf32>,
    %27 = vector.extract_strided_slice %8 {offsets = [0, 2, 0], sizes = [4, 16, 16], strides = [1, 1, 1]} : vector<4x18x18xf32> to vector<4x16x16xf32>
    %28 = vector.shape_cast %27 : vector<4x16x16xf32> to vector<4x256xf32>
    %c24 = arith.constant 24 : index
    %c0_9 = arith.constant 0 : index
    %29 = vector.load %arg5[%c24, %c0_9] : memref<36x256xf32, #tpu.memory_space<vmem>>, vector<4x256xf32>
    tpu.vector_store %arg5[%c24, %c0_9], %28 {strides = array<i32>} : memref<36x256xf32, #tpu.memory_space<vmem>>, vector<4x256xf32>,
    %30 = vector.extract_strided_slice %8 {offsets = [0, 2, 1], sizes = [4, 16, 16], strides = [1, 1, 1]} : vector<4x18x18xf32> to vector<4x16x16xf32>
    %31 = vector.shape_cast %30 : vector<4x16x16xf32> to vector<4x256xf32>
    %c28 = arith.constant 28 : index
    %c0_10 = arith.constant 0 : index
    %32 = vector.load %arg5[%c28, %c0_10] : memref<36x256xf32, #tpu.memory_space<vmem>>, vector<4x256xf32>
    tpu.vector_store %arg5[%c28, %c0_10], %31 {strides = array<i32>} : memref<36x256xf32, #tpu.memory_space<vmem>>, vector<4x256xf32>,
    %33 = vector.extract_strided_slice %8 {offsets = [0, 2, 2], sizes = [4, 16, 16], strides = [1, 1, 1]} : vector<4x18x18xf32> to vector<4x16x16xf32>
    %34 = vector.shape_cast %33 : vector<4x16x16xf32> to vector<4x256xf32>
    %c32 = arith.constant 32 : index
    %c0_11 = arith.constant 0 : index
    %35 = vector.load %arg5[%c32, %c0_11] : memref<36x256xf32, #tpu.memory_space<vmem>>, vector<4x256xf32>
    tpu.vector_store %arg5[%c32, %c0_11], %34 {strides = array<i32>} : memref<36x256xf32, #tpu.memory_space<vmem>>, vector<4x256xf32>,
    %c0_12 = arith.constant 0 : index
    %c0_13 = arith.constant 0 : index
    %36 = vector.load %arg2[%c0_12, %c0_13] : memref<4x36xf32, #tpu.memory_space<vmem>>, vector<4x36xf32>
    %c0_14 = arith.constant 0 : index
    %c0_15 = arith.constant 0 : index
    %37 = vector.load %arg5[%c0_14, %c0_15] : memref<36x256xf32, #tpu.memory_space<vmem>>, vector<36x256xf32>
    %cst = arith.constant dense<0.000000e+00> : vector<4x256xf32>
    %38 = tpu.matmul %36, %37, %cst {dimension_numbers = #tpu.dot_dimension_numbers<[1], [0], [0], [1], [0, 0, 1, 1], [], []>} : vector<4x36xf32>, vector<36x256xf32>, vector<4x256xf32> -> vector<4x256xf32>
    %cst_16 = arith.constant dense<0.000000e+00> : vector<4xf32>
    %39 = vector.multi_reduction <add>, %38, %cst_16 [1] : vector<4x256xf32> to vector<4xf32>
    %40 = vector.shape_cast %39 : vector<4xf32> to vector<4x1xf32>
    %cst_17 = arith.constant 3.906250e-03 : f32
    %41 = vector.broadcast %cst_17 : f32 to vector<4x1xf32>
    %42 = arith.mulf %40, %41 : vector<4x1xf32>
    %43 = arith.mulf %38, %38 : vector<4x256xf32>
    %cst_18 = arith.constant dense<0.000000e+00> : vector<4xf32>
    %44 = vector.multi_reduction <add>, %43, %cst_18 [1] : vector<4x256xf32> to vector<4xf32>
    %45 = vector.shape_cast %44 : vector<4xf32> to vector<4x1xf32>
    %cst_19 = arith.constant 3.906250e-03 : f32
    %46 = vector.broadcast %cst_19 : f32 to vector<4x1xf32>
    %47 = arith.mulf %45, %46 : vector<4x1xf32>
    %48 = arith.mulf %42, %42 : vector<4x1xf32>
    %49 = arith.subf %47, %48 : vector<4x1xf32>
    %50 = vector.broadcast %42 : vector<4x1xf32> to vector<4x256xf32>
    %51 = arith.subf %38, %50 : vector<4x256xf32>
    %cst_20 = arith.constant 9.99999974E-6 : f32
    %52 = vector.broadcast %cst_20 : f32 to vector<4x1xf32>
    %53 = arith.addf %49, %52 : vector<4x1xf32>
    %54 = math.rsqrt %53 : vector<4x1xf32>
    %55 = vector.broadcast %54 : vector<4x1xf32> to vector<4x256xf32>
    %56 = arith.mulf %51, %55 : vector<4x256xf32>
    %cst_21 = arith.constant 0.000000e+00 : f32
    %57 = vector.broadcast %cst_21 : f32 to vector<4x256xf32>
    %58 = arith.maximumf %56, %57 : vector<4x256xf32>
    %59 = vector.shape_cast %58 : vector<4x256xf32> to vector<4x16x16xf32>
    %60 = vector.extract_strided_slice %59 {offsets = [0, 1, 0], sizes = [4, 1, 16], strides = [1, 1, 1]} : vector<4x16x16xf32> to vector<4x1x16xf32>
    %61 = vector.extract_strided_slice %59 {offsets = [0, 14, 0], sizes = [4, 1, 16], strides = [1, 1, 1]} : vector<4x16x16xf32> to vector<4x1x16xf32>
    %62 = tpu.concatenate %60, %59, %61 in 1 : vector<4x1x16xf32>, vector<4x16x16xf32>, vector<4x1x16xf32> -> vector<4x18x16xf32>
    %63 = vector.extract_strided_slice %62 {offsets = [0, 0, 1], sizes = [4, 18, 1], strides = [1, 1, 1]} : vector<4x18x16xf32> to vector<4x18x1xf32>
    %64 = vector.extract_strided_slice %62 {offsets = [0, 0, 14], sizes = [4, 18, 1], strides = [1, 1, 1]} : vector<4x18x16xf32> to vector<4x18x1xf32>
    %65 = tpu.concatenate %63, %62, %64 in 2 : vector<4x18x1xf32>, vector<4x18x16xf32>, vector<4x18x1xf32> -> vector<4x18x18xf32>
    %66 = vector.extract_strided_slice %65 {offsets = [0, 0, 0], sizes = [4, 16, 16], strides = [1, 1, 1]} : vector<4x18x18xf32> to vector<4x16x16xf32>
    %67 = vector.shape_cast %66 : vector<4x16x16xf32> to vector<4x256xf32>
    %c0_22 = arith.constant 0 : index
    %c0_23 = arith.constant 0 : index
    %68 = vector.load %arg5[%c0_22, %c0_23] : memref<36x256xf32, #tpu.memory_space<vmem>>, vector<4x256xf32>
    tpu.vector_store %arg5[%c0_22, %c0_23], %67 {strides = array<i32>} : memref<36x256xf32, #tpu.memory_space<vmem>>, vector<4x256xf32>,
    %69 = vector.extract_strided_slice %65 {offsets = [0, 0, 1], sizes = [4, 16, 16], strides = [1, 1, 1]} : vector<4x18x18xf32> to vector<4x16x16xf32>
    %70 = vector.shape_cast %69 : vector<4x16x16xf32> to vector<4x256xf32>
    %c4_24 = arith.constant 4 : index
    %c0_25 = arith.constant 0 : index
    %71 = vector.load %arg5[%c4_24, %c0_25] : memref<36x256xf32, #tpu.memory_space<vmem>>, vector<4x256xf32>
    tpu.vector_store %arg5[%c4_24, %c0_25], %70 {strides = array<i32>} : memref<36x256xf32, #tpu.memory_space<vmem>>, vector<4x256xf32>,
    %72 = vector.extract_strided_slice %65 {offsets = [0, 0, 2], sizes = [4, 16, 16], strides = [1, 1, 1]} : vector<4x18x18xf32> to vector<4x16x16xf32>
    %73 = vector.shape_cast %72 : vector<4x16x16xf32> to vector<4x256xf32>
    %c8_26 = arith.constant 8 : index
    %c0_27 = arith.constant 0 : index
    %74 = vector.load %arg5[%c8_26, %c0_27] : memref<36x256xf32, #tpu.memory_space<vmem>>, vector<4x256xf32>
    tpu.vector_store %arg5[%c8_26, %c0_27], %73 {strides = array<i32>} : memref<36x256xf32, #tpu.memory_space<vmem>>, vector<4x256xf32>,
    %75 = vector.extract_strided_slice %65 {offsets = [0, 1, 0], sizes = [4, 16, 16], strides = [1, 1, 1]} : vector<4x18x18xf32> to vector<4x16x16xf32>
    %76 = vector.shape_cast %75 : vector<4x16x16xf32> to vector<4x256xf32>
    %c12_28 = arith.constant 12 : index
    %c0_29 = arith.constant 0 : index
    %77 = vector.load %arg5[%c12_28, %c0_29] : memref<36x256xf32, #tpu.memory_space<vmem>>, vector<4x256xf32>
    tpu.vector_store %arg5[%c12_28, %c0_29], %76 {strides = array<i32>} : memref<36x256xf32, #tpu.memory_space<vmem>>, vector<4x256xf32>,
    %78 = vector.extract_strided_slice %65 {offsets = [0, 1, 1], sizes = [4, 16, 16], strides = [1, 1, 1]} : vector<4x18x18xf32> to vector<4x16x16xf32>
    %79 = vector.shape_cast %78 : vector<4x16x16xf32> to vector<4x256xf32>
    %c16_30 = arith.constant 16 : index
    %c0_31 = arith.constant 0 : index
    %80 = vector.load %arg5[%c16_30, %c0_31] : memref<36x256xf32, #tpu.memory_space<vmem>>, vector<4x256xf32>
    tpu.vector_store %arg5[%c16_30, %c0_31], %79 {strides = array<i32>} : memref<36x256xf32, #tpu.memory_space<vmem>>, vector<4x256xf32>,
    %81 = vector.extract_strided_slice %65 {offsets = [0, 1, 2], sizes = [4, 16, 16], strides = [1, 1, 1]} : vector<4x18x18xf32> to vector<4x16x16xf32>
    %82 = vector.shape_cast %81 : vector<4x16x16xf32> to vector<4x256xf32>
    %c20_32 = arith.constant 20 : index
    %c0_33 = arith.constant 0 : index
    %83 = vector.load %arg5[%c20_32, %c0_33] : memref<36x256xf32, #tpu.memory_space<vmem>>, vector<4x256xf32>
    tpu.vector_store %arg5[%c20_32, %c0_33], %82 {strides = array<i32>} : memref<36x256xf32, #tpu.memory_space<vmem>>, vector<4x256xf32>,
    %84 = vector.extract_strided_slice %65 {offsets = [0, 2, 0], sizes = [4, 16, 16], strides = [1, 1, 1]} : vector<4x18x18xf32> to vector<4x16x16xf32>
    %85 = vector.shape_cast %84 : vector<4x16x16xf32> to vector<4x256xf32>
    %c24_34 = arith.constant 24 : index
    %c0_35 = arith.constant 0 : index
    %86 = vector.load %arg5[%c24_34, %c0_35] : memref<36x256xf32, #tpu.memory_space<vmem>>, vector<4x256xf32>
    tpu.vector_store %arg5[%c24_34, %c0_35], %85 {strides = array<i32>} : memref<36x256xf32, #tpu.memory_space<vmem>>, vector<4x256xf32>,
    %87 = vector.extract_strided_slice %65 {offsets = [0, 2, 1], sizes = [4, 16, 16], strides = [1, 1, 1]} : vector<4x18x18xf32> to vector<4x16x16xf32>
    %88 = vector.shape_cast %87 : vector<4x16x16xf32> to vector<4x256xf32>
    %c28_36 = arith.constant 28 : index
    %c0_37 = arith.constant 0 : index
    %89 = vector.load %arg5[%c28_36, %c0_37] : memref<36x256xf32, #tpu.memory_space<vmem>>, vector<4x256xf32>
    tpu.vector_store %arg5[%c28_36, %c0_37], %88 {strides = array<i32>} : memref<36x256xf32, #tpu.memory_space<vmem>>, vector<4x256xf32>,
    %90 = vector.extract_strided_slice %65 {offsets = [0, 2, 2], sizes = [4, 16, 16], strides = [1, 1, 1]} : vector<4x18x18xf32> to vector<4x16x16xf32>
    %91 = vector.shape_cast %90 : vector<4x16x16xf32> to vector<4x256xf32>
    %c32_38 = arith.constant 32 : index
    %c0_39 = arith.constant 0 : index
    %92 = vector.load %arg5[%c32_38, %c0_39] : memref<36x256xf32, #tpu.memory_space<vmem>>, vector<4x256xf32>
    tpu.vector_store %arg5[%c32_38, %c0_39], %91 {strides = array<i32>} : memref<36x256xf32, #tpu.memory_space<vmem>>, vector<4x256xf32>,
    %c0_40 = arith.constant 0 : index
    %c0_41 = arith.constant 0 : index
    %93 = vector.load %arg3[%c0_40, %c0_41] : memref<4x36xf32, #tpu.memory_space<vmem>>, vector<4x36xf32>
    %c0_42 = arith.constant 0 : index
    %c0_43 = arith.constant 0 : index
    %94 = vector.load %arg5[%c0_42, %c0_43] : memref<36x256xf32, #tpu.memory_space<vmem>>, vector<36x256xf32>
    %cst_44 = arith.constant dense<0.000000e+00> : vector<4x256xf32>
    %95 = tpu.matmul %93, %94, %cst_44 {dimension_numbers = #tpu.dot_dimension_numbers<[1], [0], [0], [1], [0, 0, 1, 1], [], []>} : vector<4x36xf32>, vector<36x256xf32>, vector<4x256xf32> -> vector<4x256xf32>
    %cst_45 = arith.constant dense<0.000000e+00> : vector<4xf32>
    %96 = vector.multi_reduction <add>, %95, %cst_45 [1] : vector<4x256xf32> to vector<4xf32>
    %97 = vector.shape_cast %96 : vector<4xf32> to vector<4x1xf32>
    %cst_46 = arith.constant 3.906250e-03 : f32
    %98 = vector.broadcast %cst_46 : f32 to vector<4x1xf32>
    %99 = arith.mulf %97, %98 : vector<4x1xf32>
    %100 = arith.mulf %95, %95 : vector<4x256xf32>
    %cst_47 = arith.constant dense<0.000000e+00> : vector<4xf32>
    %101 = vector.multi_reduction <add>, %100, %cst_47 [1] : vector<4x256xf32> to vector<4xf32>
    %102 = vector.shape_cast %101 : vector<4xf32> to vector<4x1xf32>
    %cst_48 = arith.constant 3.906250e-03 : f32
    %103 = vector.broadcast %cst_48 : f32 to vector<4x1xf32>
    %104 = arith.mulf %102, %103 : vector<4x1xf32>
    %105 = arith.mulf %99, %99 : vector<4x1xf32>
    %106 = arith.subf %104, %105 : vector<4x1xf32>
    %107 = vector.broadcast %99 : vector<4x1xf32> to vector<4x256xf32>
    %108 = arith.subf %95, %107 : vector<4x256xf32>
    %cst_49 = arith.constant 9.99999974E-6 : f32
    %109 = vector.broadcast %cst_49 : f32 to vector<4x1xf32>
    %110 = arith.addf %106, %109 : vector<4x1xf32>
    %111 = math.rsqrt %110 : vector<4x1xf32>
    %112 = vector.broadcast %111 : vector<4x1xf32> to vector<4x256xf32>
    %113 = arith.mulf %108, %112 : vector<4x256xf32>
    %114 = arith.addf %113, %1 : vector<4x256xf32>
    %cst_50 = arith.constant 0.000000e+00 : f32
    %115 = vector.broadcast %cst_50 : f32 to vector<4x256xf32>
    %116 = arith.maximumf %114, %115 : vector<4x256xf32>
    %c0_51 = arith.constant 0 : index
    %c0_52 = arith.constant 0 : index
    %c0_53 = arith.constant 0 : index
    %117 = vector.load %arg4[%c0_51, %c0_52, %c0_53] : memref<1x4x256xf32, #tpu.memory_space<vmem>>, vector<1x4x256xf32>
    %118 = vector.shape_cast %117 : vector<1x4x256xf32> to vector<4x256xf32>
    %119 = vector.shape_cast %116 : vector<4x256xf32> to vector<1x4x256xf32>
    tpu.vector_store %arg4[%c0_51, %c0_52, %c0_53], %119 {strides = array<i32>} : memref<1x4x256xf32, #tpu.memory_space<vmem>>, vector<1x4x256xf32>,
    return
  }
  func.func @transform_0(%arg0: i32) -> (i32, i32, i32) {
    %c0_i32 = arith.constant 0 : i32
    %c0_i32_0 = arith.constant 0 : i32
    %c0_i32_1 = arith.constant 0 : i32
    return %arg0, %c0_i32, %c0_i32_0 : i32, i32, i32
  }
  func.func @transform_1(%arg0: i32) -> (i32, i32) {
    %c0_i32 = arith.constant 0 : i32
    %c0_i32_0 = arith.constant 0 : i32
    %c0_i32_1 = arith.constant 0 : i32
    return %c0_i32, %c0_i32_0 : i32, i32
  }
  func.func @transform_2(%arg0: i32) -> (i32, i32) {
    %c0_i32 = arith.constant 0 : i32
    %c0_i32_0 = arith.constant 0 : i32
    %c0_i32_1 = arith.constant 0 : i32
    return %c0_i32, %c0_i32_0 : i32, i32
  }
  func.func @transform_3(%arg0: i32) -> (i32, i32, i32) {
    %c0_i32 = arith.constant 0 : i32
    %c0_i32_0 = arith.constant 0 : i32
    %c0_i32_1 = arith.constant 0 : i32
    return %arg0, %c0_i32, %c0_i32_0 : i32, i32, i32
  }
}

</mosaic_0001>

<bundles_post_ra>
// kernel: tpu_custom_call.1
= control target key start
LH: loop header
LB: loop body
LE: loop exit
PB: predicated region body
PF: predicated region fallthrough
CT: control target
= control target key end

     0   :  { %8 = vsyncpa [#allocation4], 0  ;;  %s8809_s0 = inlined_call_operand.hbm [shape: f32[2,4,256], index: 0, kind: input, shape index: {}]   ;;  %s8810_s1 = inlined_call_operand.hbm [shape: f32[4,36], index: 1, kind: input, shape index: {}]   ;;  %s8811_s2 = inlined_call_operand.hbm [shape: f32[4,36], index: 2, kind: input, shape index: {}]   ;;  %s8812_s3 = inlined_call_operand.hbm [shape: f32[2,4,256], index: 3, kind: output, shape index: {}]  }
   0x1   :  { %10 = vsyncpa [#allocation4 + $0x1], 0 }
   0x2   :  { %11 = vsyncpa [#allocation7], 0 }
   0x3   :  { %12 = vsyncpa [#allocation5], 0 }
   0x4   :  { %14 = vsyncpa [#allocation5 + $0x1], 0  ;;  %s5365_s12 = smov 0   ;;  %s5367_s13 = smov 0  }
   0x5   :  { %s5369_s14 = smov 0   ;;  %s5371_s15 = smov 0  }
   0x6 LB: > { %s5386_s16 = sadd.s32 4294967295, %s5328_s15   ;;  %s5052_s17 = sadd.s32 4294967294, %s5328_s15   ;;  %s5328_s15 = sphi %s5371_s15, %s8936_s15   ;;  %s5324_s14 = sphi %s5369_s14, %s8935_s14   ;;  %s5320_s13 = sphi %s5367_s13, %s8934_s13   ;;  %s5316_s12 = sphi %s5365_s12, %s8933_s12  }
   0x7   : > { %p40_p0 = scmp.ne.s32.totalorder %s5320_s13, %s5316_s12  ;;  %p41_p1 = scmp.eq.s32.totalorder %s5386_s16, 0 }
   0x8   : > { %p106_p2 = scmp.eq.s32.totalorder %s5386_s16, 1  ;;  %p112_p3 = scmp.eq.s32.totalorder %s5052_s17, 1 }
   0x9   : > { %p5395_p4 = por %p41_p1, %p40_p0  ;;  %p5053_p5 = scmp.ge.s32.totalorder %s5328_s15, 1 }
   0xa   : > { %p5400_p6 = por %p112_p3, %p40_p0  ;;  %p119_p7 = scmp.lt.s32.totalorder %s5328_s15, 3 }
   0xb   : > { %s131_s22 = sshll.u32 %s8810_s1, 4  ;;  %s5330_s24 = smov [#allocation6]   ;;  %s132_s22 = int_to_ptr.hbm [resolvable:$true] %s131_s22 }
   0xc   : > { %p5408_p8 = pnand %p5053_p5, %p119_p7  ;;  %s133_s25 = sshll.u32 %s5330_s24, 4  ;;  %s134_s25 = int_to_ptr.vmem [resolvable:$true] %s133_s25 }
   0xd   : > { %s143_s28 = sshll.u32 %s8811_s2, 4  ;;  %s5331_s29 = smov [#allocation8]   ;;  %s144_s28 = int_to_ptr.hbm [resolvable:$true] %s143_s28 }
   0xe   : > { %p5096_p10 = pneg %p5408_p8  ;;  %s145_s30 = sshll.u32 %s5331_s29, 4  ;;  %s146_s30 = int_to_ptr.vmem [resolvable:$true] %s145_s30 }
   0xf   : > { %s5421_s4 = sadd.s32 1, %s5328_s15   ;;  %s27_s5 = sadd.s32 1, %s5324_s14 }
  0x10   : > { %p5097_p11 = pnand %p5096_p10, %p41_p1  ;;  %s24_s6 = ssub.s32 %s5328_s15, %s5421_s4 }
  0x11   : > { %p34_p12 = scmp.ne.s32.totalorder %s5324_s14, %s5320_s13  ;;  %p25_p13 = scmp.eq.s32.totalorder %s24_s6, 0 }
  0x12   : > { %5099 = dma.hbm_to_vmem [thread:$0]  (!%p5097_p11), %s132_s22, 64, %s134_s25, [#allocation7]  }
  0x13   : > { %5102 = dma.hbm_to_vmem [thread:$0]  (!%p5097_p11), %s144_s28, 64, %s146_s30, [#allocation7]  }
  0x14   : > { %p35_p0 = scmp.eq.s32.totalorder %s5328_s15, 0  ;;  %p5431_p3 = por %p106_p2, %p34_p12 }
  0x15   : > { %p5113_p5 = scmp.lt.s32.totalorder %s5328_s15, 2  ;;  %s156_s9 = sand.u32 1, %s5324_s14  }
  0x16   : > { %s5437_s8 = scalar_select %p25_p13, %s5324_s14, %s27_s5  }
  0x17   : > { %p36_p7 = por %p35_p0, %p34_p12  ;;  %s5057_s10 = sshll.u32 %s156_s9, 3 }
  0x18   : > { %s5082_s11 = sshll.u32 %s5328_s15, 3  ;;  %s160_s22 = scalar_lea.vmem [#allocation3], %s5057_s10 }
  0x19   : > { %s165_s21 = scalar_lea.hbm %s8809_s0, %s5082_s11  ;;  %s169_s24 = sshll.u32 %s160_s22, 4  ;;  %s170_s24 = int_to_ptr.vmem [resolvable:$true] %s169_s24 }
  0x1a   : > { %s167_s25 = sshll.u32 %s165_s21, 4  ;;  %p5444_p2 = pnand %p5113_p5, %p36_p7  ;;  %s168_s25 = int_to_ptr.hbm [resolvable:$true] %s167_s25 }
  0x1b   : > { %s157_s27 = scalar_lea.sflag [#allocation4], %s156_s9  ;;  %s5228_s28 = sshra.s32 %s168_s25, 4  ;;  %s5229_s28 = int_to_ptr.hbm [resolvable:$true] %s5228_s28 }
  0x1c   : > { %s5230_s29 = scalar_lea.hbm %s5229_s28, 8  ;;  %p5232_p11 = pneg %p5444_p2 }
  0x1d   : > { %p5231_p10 = scmp.ne.s32.totalorder %s5229_s28, %s5230_s29  ;;  %s5235_s6 = scalar_lea.hbm %s8809_s0, 16 }
  0x1e   : > { %p5236_p0 = scmp.lt.s32.totalorder %s5229_s28, %s8809_s0  ;;  %p5237_p5 = scmp.lt.s32.totalorder %s5235_s6, %s5230_s29 }
  0x1f   : > { %p5233_p12 = pnand %p5232_p11, %p5231_p10 }
  0x20   : > { %p5238_p7 = por %p5237_p5, %p5236_p0 }
  0x21   : > { %p5234_p13 = pneg %p5233_p12 }
  0x23   : > { %p5239_p9 = pnand %p5238_p7, %p5234_p13 }
  0x25   : > { %5242 = shalt.err (!%p5239_p9)
}
  0x26   : > { %5106 = dma.hbm_to_vmem [thread:$0]  (!%p5444_p2), %s168_s25, 128, %s170_s24, %s157_s27  }
  0x27   : > { %178 = sbr.rel (%p5408_p8) target bundleno = 2719 (0xa9f), region = 32 }
  0x2c   : > { %s5461_s9 = sand.u32 1, %s5320_s13  }
  0x2d   : > { %s5061_s17 = sshll.u32 %s5461_s9, 3  ;;  %s181_s20 = scalar_lea.sflag [#allocation4], %s5461_s9 }
  0x2e   : > { %s184_s21 = scalar_lea.vmem [#allocation3], %s5061_s17 }
  0x2f   : > { %5303 = dma.done.wait (%p5395_p4), %s181_s20, 128  }
  0x30   : > { %5305 = vsyncadd (%p5395_p4), %s181_s20, 4294967168 }
  0x31   : > { %5307 = dma.done.wait (%p41_p1), [#allocation7], 128  }
  0x32   : > { %5309 = vsyncadd (%p41_p1), [#allocation7], 4294967168  ;;  %v5475_v0 = vld [vmem:[%s184_s21] sm:$0xff]  ;;  %s5332_s23 = smov 80   ;;  %s5333_s22 = smov 112   ;;  %vm258_vm0 = vcmask 1047556  }
  0x33   : > { %230 = vrot.lane.b32.xlu1 %v5475_v0, %s5332_s23  ;;  %222 = vrot.lane.b32.xlu0 %v5475_v0, %s5333_s22  ;;  %s5334_s24 = smov 48   ;;  %s5335_s18 = smov 96   ;;  %v5339_v1 = vmov 1983009808   ;;  %v5340_v11 = vmov 1934713408  }
  0x34   : > { %238 = vrot.lane.b32.xlu2 %v5475_v0, %s5334_s24  ;;  %s5336_s25 = smov 64   ;;  %s5337_s26 = smov 32   ;;  %v261_v2 = vunpack.c.l.s4 %v5339_v1  ;;  %v275_v12 = vunpack.c.l.s4 %v5340_v11  ;;  %v220_v13 = vrot.slane %v5475_v0, 4  ;;  %vm425_vm1 = vcmask 1040384  }
  0x35   : > { %s5338_s27 = smov 16   ;;  %s5341_s28 = smov 127   ;;  %vm578_vm2 = vcmask 7168   ;;  %vm591_vm3 = vcmask 138240   ;;  %vm1870_vm4 = vcmask 1045504   ;;  %vm1229_vm5 = vcmask 1046528  }
  0x36   : > { %v5491_v8 = vunpack.c.0.s8 %v261_v2  ;;  %v5498_v18 = vunpack.c.0.s8 %v275_v12  ;;  %s5342_s29 = smov 1   ;;  %s5343_s30 = smov 3   ;;  %vm772_vm6 = vcmask 130048   ;;  %vm774_vm7 = vcmask 261120  }
  0x37   : > { %s5344_s5 = smov 126   ;;  %vm776_vm8 = vcmask 392192   ;;  %vm778_vm9 = vcmask 523264   ;;  %vm780_vm10 = vcmask 654336   ;;  %vm782_vm11 = vcmask 785408   ;;  %s5083_s6 = sshll.u32 %s5386_s16, 3 }
  0x38   : > { %vm784_vm12 = vcmask 916480   ;;  %vm8822_vm13 = vcmask 1043456   ;;  %vm8821_vm14 = vcmask 293888   ;;  %s4958_s20 = scalar_lea.hbm %s8812_s3, %s5083_s6  ;;  %s217_s21 = scalar_lea.vmem [#allocation9], %s5061_s17 }
  0x39   : > { %s4947_s16 = scalar_lea.sflag [#allocation5], %s5461_s9  ;;  %s5278_s17 = scalar_lea.hbm %s8812_s3, 16 }
  0x3b   : > { %226 = vrot.lane.b32.xlu0 %v5475_v0, %s5335_s18  ;;  %234 = vrot.lane.b32.xlu1 %v5475_v0, %s5336_s25 }
  0x3c   : > { %242 = vrot.lane.b32.xlu2 %v5475_v0, %s5337_s26 }
  0x43   : > { %246 = vrot.lane.b32.xlu0 %v5475_v0, %s5338_s27 }
  0x8e   : > { %v239_v3 = vpop.permute.xlu2 %238 }
  0x8f   : > { %v240_v32 = vrot.slane %v239_v3, 4 }
  0x96   : > { %v243_v17 = vpop.permute.xlu2 %242 }
  0x97   : > { %v286_v25 = vrot.slane %v243_v17, 4 }
  0xa5   : > { %v231_v4 = vpop.permute.xlu1 %230  ;;  %v223_v5 = vpop.permute.xlu0 %222 }
  0xa6   : > { %v264_v6 = vrot.slane %v231_v4, 4  ;;  %v224_v7 = vrot.slane %v223_v5, 4 }
  0xa8   : > { %v321_v9 = vsel %vm258_vm0, %v231_v4, %v224_v7  ;;  %v265_v10 = vsel %vm258_vm0, %v264_v6, %v223_v5 }
  0xa9   : > { %v325_v14 = vperm.slane %v321_v9, %v5491_v8  ;;  %v269_v15 = vperm.slane %v265_v10, %v5491_v8 }
  0xab   : > { %v326_v22 = vrot.slane %v325_v14, 4  ;;  %v270_v26 = vrot.slane %v269_v15, 4 }
  0xad   : > { %v227_v16 = vpop.permute.xlu0 %226  ;;  %v235_v21 = vpop.permute.xlu1 %234 }
  0xae   : > { %v257_v19 = vrot.slane %v227_v16, 4  ;;  %v315_v20 = vsel %vm258_vm0, %v227_v16, %v220_v13  ;;  %v236_v29 = vrot.slane %v235_v21, 4  ;;  %v287_v34 = vsel %vm258_vm0, %v286_v25, %v235_v21 }
  0xaf   : > { %v319_v23 = vperm.slane %v315_v20, %v5491_v8  ;;  %v291_v42 = vperm.slane %v287_v34, %v5491_v8 }
  0xb0   : > { %v259_v24 = vsel %vm258_vm0, %v257_v19, %v5475_v0  ;;  %v343_v36 = vsel %vm258_vm0, %v243_v17, %v236_v29 }
  0xb1   : > { %v263_v27 = vperm.slane %v259_v24, %v5491_v8  ;;  %v327_v28 = vsel %vm258_vm0, %v326_v22, %v319_v23  ;;  %v328_v38 = vrot.slane %v319_v23, 4  ;;  %v347_v45 = vperm.slane %v343_v36, %v5491_v8 }
  0xb2   : > { %v333_v30 = vperm.slane %v327_v28, %v5498_v18  ;;  %v300_v52 = vrot.slane %v291_v42, 4 }
  0xb3   : > { %v271_v31 = vsel %vm258_vm0, %v270_v26, %v263_v27  ;;  %v329_v50 = vsel %vm258_vm0, %v325_v14, %v328_v38  ;;  %v272_v51 = vrot.slane %v263_v27, 4  ;;  %v356_v55 = vrot.slane %v347_v45, 4 }
  0xb4   : > { %v338_v33 = vrot.slane %v333_v30, 4  ;;  %398 = vst [vmem:[#allocation1 + $0x10] ss:$2 sm:$0xff] %v333_v30  ;;  %v5510_v35 = vperm.slane %v271_v31, %v5498_v18  ;;  %v337_v57 = vperm.slane %v329_v50, %v5498_v18 }
  0xb5   : > { %v247_v37 = vpop.permute.xlu0 %246  ;;  %v273_v62 = vsel %vm258_vm0, %v269_v15, %v272_v51 }
  0xb6   : > { %v339_v39 = vsel %vm258_vm0, 0.0, %v338_v33  ;;  %v292_v40 = vrot.slane %v247_v37, 4  ;;  %v349_v41 = vsel %vm258_vm0, %v247_v37, %v240_v32  ;;  %394 = vst [vmem:[#allocation1] ss:$2 sm:$0xff] %v5510_v35  ;;  %v282_v44 = vrot.slane %v5510_v35, 4 }
  0xb7   : > { %408 = vst [vmem:[#allocation1 + $0x30] ss:$2 sm:$0xff] %v339_v39  ;;  %v353_v43 = vperm.slane %v349_v41, %v5491_v8  ;;  %v5539_v6 = vperm.slane %v273_v62, %v5498_v18  ;;  %v374_v11 = vperm.slane %v5510_v35, 1 }
  0xb8   : > { %v293_v46 = vsel %vm258_vm0, %v292_v40, %v239_v3  ;;  %v5523_v49 = vsel %vm258_vm0, 0.0, %v282_v44  ;;  %v340_v3 = vrot.slane %v337_v57, 4 }
  0xb9   : > { %v297_v47 = vperm.slane %v293_v46, %v5491_v8  ;;  %v354_v48 = vrot.slane %v353_v43, 4  ;;  %404 = vst [vmem:[#allocation1 + $0x20] ss:$2 sm:$0xff] %v5523_v49  ;;  %v357_v1 = vsel %vm258_vm0, %v353_v43, %v356_v55  ;;  %v284_v15 = vrot.slane %v5539_v6, 4 }
  0xba   : > { %v5542_v7 = vperm.slane %v357_v1, %v5498_v18  ;;  %v341_v9 = vsel %vm258_vm0, 0.0, %v340_v3  ;;  %v375_v33 = vperm.slane %v5523_v49, 1  ;;  %v376_v40 = vperm.slane %v5539_v6, 1 }
  0xbb   : > { %v298_v53 = vrot.slane %v297_v47, 4  ;;  %v355_v54 = vsel %vm258_vm0, %v354_v48, %v347_v45  ;;  %v301_v61 = vsel %vm258_vm0, %v297_v47, %v300_v52  ;;  %v285_v27 = vsel %vm258_vm0, 0.0, %v284_v15 }
  0xbc   : > { %v361_v56 = vperm.slane %v355_v54, %v5498_v18  ;;  %v309_v4 = vperm.slane %v301_v61, %v5498_v18  ;;  %v368_v17 = vrot.slane %v5542_v7, 4  ;;  %v448_v37 = vperm.slane %v5542_v7, 2 }
  0xbd   : > { %v299_v58 = vsel %vm258_vm0, %v298_v53, %v291_v42  ;;  %v377_v49 = vperm.slane %v285_v27, 1 }
  0xbe   : > { %v305_v59 = vperm.slane %v299_v58, %v5498_v18  ;;  %400 = vst [vmem:[#allocation1 + $0x11] ss:$2 sm:$0xff] %v361_v56  ;;  %v366_v60 = vrot.slane %v361_v56, 4  ;;  %v312_v12 = vrot.slane %v309_v4, 4  ;;  %v446_v14 = vperm.slane %v361_v56, 2 }
  0xbf   : > { %v369_v26 = vsel %vm258_vm0, 0.0, %v368_v17 }
  0xc0   : > { %v310_v63 = vrot.slane %v305_v59, 4  ;;  %396 = vst [vmem:[#allocation1 + $0x1] ss:$2 sm:$0xff] %v305_v59  ;;  %v367_v2 = vsel %vm258_vm0, 0.0, %v366_v60  ;;  %v313_v24 = vsel %vm258_vm0, 0.0, %v312_v12  ;;  %v449_v46 = vperm.slane %v369_v26, 2 }
  0xc1   : > { %410 = vst [vmem:[#allocation1 + $0x31] ss:$2 sm:$0xff] %v367_v2  ;;  %v447_v30 = vperm.slane %v367_v2, 2 }
  0xc2   : > { %v311_v5 = vsel %vm258_vm0, 0.0, %v310_v63 }
  0xc3   : > { %406 = vst [vmem:[#allocation1 + $0x21] ss:$2 sm:$0xff] %v311_v5 }
  0xc5   : > { %v402_v10 = vld.sshfl [vmem:[#allocation1 + $0x10] sm:$0xff pattern:$0x75316420] }
  0xc6   : > { %v427_v13 = vrot.slane %v402_v10, 7  ;;  %415 = vst [vmem:[#allocation1 + $0x10] ss:$2 sm:$0xff] %v337_v57 }
  0xc7   : > { %416 = vst [vmem:[#allocation1 + $0x11] ss:$2 sm:$0xff] %v5542_v7  ;;  %v401_v16 = vld.sshfl [vmem:[#allocation1] sm:$0xff pattern:$0x75316420] }
  0xc8   : > { %v458_v19 = vsel %vm425_vm1, %v427_v13, %v446_v14  ;;  %v426_v20 = vrot.slane %v401_v16, 7  ;;  %414 = vst [vmem:[#allocation1 + $0x1] ss:$2 sm:$0xff] %v309_v4  ;;  %v412_v21 = vld.sshfl [vmem:[#allocation1 + $0x30] sm:$0xff pattern:$0x75316420] }
  0xc9   : > { %474 = vrot.lane.b32.xlu0 %v458_v19, %s5341_s28  ;;  %421 = vst [vmem:[#allocation1 + $0x30] ss:$2 sm:$0xff] %v341_v9  ;;  %v430_v29 = vrot.slane %v412_v21, 7 }
  0xca   : > { %v454_v22 = vsel %vm425_vm1, %v374_v11, %v426_v20  ;;  %v428_v23 = vsel %vm425_vm1, %v426_v20, %v427_v13  ;;  %v411_v25 = vld.sshfl [vmem:[#allocation1 + $0x20] sm:$0xff pattern:$0x75316420]  ;;  %413 = vst [vmem:[#allocation1] ss:$2 sm:$0xff] %v5539_v6 }
  0xcb   : > { %470 = vrot.lane.b32.xlu1 %v454_v22, %s5341_s28  ;;  %472 = vrot.lane.b32.xlu2 %v428_v23, %s5341_s28  ;;  %420 = vst [vmem:[#allocation1 + $0x21] ss:$2 sm:$0xff] %v313_v24  ;;  %v429_v31 = vrot.slane %v411_v25, 7  ;;  %v459_v32 = vsel %vm425_vm1, %v430_v29, %v447_v30 }
  0xcc   : > { %422 = vst [vmem:[#allocation1 + $0x31] ss:$2 sm:$0xff] %v369_v26 }
  0xcd   : > { %419 = vst [vmem:[#allocation1 + $0x20] ss:$2 sm:$0xff] %v285_v27  ;;  %v431_v34 = vsel %vm425_vm1, %v429_v31, %v430_v29 }
  0xce   : > { %v418_v35 = vld.sshfl [vmem:[#allocation1 + $0x10] sm:$0xff pattern:$0x75316420] }
  0xcf   : > { %v433_v36 = vrot.slane %v418_v35, 7 }
  0xd1   : > { %510 = vrot.lane.b32.xlu0 %v458_v19, %s5342_s29  ;;  %v417_v28 = vld.sshfl [vmem:[#allocation1] sm:$0xff pattern:$0x75316420]  ;;  %v460_v39 = vsel %vm425_vm1, %v433_v36, %v448_v37 }
  0xd2   : > { %4931 = vst [vmem:[#allocation1] ss:$2 sm:$0xff] %v5475_v0  ;;  %v455_v0 = vsel %vm425_vm1, %v375_v33, %v429_v31  ;;  %v432_v38 = vrot.slane %v417_v28, 7 }
  0xd3   : > { %506 = vrot.lane.b32.xlu1 %v454_v22, %s5342_s29  ;;  %508 = vrot.lane.b32.xlu2 %v428_v23, %s5342_s29  ;;  %v424_v43 = vld.sshfl [vmem:[#allocation1 + $0x30] sm:$0xff pattern:$0x75316420] }
  0xd4   : > { %v456_v41 = vsel %vm425_vm1, %v376_v40, %v432_v38  ;;  %v434_v42 = vsel %vm425_vm1, %v432_v38, %v433_v36  ;;  %v423_v44 = vld.sshfl [vmem:[#allocation1 + $0x20] sm:$0xff pattern:$0x75316420]  ;;  %v436_v45 = vrot.slane %v424_v43, 7 }
  0xd5   : > { %v435_v47 = vrot.slane %v423_v44, 7 }
  0xd6   : > { %v461_v48 = vsel %vm425_vm1, %v436_v45, %v449_v46 }
  0xd7   : > { %v457_v50 = vsel %vm425_vm1, %v377_v49, %v435_v47  ;;  %v437_v51 = vsel %vm425_vm1, %v435_v47, %v436_v45 }
  0xd9   : > { %546 = vrot.lane.b32.xlu0 %v458_v19, %s5343_s30 }
  0xdb   : > { %542 = vrot.lane.b32.xlu1 %v454_v22, %s5343_s30  ;;  %544 = vrot.lane.b32.xlu2 %v428_v23, %s5343_s30 }
  0xe1   : > { %480 = vrot.lane.b32.xlu0 %v459_v32, %s5341_s28 }
  0xe3   : > { %476 = vrot.lane.b32.xlu1 %v455_v0, %s5341_s28  ;;  %478 = vrot.lane.b32.xlu2 %v431_v34, %s5341_s28 }
  0xe9   : > { %516 = vrot.lane.b32.xlu0 %v459_v32, %s5342_s29 }
  0xeb   : > { %512 = vrot.lane.b32.xlu1 %v455_v0, %s5342_s29  ;;  %514 = vrot.lane.b32.xlu2 %v431_v34, %s5342_s29 }
  0xf1   : > { %552 = vrot.lane.b32.xlu0 %v459_v32, %s5343_s30 }
  0xf3   : > { %548 = vrot.lane.b32.xlu1 %v455_v0, %s5343_s30  ;;  %550 = vrot.lane.b32.xlu2 %v431_v34, %s5343_s30 }
  0xf9   : > { %486 = vrot.lane.b32.xlu0 %v460_v39, %s5341_s28 }
  0xfb   : > { %482 = vrot.lane.b32.xlu1 %v456_v41, %s5341_s28  ;;  %484 = vrot.lane.b32.xlu2 %v434_v42, %s5341_s28 }
 0x101   : > { %522 = vrot.lane.b32.xlu0 %v460_v39, %s5342_s29 }
 0x103   : > { %518 = vrot.lane.b32.xlu1 %v456_v41, %s5342_s29  ;;  %520 = vrot.lane.b32.xlu2 %v434_v42, %s5342_s29 }
 0x109   : > { %558 = vrot.lane.b32.xlu0 %v460_v39, %s5343_s30 }
 0x10b   : > { %554 = vrot.lane.b32.xlu1 %v456_v41, %s5343_s30  ;;  %556 = vrot.lane.b32.xlu2 %v434_v42, %s5343_s30 }
 0x111   : > { %492 = vrot.lane.b32.xlu0 %v461_v48, %s5341_s28 }
 0x113   : > { %488 = vrot.lane.b32.xlu1 %v457_v50, %s5341_s28  ;;  %490 = vrot.lane.b32.xlu2 %v437_v51, %s5341_s28 }
 0x119   : > { %528 = vrot.lane.b32.xlu0 %v461_v48, %s5342_s29 }
 0x11b   : > { %524 = vrot.lane.b32.xlu1 %v457_v50, %s5342_s29  ;;  %526 = vrot.lane.b32.xlu2 %v437_v51, %s5342_s29 }
 0x121   : > { %564 = vrot.lane.b32.xlu0 %v461_v48, %s5343_s30 }
 0x123   : > { %560 = vrot.lane.b32.xlu1 %v457_v50, %s5343_s30  ;;  %562 = vrot.lane.b32.xlu2 %v437_v51, %s5343_s30 }
 0x125   : > { %v473_v52 = vpop.permute.xlu2 %472 }
 0x12d   : > { %v509_v53 = vpop.permute.xlu2 %508 }
 0x12e   : > { %v580_v54 = vsel %vm578_vm2, %v473_v52, %v509_v53 }
 0x135   : > { %v545_v55 = vpop.permute.xlu2 %544 }
 0x136   : > { %v5607_v56 = vsel %vm591_vm3, %v580_v54, %v545_v55 }
 0x137   : > { %805 = vrot.lane.b32.xlu1 %v5607_v56, %s5341_s28  ;;  %1019 = vrot.lane.b32.xlu2 %v5607_v56, %s5344_s5  ;;  %v1872_v3 = vrot.slane %v5607_v56, 2  ;;  %v1231_v21 = vrot.slane %v5607_v56, 1  ;;  %v662_v51 = vrot.slane %v5607_v56, 4 }
 0x13b   : > { %v475_v57 = vpop.permute.xlu0 %474 }
 0x13d   : > { %v471_v58 = vpop.permute.xlu1 %470  ;;  %v479_v59 = vpop.permute.xlu2 %478 }
 0x143   : > { %v511_v60 = vpop.permute.xlu0 %510 }
 0x144   : > { %v581_v63 = vsel %vm578_vm2, %v475_v57, %v511_v60 }
 0x145   : > { %v507_v61 = vpop.permute.xlu1 %506  ;;  %v515_v62 = vpop.permute.xlu2 %514 }
 0x146   : > { %v579_v4 = vsel %vm578_vm2, %v471_v58, %v507_v61  ;;  %v583_v14 = vsel %vm578_vm2, %v479_v59, %v515_v62 }
 0x14b   : > { %v547_v1 = vpop.permute.xlu0 %546 }
 0x14c   : > { %v594_v2 = vsel %vm591_vm3, %v581_v63, %v547_v1 }
 0x14d   : > { %v1874_v5 = vrot.slane %v594_v2, 2  ;;  %v543_v6 = vpop.permute.xlu1 %542  ;;  %v551_v7 = vpop.permute.xlu2 %550  ;;  %v1233_v39 = vrot.slane %v594_v2, 1 }
 0x14e   : > { %v5618_v9 = vsel %vm591_vm3, %v579_v4, %v543_v6  ;;  %v5633_v17 = vsel %vm591_vm3, %v583_v14, %v551_v7 }
 0x14f   : > { %v5621_v10 = vsel %vm1870_vm4, %v1872_v3, %v1874_v5  ;;  %v1871_v11 = vrot.slane %v5618_v9, 2  ;;  %1017 = vrot.lane.b32.xlu1 %v5618_v9, %s5344_s5  ;;  %803 = vrot.lane.b32.xlu0 %v5618_v9, %s5341_s28  ;;  %v1230_v19 = vrot.slane %v5618_v9, 1  ;;  %v1877_v28 = vrot.slane %v5633_v17, 2 }
 0x150   : > { %8849 = vst [vmem:[#allocation13_spill] sm:$0xff] %v5621_v10  ;;  %v1236_v34 = vrot.slane %v5633_v17, 1  ;;  %v5672_v44 = vsel %vm1229_vm5, %v1231_v21, %v1233_v39  ;;  %v674_v7 = vrot.slane %v5633_v17, 4 }
 0x151   : > { %v5629_v12 = vsel %vm1870_vm4, %v1871_v11, %v1872_v3  ;;  %v5642_v24 = vsel %vm1229_vm5, %v1230_v19, %v1231_v21 }
 0x152   : > { %8850 = vst [vmem:[#allocation14_spill] sm:$0xff] %v5629_v12  ;;  %v1260_v39 = vrot.slane %v5642_v24, 4 }
 0x153   : > { %v481_v13 = vpop.permute.xlu0 %480 }
 0x155   : > { %v477_v15 = vpop.permute.xlu1 %476  ;;  %v485_v16 = vpop.permute.xlu2 %484 }
 0x157   : > { %1023 = vrot.lane.b32.xlu1 %v5633_v17, %s5344_s5  ;;  %809 = vrot.lane.b32.xlu0 %v5633_v17, %s5341_s28 }
 0x15b   : > { %v517_v20 = vpop.permute.xlu0 %516 }
 0x15c   : > { %v584_v25 = vsel %vm578_vm2, %v481_v13, %v517_v20 }
 0x15d   : > { %v513_v22 = vpop.permute.xlu1 %512  ;;  %v521_v23 = vpop.permute.xlu2 %520 }
 0x15e   : > { %v582_v29 = vsel %vm578_vm2, %v477_v15, %v513_v22  ;;  %v586_v49 = vsel %vm578_vm2, %v485_v16, %v521_v23 }
 0x15f   : > { %1448 = vrot.lane.b32.xlu1 %v5642_v24, %s5341_s28 }
 0x163   : > { %v553_v26 = vpop.permute.xlu0 %552 }
 0x164   : > { %v597_v27 = vsel %vm591_vm3, %v584_v25, %v553_v26 }
 0x165   : > { %v1238_v30 = vrot.slane %v597_v27, 1  ;;  %v1879_v31 = vrot.slane %v597_v27, 2  ;;  %v549_v32 = vpop.permute.xlu1 %548  ;;  %v557_v33 = vpop.permute.xlu2 %556 }
 0x166   : > { %v5651_v0 = vsel %vm591_vm3, %v582_v29, %v549_v32  ;;  %v599_v50 = vsel %vm591_vm3, %v586_v49, %v557_v33 }
 0x167   : > { %v5655_v35 = vsel %vm1870_vm4, %v1877_v28, %v1879_v31  ;;  %v1876_v36 = vrot.slane %v5651_v0, 2  ;;  %1021 = vrot.lane.b32.xlu0 %v5651_v0, %s5344_s5  ;;  %807 = vrot.lane.b32.xlu2 %v5651_v0, %s5341_s28  ;;  %v5663_v37 = vsel %vm1229_vm5, %v1236_v34, %v1238_v30  ;;  %v1235_v41 = vrot.slane %v5651_v0, 1 }
 0x168   : > { %8851 = vst [vmem:[#allocation15_spill] sm:$0xff] %v5655_v35  ;;  %1454 = vrot.lane.b32.xlu1 %v5663_v37, %s5341_s28  ;;  %v660_v54 = vrot.slane %v599_v50, 4  ;;  %v663_v55 = vsel %vm258_vm0, %v599_v50, %v662_v51  ;;  %v1882_v58 = vrot.slane %v599_v50, 2  ;;  %v1241_v30 = vrot.slane %v599_v50, 1 }
 0x169   : > { %v5666_v38 = vsel %vm1870_vm4, %v1876_v36, %v1877_v28  ;;  %v5679_v45 = vsel %vm1229_vm5, %v1235_v41, %v1236_v34  ;;  %v671_v5 = vperm.slane %v663_v55, %v5491_v8  ;;  %v606_v36 = vrot.slane %v5618_v9, 4 }
 0x16a   : > { %8852 = vst [vmem:[#allocation16_spill] sm:$0xff] %v5666_v38  ;;  %v661_v6 = vsel %vm258_vm0, %v660_v54, %v5607_v56  ;;  %v618_v51 = vrot.slane %v5651_v0, 4  ;;  %v1328_v55 = vrot.slane %v5663_v37, 4 }
 0x16b   : > { %v487_v40 = vpop.permute.xlu0 %486  ;;  %v667_v16 = vperm.slane %v661_v6, %v5491_v8  ;;  %v698_v20 = vrot.slane %v671_v5, 4 }
 0x16d   : > { %v483_v42 = vpop.permute.xlu1 %482  ;;  %v491_v43 = vpop.permute.xlu2 %490  ;;  %v686_v26 = vrot.slane %v667_v16, 4 }
 0x16f   : > { %1658 = vrot.lane.b32.xlu0 %v5672_v44, %s5344_s5  ;;  %1450 = vrot.lane.b32.xlu2 %v5672_v44, %s5341_s28 }
 0x170   : > { %1660 = vrot.lane.b32.xlu1 %v5679_v45, %s5344_s5 }
 0x173   : > { %v523_v46 = vpop.permute.xlu0 %522 }
 0x174   : > { %v587_v52 = vsel %vm578_vm2, %v487_v40, %v523_v46 }
 0x175   : > { %v519_v47 = vpop.permute.xlu1 %518  ;;  %v527_v48 = vpop.permute.xlu2 %526 }
 0x176   : > { %v585_v59 = vsel %vm578_vm2, %v483_v42, %v519_v47  ;;  %v589_v60 = vsel %vm578_vm2, %v491_v43, %v527_v48  ;;  %v1316_v43 = vrot.slane %v5672_v44, 4 }
 0x177   : > { %1452 = vrot.lane.b32.xlu0 %v5679_v45, %s5341_s28  ;;  %1656 = vrot.lane.b32.xlu2 %v5642_v24, %s5344_s5 }
 0x17b   : > { %v559_v53 = vpop.permute.xlu0 %558 }
 0x17c   : > { %v600_v57 = vsel %vm591_vm3, %v587_v52, %v559_v53 }
 0x17d   : > { %v1884_v61 = vrot.slane %v600_v57, 2  ;;  %v555_v62 = vpop.permute.xlu1 %554  ;;  %v563_v63 = vpop.permute.xlu2 %562 }
 0x17e   : > { %v598_v1 = vsel %vm591_vm3, %v585_v59, %v555_v62  ;;  %v5697_v2 = vsel %vm591_vm3, %v589_v60, %v563_v63 }
 0x17f   : > { %v5700_v3 = vsel %vm1870_vm4, %v1882_v58, %v1884_v61  ;;  %v1881_v4 = vrot.slane %v598_v1, 2  ;;  %811 = vrot.lane.b32.xlu1 %v598_v1, %s5341_s28  ;;  %1027 = vrot.lane.b32.xlu0 %v599_v50, %s5344_s5  ;;  %v672_v13 = vrot.slane %v5697_v2, 4  ;;  %v675_v15 = vsel %vm258_vm0, %v5697_v2, %v674_v7 }
 0x180   : > { %8853 = vst [vmem:[#allocation17_spill] sm:$0xff] %v5700_v3  ;;  %1662 = vrot.lane.b32.xlu2 %v5663_v37, %s5344_s5  ;;  %v683_v19 = vperm.slane %v675_v15, %v5491_v8  ;;  %v1240_v27 = vrot.slane %v598_v1, 1  ;;  %v604_v40 = vrot.slane %v598_v1, 4  ;;  %v607_v46 = vsel %vm258_vm0, %v598_v1, %v606_v36 }
 0x181   : > { %v5711_v11 = vsel %vm1870_vm4, %v1881_v4, %v1882_v58  ;;  %v673_v56 = vsel %vm258_vm0, %v672_v13, %v5633_v17  ;;  %v1243_v17 = vrot.slane %v600_v57, 1  ;;  %v615_v54 = vperm.slane %v607_v46, %v5491_v8 }
 0x182   : > { %8854 = vst [vmem:[#allocation18_spill] sm:$0xff] %v5711_v11  ;;  %v5721_v22 = vsel %vm258_vm0, %v683_v19, %v698_v20  ;;  %v696_v23 = vrot.slane %v683_v19, 4  ;;  %v679_v25 = vperm.slane %v673_v56, %v5491_v8  ;;  %v5734_v33 = vsel %vm1229_vm5, %v1240_v27, %v1241_v30 }
 0x183   : > { %v493_v14 = vpop.permute.xlu0 %492  ;;  %v5742_v42 = vsel %vm1229_vm5, %v1241_v30, %v1243_v17  ;;  %v1261_v47 = vsel %vm258_vm0, %v5734_v33, %v1260_v39  ;;  %v1258_v52 = vrot.slane %v5734_v33, 4  ;;  %v1272_v57 = vrot.slane %v5679_v45, 4 }
 0x184   : > { %v5728_v28 = vsel %vm258_vm0, %v696_v23, %v671_v5  ;;  %v5731_v29 = vsel %vm258_vm0, %v679_v25, %v686_v26  ;;  %v684_v31 = vrot.slane %v679_v25, 4  ;;  %v1314_v48 = vrot.slane %v5742_v42, 4 }
 0x185   : > { %v489_v21 = vpop.permute.xlu1 %488  ;;  %v1317_v49 = vsel %vm258_vm0, %v5742_v42, %v1316_v43  ;;  %v5757_v53 = vperm.slane %v1261_v47, %v5491_v8  ;;  %v1887_v58 = vrot.slane %v5697_v2, 2  ;;  %v1246_v62 = vrot.slane %v5697_v2, 1 }
 0x186   : > { %v5737_v34 = vsel %vm258_vm0, %v684_v31, %v667_v16  ;;  %v1325_v61 = vperm.slane %v1317_v49, %v5491_v8  ;;  %v1315_v7 = vsel %vm258_vm0, %v1314_v48, %v5672_v44  ;;  %v642_v15 = vrot.slane %v615_v54, 4 }
 0x187   : > { %817 = vrot.lane.b32.xlu1 %v5697_v2, %s5341_s28  ;;  %v1296_v16 = vrot.slane %v5757_v53, 4  ;;  %v1321_v25 = vperm.slane %v1315_v7, %v5491_v8 }
 0x188   : > { %813 = vrot.lane.b32.xlu2 %v599_v50, %s5341_s28  ;;  %v605_v50 = vsel %vm258_vm0, %v604_v40, %v5618_v9  ;;  %v1352_v30 = vrot.slane %v1325_v61, 4 }
 0x189   : > { %v611_v63 = vperm.slane %v605_v50, %v5491_v8 }
 0x18b   : > { %v529_v32 = vpop.permute.xlu0 %528  ;;  %v630_v23 = vrot.slane %v611_v63, 4 }
 0x18c   : > { %v590_v59 = vsel %vm578_vm2, %v493_v14, %v529_v32  ;;  %v1259_v14 = vsel %vm258_vm0, %v1258_v52, %v5642_v24 }
 0x18d   : > { %v525_v41 = vpop.permute.xlu1 %524 }
 0x190   : > { %1025 = vrot.lane.b32.xlu2 %v598_v1, %s5344_s5  ;;  %v588_v1 = vsel %vm578_vm2, %v489_v21, %v525_v41 }
 0x193   : > { %v565_v60 = vpop.permute.xlu0 %564 }
 0x194   : > { %v603_v9 = vsel %vm591_vm3, %v590_v59, %v565_v60 }
 0x195   : > { %v1248_v4 = vrot.slane %v603_v9, 1  ;;  %v1889_v5 = vrot.slane %v603_v9, 2  ;;  %v561_v6 = vpop.permute.xlu1 %560 }
 0x196   : > { %v601_v13 = vsel %vm591_vm3, %v588_v1, %v561_v6 }
 0x197   : > { %v5776_v19 = vsel %vm1870_vm4, %v1887_v58, %v1889_v5  ;;  %v616_v20 = vrot.slane %v601_v13, 4  ;;  %v1886_v56 = vrot.slane %v601_v13, 2  ;;  %815 = vrot.lane.b32.xlu0 %v601_v13, %s5341_s28  ;;  %1029 = vrot.lane.b32.xlu1 %v601_v13, %s5344_s5  ;;  %v1249_v21 = vsel %vm1229_vm5, %v1246_v62, %v1248_v4 }
 0x198   : > { %8855 = vst [vmem:[#allocation19_spill] sm:$0xff] %v5776_v19  ;;  %1031 = vrot.lane.b32.xlu2 %v5697_v2, %s5344_s5  ;;  %v1326_v44 = vrot.slane %v1249_v21, 4  ;;  %v1329_v24 = vsel %vm258_vm0, %v1249_v21, %v1328_v55  ;;  %v1245_v17 = vrot.slane %v601_v13, 1  ;;  %v619_v31 = vsel %vm258_vm0, %v601_v13, %v618_v51 }
 0x199   : > { %v5786_v26 = vsel %vm1870_vm4, %v1886_v56, %v1887_v58  ;;  %v1337_v27 = vperm.slane %v1329_v24, %v5491_v8  ;;  %v617_v32 = vsel %vm258_vm0, %v616_v20, %v5651_v0  ;;  %v1265_v2 = vperm.slane %v1259_v14, %v5491_v8 }
 0x19a   : > { %8856 = vst [vmem:[#allocation20_spill] sm:$0xff] %v5786_v26  ;;  %v1327_v36 = vsel %vm258_vm0, %v1326_v44, %v5663_v37  ;;  %v1247_v39 = vsel %vm1229_vm5, %v1245_v17, %v1246_v62  ;;  %v627_v40 = vperm.slane %v619_v31, %v5491_v8  ;;  %v623_v41 = vperm.slane %v617_v32, %v5491_v8 }
 0x19b   : > { %v5799_v43 = vsel %vm258_vm0, %v1337_v27, %v1352_v30  ;;  %v1270_v46 = vrot.slane %v1247_v39, 4  ;;  %v1273_v47 = vsel %vm258_vm0, %v1247_v39, %v1272_v57  ;;  %v1333_v48 = vperm.slane %v1327_v36, %v5491_v8 }
 0x19c   : > { %v1340_v0 = vrot.slane %v1321_v25, 4  ;;  %v1281_v49 = vperm.slane %v1273_v47, %v5491_v8  ;;  %v643_v50 = vsel %vm258_vm0, %v627_v40, %v642_v15  ;;  %v631_v37 = vsel %vm258_vm0, %v623_v41, %v630_v23 }
 0x19d   : > { %v640_v51 = vrot.slane %v627_v40, 4  ;;  %v1271_v52 = vsel %vm258_vm0, %v1270_v46, %v5679_v45  ;;  %v1284_v55 = vrot.slane %v1265_v2, 4  ;;  %v1350_v1 = vrot.slane %v1337_v27, 4 }
 0x19e   : > { %v5809_v58 = vsel %vm258_vm0, %v1333_v48, %v1340_v0  ;;  %v1297_v59 = vsel %vm258_vm0, %v1281_v49, %v1296_v16  ;;  %v1277_v60 = vperm.slane %v1271_v52, %v5491_v8  ;;  %v1294_v9 = vrot.slane %v1281_v49, 4 }
 0x19f   : > { %1458 = vrot.lane.b32.xlu0 %v5742_v42, %s5341_s28  ;;  %1666 = vrot.lane.b32.xlu1 %v5742_v42, %s5344_s5  ;;  %v641_v57 = vsel %vm258_vm0, %v640_v51, %v615_v54  ;;  %v5826_v4 = vsel %vm258_vm0, %v1350_v1, %v1325_v61  ;;  %v628_v42 = vrot.slane %v623_v41, 4  ;;  %v1338_v5 = vrot.slane %v1333_v48, 4 }
 0x1a0   : > { %1456 = vrot.lane.b32.xlu2 %v5734_v33, %s5341_s28  ;;  %v1285_v45 = vsel %vm258_vm0, %v1277_v60, %v1284_v55  ;;  %v5823_v62 = vsel %vm258_vm0, %v1294_v9, %v5757_v53  ;;  %v1282_v7 = vrot.slane %v1277_v60, 4  ;;  %v707_v61 = vperm.slane %v5721_v22, %v5498_v18  ;;  %v5852_v22 = vpop.permute.xlu2 %1019 }
 0x1a1   : > { %v629_v54 = vsel %vm258_vm0, %v628_v42, %v611_v63  ;;  %v5833_v6 = vsel %vm258_vm0, %v1338_v5, %v1321_v25  ;;  %v647_v63 = vperm.slane %v641_v57, %v5498_v18  ;;  %v639_v13 = vperm.slane %v631_v37, %v5498_v18 }
 0x1a2   : > { %v5837_v53 = vsel %vm258_vm0, %v1282_v7, %v1265_v2  ;;  %v695_v16 = vperm.slane %v5731_v29, %v5498_v18  ;;  %v703_v56 = vperm.slane %v5728_v28, %v5498_v18  ;;  %v714_v23 = vrot.slane %v707_v61, 4 }
 0x1a3   : > { %v654_v24 = vrot.slane %v639_v13, 4  ;;  %v1305_v25 = vperm.slane %v1297_v59, %v5498_v18  ;;  %v1361_v2 = vperm.slane %v5799_v43, %v5498_v18  ;;  %v656_v46 = vrot.slane %v647_v63, 4 }
 0x1a4   : > { %v715_v28 = vsel %vm258_vm0, 0.0, %v714_v23  ;;  %v712_v30 = vrot.slane %v703_v56, 4  ;;  %v710_v31 = vrot.slane %v695_v16, 4  ;;  %v1293_v48 = vperm.slane %v1285_v45, %v5498_v18 }
 0x1a5   : > { %v655_v29 = vsel %vm258_vm0, 0.0, %v654_v24  ;;  %v1349_v43 = vperm.slane %v5809_v58, %v5498_v18  ;;  %v5895_v0 = vperm.slane %v629_v54, %v5498_v18  ;;  %v657_v49 = vsel %vm258_vm0, 0.0, %v656_v46 }
 0x1a6   : > { %v713_v36 = vsel %vm258_vm0, 0.0, %v712_v30  ;;  %v1357_v52 = vperm.slane %v5826_v4, %v5498_v18  ;;  %v1301_v55 = vperm.slane %v5823_v62, %v5498_v18  ;;  %v1368_v9 = vrot.slane %v1361_v2, 4 }
 0x1a7   : > { %1664 = vrot.lane.b32.xlu0 %v5734_v33, %s5344_s5  ;;  %1460 = vrot.lane.b32.xlu1 %v1247_v39, %s5341_s28  ;;  %v651_v33 = vperm.slane %v643_v50, %v5498_v18  ;;  %v652_v51 = vrot.slane %v5895_v0, 4  ;;  %v1308_v45 = vrot.slane %v1293_v48, 4  ;;  %v1312_v1 = vrot.slane %v1305_v25, 4 }
 0x1a8   : > { %1462 = vrot.lane.b32.xlu2 %v1249_v21, %s5341_s28  ;;  %v1369_v4 = vsel %vm258_vm0, 0.0, %v1368_v9  ;;  %v5925_v54 = vperm.slane %v5737_v34, %v5498_v18  ;;  %v5939_v34 = vperm.slane %v5833_v6, %v5498_v18 }
 0x1a9   : > { %v5850_v14 = vpop.permute.xlu1 %805  ;;  %v658_v15 = vrot.slane %v651_v33, 4  ;;  %v653_v58 = vsel %vm258_vm0, 0.0, %v652_v51  ;;  %v1309_v62 = vsel %vm258_vm0, 0.0, %v1308_v45  ;;  %v1313_v42 = vsel %vm258_vm0, 0.0, %v1312_v1 }
 0x1ab   : > { %v659_v20 = vsel %vm258_vm0, 0.0, %v658_v15 }
 0x1af   : > { %1670 = vrot.lane.b32.xlu0 %v1249_v21, %s5344_s5  ;;  %765 = vrot.lane.b32.xlu1 %v707_v61, %s5335_s18 }
 0x1b0   : > { %1668 = vrot.lane.b32.xlu2 %v1247_v39, %s5344_s5  ;;  %v711_v39 = vsel %vm258_vm0, 0.0, %v710_v31 }
 0x1b7   : > { %737 = vrot.lane.b32.xlu0 %v651_v33, %s5335_s18  ;;  %729 = vrot.lane.b32.xlu1 %v647_v63, %s5336_s25  ;;  %v1310_v33 = vrot.slane %v1301_v55, 4  ;;  %v1366_v63 = vrot.slane %v1357_v52, 4 }
 0x1b8   : > { %721 = vrot.lane.b32.xlu2 %v639_v13, %s5337_s26  ;;  %v708_v13 = vrot.slane %v5925_v54, 4 }
 0x1b9   : > { %v1311_v15 = vsel %vm258_vm0, 0.0, %v1310_v33 }
 0x1bf   : > { %741 = vrot.lane.b32.xlu1 %v659_v20, %s5333_s22  ;;  %749 = vrot.lane.b32.xlu0 %v695_v16, %s5337_s26  ;;  %v1367_v16 = vsel %vm258_vm0, 0.0, %v1366_v63  ;;  %v709_v20 = vsel %vm258_vm0, 0.0, %v708_v13 }
 0x1c0   : > { %757 = vrot.lane.b32.xlu2 %v703_v56, %s5336_s25  ;;  %v1099_v56 = vrot.slane %v5852_v22, 4 }
 0x1c1   : > { %v5862_v21 = vpop.permute.xlu1 %1017  ;;  %v5864_v44 = vpop.permute.xlu2 %807 }
 0x1c2   : > { %v5868_v27 = vpop.permute.xlu0 %803 }
 0x1c7   : > { %1391 = vrot.lane.b32.xlu1 %v1305_v25, %s5335_s18  ;;  %725 = vrot.lane.b32.xlu0 %v655_v29, %s5334_s24 }
 0x1c8   : > { %769 = vrot.lane.b32.xlu2 %v715_v28, %s5333_s22  ;;  %v1362_v28 = vrot.slane %v5939_v34, 4 }
 0x1c9   : > { %v5874_v17 = vpop.permute.xlu2 %1450  ;;  %v5876_v32 = vpop.permute.xlu1 %1023 }
 0x1ca   : > { %v5885_v40 = vpop.permute.xlu0 %809  ;;  %v1111_v6 = vrot.slane %v5876_v32, 4 }
 0x1cb   : > { %v897_v45 = vrot.slane %v5885_v40, 4 }
 0x1cf   : > { %761 = vrot.lane.b32.xlu0 %v713_v36, %s5332_s23  ;;  %753 = vrot.lane.b32.xlu1 %v711_v39, %s5334_s24  ;;  %v5955_v39 = vperm.slane %v5837_v53, %v5498_v18 }
 0x1d0   : > { %1419 = vrot.lane.b32.xlu2 %v1361_v2, %s5335_s18  ;;  %v1364_v2 = vrot.slane %v1349_v43, 4 }
 0x1d1   : > { %v5887_v41 = vpop.permute.xlu2 %1656  ;;  %v5889_v47 = vpop.permute.xlu1 %1448 }
 0x1d2   : > { %v1365_v51 = vsel %vm258_vm0, 0.0, %v1364_v2  ;;  %v1043_v2 = vrot.slane %v5862_v21, 4 }
 0x1d7   : > { %1375 = vrot.lane.b32.xlu0 %v1293_v48, %s5337_s26  ;;  %1403 = vrot.lane.b32.xlu1 %v1349_v43, %s5337_s26 }
 0x1d8   : > { %733 = vrot.lane.b32.xlu2 %v657_v49, %s5332_s23  ;;  %v1363_v49 = vsel %vm258_vm0, 0.0, %v1362_v28 }
 0x1d9   : > { %v5901_v50 = vpop.permute.xlu0 %1021 }
 0x1da   : > { %v5903_v37 = vpop.permute.xlu2 %1662  ;;  %v5911_v57 = vpop.permute.xlu1 %1454 }
 0x1df   : > { %1411 = vrot.lane.b32.xlu0 %v1357_v52, %s5336_s25  ;;  %717 = vrot.lane.b32.xlu1 %v653_v58, %s5338_s27  ;;  %v885_v52 = vrot.slane %v5850_v14, 4 }
 0x1e0   : > { %1383 = vrot.lane.b32.xlu2 %v1301_v55, %s5336_s25 }
 0x1e1   : > { %v5916_v59 = vpop.permute.xlu0 %1658 }
 0x1e2   : > { %v814_v60 = vpop.permute.xlu2 %813  ;;  %v5928_v5 = vpop.permute.xlu1 %1660 }
 0x1e3   : > { %v883_v43 = vrot.slane %v814_v60, 4  ;;  %v886_v1 = vsel %vm258_vm0, %v814_v60, %v885_v52 }
 0x1e5   : > { %v884_v33 = vsel %vm258_vm0, %v883_v43, %v5850_v14 }
 0x1e7   : > { %1423 = vrot.lane.b32.xlu0 %v1369_v4, %s5333_s22  ;;  %1379 = vrot.lane.b32.xlu1 %v1309_v62, %s5334_s24 }
 0x1e8   : > { %1395 = vrot.lane.b32.xlu2 %v1313_v42, %s5333_s22 }
 0x1e9   : > { %v5930_v7 = vpop.permute.xlu0 %1452 }
 0x1ea   : > { %v5932_v61 = vpop.permute.xlu2 %1025 }
 0x1ef   : > { %1387 = vrot.lane.b32.xlu0 %v1311_v15, %s5332_s23  ;;  %1415 = vrot.lane.b32.xlu1 %v1367_v16, %s5332_s23  ;;  %v5986_v16 = vperm.slane %v886_v1, %v5491_v8 }
 0x1f0   : > { %745 = vrot.lane.b32.xlu2 %v709_v20, %s5338_s27 }
 0x1f1   : > { %v812_v24 = vpop.permute.xlu1 %811  ;;  %v1028_v23 = vpop.permute.xlu0 %1027 }
 0x1f2   : > { %v1100_v25 = vsel %vm258_vm0, %v1028_v23, %v1099_v56  ;;  %v1032_v29 = vpop.permute.xlu2 %1031  ;;  %v1097_v55 = vrot.slane %v1028_v23, 4  ;;  %v890_v23 = vperm.slane %v884_v33, %v5491_v8 }
 0x1f3   : > { %v5950_v30 = vperm.slane %v1100_v25, %v5491_v8  ;;  %v1109_v31 = vrot.slane %v1032_v29, 4  ;;  %v1112_v36 = vsel %vm258_vm0, %v1032_v29, %v1111_v6  ;;  %v921_v29 = vrot.slane %v5986_v16, 4 }
 0x1f4   : > { %v5965_v58 = vperm.slane %v1112_v36, %v5491_v8  ;;  %v1098_v63 = vsel %vm258_vm0, %v1097_v55, %v5852_v22  ;;  %v829_v36 = vrot.slane %v5868_v27, 4  ;;  %v841_v55 = vrot.slane %v5864_v44, 4 }
 0x1f5   : > { %v1135_v46 = vrot.slane %v5950_v30, 4  ;;  %v1110_v48 = vsel %vm258_vm0, %v1109_v31, %v5876_v32  ;;  %v1306_v32 = vrot.slane %v5955_v39, 4  ;;  %v5996_v22 = vperm.slane %v1098_v63, %v5491_v8 }
 0x1f6   : > { %v5969_v53 = vperm.slane %v1110_v48, %v5491_v8 }
 0x1f7   : > { %1399 = vrot.lane.b32.xlu0 %v1363_v49, %s5338_s27  ;;  %v1136_v42 = vsel %vm258_vm0, %v5965_v58, %v1135_v46  ;;  %v1307_v14 = vsel %vm258_vm0, 0.0, %v1306_v32  ;;  %v827_v46 = vrot.slane %v812_v24, 4  ;;  %v1044_v49 = vsel %vm258_vm0, %v5932_v61, %v1043_v2 }
 0x1f8   : > { %1407 = vrot.lane.b32.xlu2 %v1365_v51, %s5334_s24  ;;  %v1121_v60 = vrot.slane %v5969_v53, 4  ;;  %v5991_v56 = vperm.slane %v1136_v42, %v5498_v18  ;;  %v830_v51 = vsel %vm258_vm0, %v812_v24, %v829_v36  ;;  %v1052_v32 = vperm.slane %v1044_v49, %v5491_v8 }
 0x1f9   : > { %v818_v9 = vpop.permute.xlu1 %817  ;;  %v828_v43 = vsel %vm258_vm0, %v827_v46, %v5868_v27 }
 0x1fa   : > { %v895_v4 = vrot.slane %v818_v9, 4  ;;  %v5974_v62 = vpop.permute.xlu2 %1456  ;;  %v898_v15 = vsel %vm258_vm0, %v818_v9, %v897_v45  ;;  %v6008_v6 = vsel %vm258_vm0, %v1121_v60, %v5996_v22  ;;  %v1055_v9 = vrot.slane %v5901_v50, 4 }
 0x1fb   : > { %v838_v45 = vperm.slane %v830_v51, %v5491_v8  ;;  %v834_v24 = vperm.slane %v828_v43, %v5491_v8  ;;  %v1079_v60 = vrot.slane %v1052_v32, 4  ;;  %v1472_v38 = vrot.slane %v5974_v62, 4 }
 0x1fc   : > { %v896_v13 = vsel %vm258_vm0, %v895_v4, %v5885_v40  ;;  %v906_v40 = vperm.slane %v898_v15, %v5491_v8 }
 0x1fd   : > { %v902_v20 = vperm.slane %v896_v13, %v5491_v8  ;;  %v853_v46 = vrot.slane %v834_v24, 4 }
 0x1fe   : > { %v922_v48 = vsel %vm258_vm0, %v906_v40, %v921_v29 }
 0x1ff   : > { %v907_v25 = vrot.slane %v902_v20, 4  ;;  %1202 = vrot.lane.b32.xlu0 %v5991_v56, %s5335_s18  ;;  %v6019_v52 = vperm.slane %v922_v48, %v5498_v18  ;;  %v1041_v48 = vrot.slane %v5932_v61, 4  ;;  %v919_v61 = vrot.slane %v906_v40, 4 }
 0x200   : > { %1371 = vrot.lane.b32.xlu2 %v1307_v14, %s5338_s27  ;;  %v865_v14 = vrot.slane %v838_v45, 4 }
 0x201   : > { %v6004_v28 = vsel %vm258_vm0, %v907_v25, %v890_v23 }
 0x202   : > { %v6010_v31 = vpop.permute.xlu2 %1462 }
 0x208   : > { %988 = vrot.lane.b32.xlu2 %v6019_v52, %s5335_s18 }
 0x209   : > { %v816_v1 = vpop.permute.xlu0 %815  ;;  %v1030_v4 = vpop.permute.xlu1 %1029 }
 0x20a   : > { %v839_v42 = vrot.slane %v816_v1, 4  ;;  %v842_v33 = vsel %vm258_vm0, %v816_v1, %v841_v55  ;;  %v1056_v27 = vsel %vm258_vm0, %v1030_v4, %v1055_v9  ;;  %v6032_v63 = vpop.permute.xlu2 %1668  ;;  %v1053_v9 = vrot.slane %v1030_v4, 4 }
 0x20b   : > { %v850_v13 = vperm.slane %v842_v33, %v5491_v8  ;;  %v1064_v15 = vperm.slane %v1056_v27, %v5491_v8  ;;  %v909_v27 = vrot.slane %v890_v23, 4  ;;  %v1042_v4 = vsel %vm258_vm0, %v1041_v48, %v5862_v21 }
 0x20c   : > { %v840_v25 = vsel %vm258_vm0, %v839_v42, %v5864_v44 }
 0x20d   : > { %v846_v29 = vperm.slane %v840_v25, %v5491_v8  ;;  %v866_v2 = vsel %vm258_vm0, %v850_v13, %v865_v14  ;;  %v1080_v36 = vsel %vm258_vm0, %v1064_v15, %v1079_v60  ;;  %v863_v55 = vrot.slane %v850_v13, 4 }
 0x20e   : > { %v6043_v49 = vperm.slane %v866_v2, %v5498_v18  ;;  %v6046_v51 = vperm.slane %v1080_v36, %v5498_v18  ;;  %v910_v13 = vsel %vm258_vm0, %v902_v20, %v909_v27  ;;  %v1054_v14 = vsel %vm258_vm0, %v1053_v9, %v5901_v50 }
 0x20f   : > { %v854_v43 = vsel %vm258_vm0, %v846_v29, %v853_v46  ;;  %v851_v60 = vrot.slane %v846_v29, 4  ;;  %v864_v40 = vsel %vm258_vm0, %v863_v55, %v838_v45  ;;  %v1048_v25 = vperm.slane %v1042_v4, %v5491_v8 }
 0x210   : > { %960 = vrot.lane.b32.xlu1 %v6043_v49, %s5335_s18  ;;  %v6056_v42 = vperm.slane %v854_v43, %v5498_v18  ;;  %1174 = vrot.lane.b32.xlu2 %v6046_v51, %s5335_s18  ;;  %v920_v2 = vsel %vm258_vm0, %v919_v61, %v5986_v16  ;;  %v6074_v23 = vperm.slane %v910_v13, %v5498_v18  ;;  %v1123_v16 = vrot.slane %v5996_v22, 4 }
 0x211   : > { %v6051_v44 = vpop.permute.xlu0 %1458  ;;  %v6053_v1 = vpop.permute.xlu1 %1666  ;;  %v1060_v21 = vperm.slane %v1054_v14, %v5491_v8  ;;  %v6078_v36 = vperm.slane %v864_v40, %v5498_v18  ;;  %v6087_v45 = vperm.slane %v920_v2, %v5498_v18  ;;  %v6091_v29 = vsel %vm258_vm0, %v851_v60, %v834_v24 }
 0x212   : > { %v6060_v33 = vpop.permute.xlu2 %721  ;;  %944 = vrot.lane.b32.xlu0 %v6056_v42, %s5337_s26  ;;  %v1077_v46 = vrot.slane %v1064_v15, 4  ;;  %v1067_v43 = vrot.slane %v1048_v25, 4  ;;  %v1124_v9 = vsel %vm258_vm0, %v5969_v53, %v1123_v16  ;;  %v1133_v15 = vrot.slane %v5965_v58, 4 }
 0x213   : > { %v1065_v61 = vrot.slane %v1060_v21, 4  ;;  %v6108_v27 = vperm.slane %v1124_v9, %v5498_v18  ;;  %v1486_v60 = vrot.slane %v5930_v7, 4  ;;  %v1530_v9 = vrot.slane %v5874_v17, 4 }
 0x214   : > { %v1068_v55 = vsel %vm258_vm0, %v1060_v21, %v1067_v43  ;;  %v1078_v22 = vsel %vm258_vm0, %v1077_v46, %v1052_v32  ;;  %v1474_v32 = vrot.slane %v5889_v47, 4  ;;  %v1134_v40 = vsel %vm258_vm0, %v1133_v15, %v5950_v30 }
 0x215   : > { %v6104_v24 = vperm.slane %v1068_v55, %v5498_v18  ;;  %v6117_v53 = vperm.slane %v1078_v22, %v5498_v18  ;;  %v6132_v2 = vsel %vm258_vm0, %v1065_v61, %v1048_v25  ;;  %v881_v21 = vrot.slane %v6043_v49, 4 }
 0x216   : > { %v1475_v14 = vsel %vm258_vm0, %v5974_v62, %v1474_v32  ;;  %v937_v46 = vrot.slane %v6019_v52, 4  ;;  %v6142_v55 = vperm.slane %v1134_v40, %v5498_v18  ;;  %v1531_v32 = vsel %vm258_vm0, %v6051_v44, %v1530_v9 }
 0x217   : > { %v6139_v43 = vperm.slane %v1475_v14, %v5491_v8  ;;  %v882_v49 = vsel %vm258_vm0, 0.0, %v881_v21  ;;  %v6167_v40 = vperm.slane %v1531_v32, %v5491_v8  ;;  %v1095_v21 = vrot.slane %v6046_v51, 4 }
 0x218   : > { %972 = vrot.lane.b32.xlu1 %v6074_v23, %s5337_s26  ;;  %952 = vrot.lane.b32.xlu2 %v6078_v36, %s5336_s25  ;;  %v938_v15 = vsel %vm258_vm0, 0.0, %v937_v46  ;;  %v1682_v9 = vrot.slane %v5887_v41, 4  ;;  %v933_v10 = vrot.slane %v6074_v23, 4  ;;  %v1473_v62 = vsel %vm258_vm0, %v1472_v38, %v5889_v47 }
 0x219   : > { %v6082_v20 = vpop.permute.xlu0 %1664  ;;  %v6084_v50 = vpop.permute.xlu1 %1460  ;;  %v1510_v61 = vrot.slane %v6139_v43, 4  ;;  %v1566_v51 = vrot.slane %v6167_v40, 4  ;;  %v879_v47 = vrot.slane %v6078_v36, 4 }
 0x21a   : > { %v6095_v48 = vpop.permute.xlu2 %757  ;;  %980 = vrot.lane.b32.xlu0 %v6087_v45, %s5336_s25  ;;  %v1487_v16 = vsel %vm258_vm0, %v6084_v50, %v1486_v60  ;;  %v1151_v60 = vrot.slane %v5991_v56, 4  ;;  %v1484_v12 = vrot.slane %v6084_v50, 4  ;;  %v1540_v50 = vrot.slane %v6010_v31, 4 }
 0x21b   : > { %v6146_v30 = vperm.slane %v1487_v16, %v5491_v8  ;;  %v1542_v16 = vrot.slane %v5911_v57, 4  ;;  %v1680_v38 = vrot.slane %v6082_v20, 4 }
 0x21c   : > { %v1152_v46 = vsel %vm258_vm0, 0.0, %v1151_v60  ;;  %v1096_v60 = vsel %vm258_vm0, 0.0, %v1095_v21  ;;  %v1694_v21 = vrot.slane %v5928_v5, 4 }
 0x21d   : > { %v1511_v14 = vsel %vm258_vm0, %v6146_v30, %v1510_v61  ;;  %v1543_v56 = vsel %vm258_vm0, %v6010_v31, %v1542_v16  ;;  %v1541_v31 = vsel %vm258_vm0, %v1540_v50, %v5911_v57  ;;  %v1681_v57 = vsel %vm258_vm0, %v1680_v38, %v5887_v41 }
 0x21e   : > { %v6193_v16 = vperm.slane %v1543_v56, %v5491_v8  ;;  %v934_v56 = vsel %vm258_vm0, 0.0, %v933_v10  ;;  %v935_v10 = vrot.slane %v6087_v45, 4  ;;  %v1692_v50 = vrot.slane %v6032_v63, 4 }
 0x21f   : > { %v1147_v38 = vrot.slane %v6108_v27, 4 }
 0x220   : > { %1158 = vrot.lane.b32.xlu1 %v6104_v24, %s5337_s26  ;;  %1186 = vrot.lane.b32.xlu2 %v6108_v27, %s5337_s26  ;;  %v1567_v35 = vsel %vm258_vm0, %v6193_v16, %v1566_v51 }
 0x221   : > { %v6112_v4 = vpop.permute.xlu0 %1670  ;;  %v6114_v13 = vpop.permute.xlu1 %765 }
 0x222   : > { %v6122_v58 = vpop.permute.xlu2 %769  ;;  %1166 = vrot.lane.b32.xlu0 %v6117_v53, %s5336_s25 }
 0x228   : > { %1194 = vrot.lane.b32.xlu1 %v6142_v55, %s5336_s25  ;;  %964 = vrot.lane.b32.xlu2 %v882_v49, %s5333_s22  ;;  %v6173_v49 = vperm.slane %v1511_v14, %v5498_v18  ;;  %v1683_v14 = vsel %vm258_vm0, %v6082_v20, %v1682_v9  ;;  %v1695_v9 = vsel %vm258_vm0, %v6032_v63, %v1694_v21  ;;  %v1528_v21 = vrot.slane %v6051_v44, 4 }
 0x229   : > { %v6151_v25 = vpop.permute.xlu0 %737  ;;  %v6153_v22 = vpop.permute.xlu1 %729  ;;  %v6198_v19 = vperm.slane %v1683_v14, %v5491_v8 }
 0x22a   : > { %v6156_v52 = vpop.permute.xlu2 %1419  ;;  %992 = vrot.lane.b32.xlu0 %v938_v15, %s5333_s22  ;;  %v1529_v44 = vsel %vm258_vm0, %v1528_v21, %v5874_v17  ;;  %v1485_v17 = vsel %vm258_vm0, %v1484_v12, %v5930_v7  ;;  %v6255_v21 = vperm.slane %v1473_v62, %v5491_v8 }
 0x22b   : > { %v1718_v51 = vrot.slane %v6198_v19, 4 }
 0x230   : > { %1206 = vrot.lane.b32.xlu1 %v1152_v46, %s5333_s22  ;;  %1605 = vrot.lane.b32.xlu2 %v6173_v49, %s5335_s18  ;;  %v877_v46 = vrot.slane %v6056_v42, 4 }
 0x231   : > { %v6179_v15 = vpop.permute.xlu1 %741  ;;  %v6181_v61 = vpop.permute.xlu0 %749 }
 0x232   : > { %v6186_v32 = vpop.permute.xlu2 %733  ;;  %1178 = vrot.lane.b32.xlu0 %v1096_v60, %s5333_s22  ;;  %v878_v3 = vsel %vm258_vm0, 0.0, %v877_v46  ;;  %v6213_v60 = vperm.slane %v1567_v35, %v5498_v18  ;;  %v1091_v46 = vrot.slane %v6104_v24, 4 }
 0x238   : > { %948 = vrot.lane.b32.xlu1 %v878_v3, %s5334_s24  ;;  %976 = vrot.lane.b32.xlu2 %v934_v56, %s5334_s24  ;;  %v6222_v3 = vperm.slane %v1695_v9, %v5491_v8  ;;  %v936_v56 = vsel %vm258_vm0, 0.0, %v935_v10  ;;  %v1092_v9 = vsel %vm258_vm0, 0.0, %v1091_v46  ;;  %v6249_v10 = vperm.slane %v1529_v44, %v5491_v8 }
 0x239   : > { %v6208_v42 = vpop.permute.xlu1 %1391  ;;  %v6210_v23 = vpop.permute.xlu0 %725  ;;  %v1149_v46 = vrot.slane %v6142_v55, 4  ;;  %v6278_v44 = vperm.slane %v1541_v31, %v5491_v8  ;;  %v1693_v31 = vsel %vm258_vm0, %v1692_v50, %v5928_v5  ;;  %v1508_v5 = vrot.slane %v6146_v30, 4 }
 0x23a   : > { %v6217_v14 = vpop.permute.xlu2 %1383  ;;  %1633 = vrot.lane.b32.xlu0 %v6213_v60, %s5335_s18  ;;  %v1719_v35 = vsel %vm258_vm0, %v6222_v3, %v1718_v51  ;;  %v1093_v51 = vrot.slane %v6117_v53, 4  ;;  %v6262_v53 = vperm.slane %v1485_v17, %v5491_v8  ;;  %v1554_v36 = vrot.slane %v6249_v10, 4 }
 0x23b   : > { %v6235_v45 = vperm.slane %v1719_v35, %v5498_v18  ;;  %v1150_v12 = vsel %vm258_vm0, 0.0, %v1149_v46  ;;  %v6289_v17 = vperm.slane %v1681_v57, %v5491_v8  ;;  %v1148_v57 = vsel %vm258_vm0, 0.0, %v1147_v38 }
 0x23c   : > { %v1094_v35 = vsel %vm258_vm0, 0.0, %v1093_v51  ;;  %v1526_v38 = vrot.slane %v6173_v49, 4 }
 0x23d   : > { %v1706_v27 = vrot.slane %v6289_v17, 4 }
 0x23e   : > { %v1527_v49 = vsel %vm258_vm0, 0.0, %v1526_v38 }
 0x240   : > { %984 = vrot.lane.b32.xlu1 %v936_v56, %s5332_s23  ;;  %1162 = vrot.lane.b32.xlu2 %v1092_v9, %s5334_s24  ;;  %v880_v56 = vsel %vm258_vm0, 0.0, %v879_v47  ;;  %v1498_v9 = vrot.slane %v6255_v21, 4 }
 0x241   : > { %v762_v26 = vpop.permute.xlu0 %761  ;;  %v754_v11 = vpop.permute.xlu1 %753 }
 0x242   : > { %v6240_v24 = vpop.permute.xlu2 %1395  ;;  %1813 = vrot.lane.b32.xlu0 %v6235_v45, %s5335_s18  ;;  %v1499_v51 = vsel %vm258_vm0, %v6262_v53, %v1498_v9 }
 0x243   : > { %v6299_v47 = vperm.slane %v1499_v51, %v5498_v18 }
 0x248   : > { %1170 = vrot.lane.b32.xlu1 %v1094_v35, %s5332_s23  ;;  %1198 = vrot.lane.b32.xlu2 %v1150_v12, %s5332_s23 }
 0x249   : > { %v6267_v7 = vpop.permute.xlu0 %1375  ;;  %v6269_v55 = vpop.permute.xlu1 %1403 }
 0x24a   : > { %v746_v20 = vpop.permute.xlu2 %745  ;;  %956 = vrot.lane.b32.xlu0 %v880_v56, %s5332_s23 }
 0x24b   : > { %v786_v62 = vsel %vm772_vm6, %v5925_v54, %v746_v20  ;;  %v1555_v54 = vsel %vm258_vm0, %v6278_v44, %v1554_v36  ;;  %v1564_v36 = vrot.slane %v6193_v16, 4  ;;  %v6323_v20 = vperm.slane %v1693_v31, %v5491_v8 }
 0x24c   : > { %v787_v41 = vsel %vm774_vm7, %v786_v62, %v6181_v61  ;;  %v6306_v35 = vperm.slane %v1555_v54, %v5498_v18 }
 0x24d   : > { %v788_v46 = vsel %vm776_vm8, %v787_v41, %v754_v11  ;;  %v1565_v16 = vsel %vm258_vm0, %v1564_v36, %v6167_v40  ;;  %v1707_v9 = vsel %vm258_vm0, %v6323_v20, %v1706_v27  ;;  %v1582_v27 = vrot.slane %v6213_v60, 4 }
 0x24e   : > { %v789_v63 = vsel %vm778_vm9, %v788_v46, %v6095_v48 }
 0x24f   : > { %v790_v61 = vsel %vm780_vm10, %v789_v63, %v762_v26 }
 0x250   : > { %v791_v11 = vsel %vm782_vm11, %v790_v61, %v6114_v13  ;;  %1589 = vrot.lane.b32.xlu1 %v6299_v47, %s5337_s26  ;;  %1617 = vrot.lane.b32.xlu2 %v6306_v35, %s5337_s26 }
 0x251   : > { %v792_v12 = vsel %vm784_vm12, %v791_v11, %v6122_v58  ;;  %v6312_v48 = vpop.permute.xlu0 %1411  ;;  %v718_v26 = vpop.permute.xlu1 %717 }
 0x252   : > { %794 = vst [vmem:[#allocation2] sm:$0xf] %v792_v12  ;;  %v773_v13 = vsel %vm772_vm6, %v5895_v0, %v718_v26  ;;  %v1408_v58 = vpop.permute.xlu2 %1407  ;;  %1190 = vrot.lane.b32.xlu0 %v1148_v57, %s5334_s24  ;;  %v6388_v12 = vperm.slane %v6004_v28, %v5498_v18  ;;  %v1748_v57 = vrot.slane %v6112_v4, 4  ;;  %v1583_v28 = vsel %vm258_vm0, 0.0, %v1582_v27 }
 0x253   : > { %v775_v56 = vsel %vm774_vm7, %v773_v13, %v6060_v33  ;;  %v1509_v33 = vsel %vm258_vm0, %v1508_v5, %v6139_v43  ;;  %v6357_v43 = vperm.slane %v6091_v29, %v5498_v18  ;;  %v1522_v5 = vrot.slane %v6299_v47, 4 }
 0x254   : > { %v777_v30 = vsel %vm776_vm8, %v775_v56, %v6210_v23  ;;  %v6343_v23 = vperm.slane %v1565_v16, %v5498_v18  ;;  %v6353_v41 = vperm.slane %v1509_v33, %v5498_v18  ;;  %v931_v13 = vrot.slane %v6388_v12, 4 }
 0x255   : > { %v779_v0 = vsel %vm778_vm9, %v777_v30, %v6153_v22  ;;  %v6348_v22 = vperm.slane %v1707_v9, %v5498_v18  ;;  %v875_v63 = vrot.slane %v6357_v43, 4  ;;  %v6408_v47 = vperm.slane %v6132_v2, %v5498_v18 }
 0x256   : > { %v781_v62 = vsel %vm780_vm10, %v779_v0, %v6186_v32  ;;  %v1749_v30 = vsel %vm258_vm0, %v1748_v57, %v5903_v37  ;;  %v1524_v27 = vrot.slane %v6353_v41, 4 }
 0x257   : > { %v783_v50 = vsel %vm782_vm11, %v781_v62, %v6151_v25  ;;  %v1716_v25 = vrot.slane %v6222_v3, 4  ;;  %v1736_v62 = vrot.slane %v6053_v1, 4 }
 0x258   : > { %v785_v40 = vsel %vm784_vm12, %v783_v50, %v6179_v15  ;;  %1625 = vrot.lane.b32.xlu1 %v6343_v23, %s5336_s25  ;;  %1797 = vrot.lane.b32.xlu2 %v6348_v22, %s5337_s26  ;;  %v1580_v50 = vrot.slane %v6343_v23, 4 }
 0x259   : > { %793 = vst [vmem:[#allocation2 + $0x30] sm:$0xf] %v785_v40  ;;  %v1424_v32 = vpop.permute.xlu0 %1423  ;;  %v1717_v54 = vsel %vm258_vm0, %v1716_v25, %v6198_v19  ;;  %v1380_v29 = vpop.permute.xlu1 %1379  ;;  %v6424_v40 = vperm.slane %v1749_v30, %v5491_v8  ;;  %v1089_v25 = vrot.slane %v6408_v47, 4  ;;  %v8858_v30 = vld [vmem:[#allocation20_spill] sm:$0xff] }
 0x25a   : > { %v1372_v15 = vpop.permute.xlu2 %1371  ;;  %1597 = vrot.lane.b32.xlu0 %v6353_v41, %s5336_s25  ;;  %v6374_v61 = vperm.slane %v1717_v54, %v5498_v18  ;;  %v1525_v41 = vsel %vm258_vm0, 0.0, %v1524_v27 }
 0x25b   : > { %v1426_v51 = vsel %vm772_vm6, %v5955_v39, %v1372_v15  ;;  %v876_v39 = vsel %vm258_vm0, 0.0, %v875_v63  ;;  %v1760_v54 = vrot.slane %v6424_v40, 4 }
 0x25c   : > { %v1427_v46 = vsel %vm774_vm7, %v1426_v51, %v6267_v7  ;;  %v6434_v51 = vperm.slane %v6008_v6, %v5498_v18  ;;  %v1732_v63 = vrot.slane %v6374_v61, 4 }
 0x25d   : > { %v1428_v3 = vsel %vm776_vm8, %v1427_v46, %v1380_v29  ;;  %v1581_v46 = vsel %vm258_vm0, 0.0, %v1580_v50 }
 0x25e   : > { %v1429_v7 = vsel %vm778_vm9, %v1428_v3, %v6217_v14  ;;  %v1145_v29 = vrot.slane %v6434_v51, 4  ;;  %v1578_v3 = vrot.slane %v6306_v35, 4 }
 0x260   : > { %1805 = vrot.lane.b32.xlu1 %v6374_v61, %s5336_s25  ;;  %940 = vrot.lane.b32.xlu2 %v876_v39, %s5338_s27  ;;  %v1750_v39 = vrot.slane %v5903_v37, 4  ;;  %v1579_v35 = vsel %vm258_vm0, 0.0, %v1578_v3  ;;  %v1738_v61 = vrot.slane %v5916_v59, 4  ;;  %v1552_v37 = vrot.slane %v6278_v44, 4 }
 0x261   : > { %v1388_v31 = vpop.permute.xlu0 %1387  ;;  %v1416_v33 = vpop.permute.xlu1 %1415 }
 0x262   : > { %v1430_v19 = vsel %vm780_vm10, %v1429_v7, %v1388_v31  ;;  %v6383_v11 = vpop.permute.xlu2 %988  ;;  %1609 = vrot.lane.b32.xlu0 %v1527_v49, %s5333_s22  ;;  %v1146_v31 = vsel %vm258_vm0, 0.0, %v1145_v29  ;;  %v1733_v7 = vsel %vm258_vm0, 0.0, %v1732_v63  ;;  %v1751_v49 = vsel %vm258_vm0, %v6112_v4, %v1750_v39 }
 0x263   : > { %v1431_v26 = vsel %vm782_vm11, %v1430_v19, %v6208_v42  ;;  %v1523_v42 = vsel %vm258_vm0, 0.0, %v1522_v5  ;;  %v1759_v4 = vperm.slane %v1751_v49, %v5491_v8 }
 0x264   : > { %v1432_v14 = vsel %vm784_vm12, %v1431_v26, %v6240_v24  ;;  %v932_v24 = vsel %vm258_vm0, 0.0, %v931_v13  ;;  %v1496_v26 = vrot.slane %v6262_v53, 4  ;;  %v1730_v53 = vrot.slane %v6348_v22, 4 }
 0x265   : > { %v1442_v36 = vrot.slane %v1432_v14, 4  ;;  %v1704_v22 = vrot.slane %v6323_v20, 4 }
 0x266   : > { %v1497_v44 = vsel %vm258_vm0, %v1496_v26, %v6255_v21 }
 0x267   : > { %1446 = vst [vmem:[#allocation2 + $0x18] sm:$0xf0] %v1442_v36  ;;  %v1739_v36 = vsel %vm258_vm0, %v6053_v1, %v1738_v61  ;;  %v6494_v21 = vperm.slane %v1497_v44, %v5498_v18  ;;  %v1705_v50 = vsel %vm258_vm0, %v1704_v22, %v6289_v17  ;;  %v8861_v22 = vld [vmem:[#allocation17_spill] sm:$0xff] }
 0x268   : > { %1637 = vrot.lane.b32.xlu1 %v1583_v28, %s5333_s22  ;;  %1593 = vrot.lane.b32.xlu2 %v1523_v42, %s5334_s24  ;;  %v1747_v57 = vperm.slane %v1739_v36, %v5491_v8  ;;  %v8857_v28 = vld [vmem:[#allocation18_spill] sm:$0xff] }
 0x269   : > { %v1400_v56 = vpop.permute.xlu0 %1399  ;;  %v1899_v42 = vrot.slane %v8857_v28, 4 }
 0x26a   : > { %v1433_v60 = vsel %vm772_vm6, %v5939_v34, %v1400_v56  ;;  %968 = vrot.lane.b32.xlu0 %v932_v24, %s5338_s27  ;;  %v6416_v9 = vpop.permute.xlu2 %1174  ;;  %v1734_v34 = vrot.slane %v6235_v45, 4  ;;  %v1772_v56 = vrot.slane %v1759_v4, 4 }
 0x26b   : > { %v1434_v16 = vsel %vm774_vm7, %v1433_v60, %v6269_v55 }
 0x26c   : > { %v1435_v0 = vsel %vm776_vm8, %v1434_v16, %v1408_v58  ;;  %v1735_v15 = vsel %vm258_vm0, 0.0, %v1734_v34  ;;  %v1911_v16 = vrot.slane %v8858_v30, 4 }
 0x26d   : > { %v1436_v2 = vsel %vm778_vm9, %v1435_v0, %v6312_v48  ;;  %v1737_v48 = vsel %vm258_vm0, %v1736_v62, %v5916_v59  ;;  %v1553_v59 = vsel %vm258_vm0, %v1552_v37, %v6249_v10  ;;  %v1731_v10 = vsel %vm258_vm0, 0.0, %v1730_v53 }
 0x26e   : > { %v1437_v55 = vsel %vm780_vm10, %v1436_v2, %v1416_v33  ;;  %v6445_v6 = vperm.slane %v1737_v48, %v5491_v8  ;;  %v6486_v1 = vperm.slane %v1553_v59, %v5498_v18  ;;  %v1774_v0 = vrot.slane %v1747_v57, 4 }
 0x26f   : > { %v1438_v58 = vsel %vm782_vm11, %v1437_v55, %v6156_v52  ;;  %v1090_v52 = vsel %vm258_vm0, 0.0, %v1089_v25  ;;  %v1773_v2 = vsel %vm258_vm0, %v1772_v56, %v1747_v57  ;;  %v8859_v55 = vld [vmem:[#allocation14_spill] sm:$0xff]  ;;  %v1520_v25 = vrot.slane %v6494_v21, 4 }
 0x270   : > { %v1439_v45 = vsel %vm784_vm12, %v1438_v58, %v1424_v32  ;;  %1817 = vrot.lane.b32.xlu1 %v1735_v15, %s5333_s22  ;;  %1629 = vrot.lane.b32.xlu2 %v1581_v46, %s5332_s23  ;;  %v1761_v38 = vsel %vm258_vm0, %v1760_v54, %v6445_v6  ;;  %v1576_v62 = vrot.slane %v6486_v1, 4  ;;  %v1900_v20 = vsel %vm258_vm0, %v1899_v42, %v8859_v55 }
 0x271   : > { %v1443_v23 = vrot.slane %v1439_v45, 4  ;;  %v6459_v19 = vperm.slane %v1761_v38, %v5498_v18  ;;  %v6475_v5 = vpop.permute.xlu0 %1202  ;;  %v1775_v58 = vsel %vm258_vm0, %v1759_v4, %v1774_v0  ;;  %v8860_v45 = vld [vmem:[#allocation16_spill] sm:$0xff]  ;;  %v6518_v46 = vperm.slane %v1705_v50, %v5498_v18 }
 0x272   : > { %1154 = vrot.lane.b32.xlu0 %v1090_v52, %s5338_s27  ;;  %v6447_v32 = vpop.permute.xlu2 %952  ;;  %v1912_v15 = vsel %vm258_vm0, %v1911_v16, %v8860_v45  ;;  %v1577_v48 = vsel %vm258_vm0, 0.0, %v1576_v62  ;;  %v1906_v54 = vperm.slane %v1900_v20, %v5491_v8  ;;  %v1783_v17 = vperm.slane %v1775_v58, %v5498_v18  ;;  %v8862_v62 = vld [vmem:[#allocation15_spill] sm:$0xff] }
 0x273   : > { %1447 = vst [vmem:[#allocation2 + $0x10] sm:$0xf0] %v1443_v23  ;;  %v1784_v13 = vrot.slane %v6459_v19, 4  ;;  %v1779_v23 = vperm.slane %v1773_v2, %v5498_v18  ;;  %v1521_v52 = vsel %vm258_vm0, 0.0, %v1520_v25  ;;  %v1918_v29 = vperm.slane %v1912_v15, %v5491_v8  ;;  %v8863_v25 = vld [vmem:[#allocation19_spill] sm:$0xff] }
 0x274   : > { %v1762_v63 = vrot.slane %v6445_v6, 4  ;;  %v1728_v39 = vrot.slane %v6518_v46, 4  ;;  %v1790_v49 = vrot.slane %v1783_v17, 4  ;;  %v1901_v36 = vrot.slane %v8859_v55, 4 }
 0x275   : > { %v1785_v60 = vsel %vm258_vm0, 0.0, %v1784_v13  ;;  %v1913_v44 = vrot.slane %v8860_v45, 4  ;;  %v1788_v42 = vrot.slane %v1779_v23, 4  ;;  %v1955_v16 = vrot.slane %v8861_v22, 4 }
 0x276   : > { %v1729_v37 = vsel %vm258_vm0, 0.0, %v1728_v39  ;;  %v1791_v26 = vsel %vm258_vm0, 0.0, %v1790_v49  ;;  %v1902_v53 = vsel %vm258_vm0, %v8857_v28, %v1901_v36  ;;  %v1969_v2 = vrot.slane %v8862_v62, 4 }
 0x277   : > { %v1914_v56 = vsel %vm258_vm0, %v8858_v30, %v1913_v44  ;;  %v1967_v58 = vrot.slane %v8863_v25, 4  ;;  %v1789_v15 = vsel %vm258_vm0, 0.0, %v1788_v42 }
 0x278   : > { %1182 = vrot.lane.b32.xlu1 %v1146_v31, %s5338_s27  ;;  %1809 = vrot.lane.b32.xlu2 %v1733_v7, %s5332_s23  ;;  %v1925_v31 = vrot.slane %v1906_v54, 4  ;;  %v1922_v20 = vperm.slane %v1914_v56, %v5491_v8 }
 0x27a   : > { %1621 = vrot.lane.b32.xlu0 %v1579_v35, %s5334_s24  ;;  %v6469_v14 = vpop.permute.xlu2 %1186  ;;  %v1763_v35 = vsel %vm258_vm0, %v6424_v40, %v1762_v63  ;;  %v1926_v61 = vsel %vm258_vm0, %v1918_v29, %v1925_v31  ;;  %v1923_v40 = vrot.slane %v1918_v29, 4  ;;  %v8864_v29 = vld [vmem:[#allocation13_spill] sm:$0xff] }
 0x27b   : > { %v1771_v6 = vperm.slane %v1763_v35, %v5498_v18  ;;  %v1934_v27 = vperm.slane %v1926_v61, %v5498_v18  ;;  %v1956_v63 = vsel %vm258_vm0, %v1955_v16, %v8864_v29 }
 0x27d   : > { %v1786_v59 = vrot.slane %v1771_v6, 4 }
 0x27f   : > { %v1787_v0 = vsel %vm258_vm0, 0.0, %v1786_v59 }
 0x280   : > { %1601 = vrot.lane.b32.xlu1 %v1525_v41, %s5332_s23  ;;  %1821 = vrot.lane.b32.xlu2 %v1785_v60, %s5338_s27  ;;  %v1949_v41 = vrot.slane %v1934_v27, 4  ;;  %v1910_v60 = vperm.slane %v1902_v53, %v5491_v8  ;;  %v1935_v53 = vrot.slane %v1922_v20, 4 }
 0x282   : > { %v6497_v24 = vpop.permute.xlu1 %960  ;;  %1801 = vrot.lane.b32.xlu0 %v1731_v10, %s5334_s24  ;;  %v6501_v34 = vpop.permute.xlu2 %964  ;;  %v1924_v10 = vsel %vm258_vm0, %v1923_v40, %v1906_v54  ;;  %v1950_v50 = vsel %vm258_vm0, 0.0, %v1949_v41 }
 0x284   : > { %v6504_v33 = vpop.permute.xlu0 %944 }
 0x288   : > { %1613 = vrot.lane.b32.xlu1 %v1577_v48, %s5338_s27  ;;  %1833 = vrot.lane.b32.xlu2 %v1779_v23, %s5336_s25  ;;  %v6569_v48 = vperm.slane %v1924_v10, %v5498_v18  ;;  %v1970_v23 = vsel %vm258_vm0, %v8863_v25, %v1969_v2  ;;  %v1936_v2 = vsel %vm258_vm0, %v1935_v53, %v1910_v60 }
 0x289   : > { %v1978_v35 = vperm.slane %v1970_v23, %v5491_v8 }
 0x28a   : > { %v6527_v3 = vpop.permute.xlu1 %972  ;;  %1585 = vrot.lane.b32.xlu0 %v1521_v52, %s5338_s27  ;;  %v6530_v38 = vpop.permute.xlu2 %1605  ;;  %v1937_v52 = vrot.slane %v1910_v60, 4  ;;  %v1947_v61 = vrot.slane %v6569_v48, 4 }
 0x28b   : > { %v1991_v41 = vrot.slane %v1978_v35, 4 }
 0x28c   : > { %v6533_v7 = vpop.permute.xlu0 %980  ;;  %v1938_v49 = vsel %vm258_vm0, %v1922_v20, %v1937_v52  ;;  %v1948_v44 = vsel %vm258_vm0, 0.0, %v1947_v61 }
 0x28d   : > { %v1946_v36 = vperm.slane %v1938_v49, %v5498_v18 }
 0x290   : > { %1793 = vrot.lane.b32.xlu1 %v1729_v37, %s5338_s27  ;;  %1845 = vrot.lane.b32.xlu2 %v1791_v26, %s5333_s22  ;;  %v1968_v37 = vsel %vm258_vm0, %v1967_v58, %v8862_v62  ;;  %v1962_v26 = vperm.slane %v1956_v63, %v5491_v8  ;;  %v1942_v58 = vperm.slane %v1936_v2, %v5498_v18 }
 0x291   : > { %v1974_v59 = vperm.slane %v1968_v37, %v5491_v8 }
 0x292   : > { %v6545_v4 = vpop.permute.xlu1 %1158  ;;  %1825 = vrot.lane.b32.xlu0 %v1771_v6, %s5337_s26  ;;  %v6548_v13 = vpop.permute.xlu2 %976  ;;  %v1957_v6 = vrot.slane %v8864_v29, 4  ;;  %v1981_v56 = vrot.slane %v1962_v26, 4  ;;  %v1951_v49 = vrot.slane %v1942_v58, 4 }
 0x293   : > { %v1979_v23 = vrot.slane %v1974_v59, 4 }
 0x294   : > { %v6553_v57 = vpop.permute.xlu0 %1166  ;;  %v1958_v40 = vsel %vm258_vm0, %v8861_v22, %v1957_v6  ;;  %v1953_v6 = vrot.slane %v1946_v36, 4 }
 0x295   : > { %v1966_v10 = vperm.slane %v1958_v40, %v5491_v8  ;;  %v1980_v37 = vsel %vm258_vm0, %v1979_v23, %v1962_v26  ;;  %v1952_v40 = vsel %vm258_vm0, 0.0, %v1951_v49 }
 0x296   : > { %v1954_v53 = vsel %vm258_vm0, 0.0, %v1953_v6 }
 0x298   : > { %1829 = vrot.lane.b32.xlu1 %v1787_v0, %s5334_s24  ;;  %2020 = vrot.lane.b32.xlu2 %v1950_v50, %s5334_s24  ;;  %v1992_v50 = vsel %vm258_vm0, %v1991_v41, %v1966_v10 }
 0x29a   : > { %v6573_v54 = vpop.permute.xlu1 %1194  ;;  %1837 = vrot.lane.b32.xlu0 %v1789_v15, %s5332_s23  ;;  %v6578_v39 = vpop.permute.xlu2 %1162  ;;  %v1998_v15 = vperm.slane %v1992_v50, %v5498_v18 }
 0x29c   : > { %v6580_v31 = vpop.permute.xlu0 %992  ;;  %v2007_v61 = vrot.slane %v1998_v15, 4 }
 0x2a0   : > { %1841 = vrot.lane.b32.xlu1 %v1783_v17, %s5335_s18  ;;  %2032 = vrot.lane.b32.xlu2 %v1946_v36, %s5335_s18  ;;  %v1982_v17 = vsel %vm258_vm0, %v1974_v59, %v1981_v56  ;;  %v2008_v59 = vsel %vm258_vm0, 0.0, %v2007_v61 }
 0x2a1   : > { %v1990_v20 = vperm.slane %v1982_v17, %v5498_v18 }
 0x2a2   : > { %v6596_v42 = vpop.permute.xlu1 %1206  ;;  %2012 = vrot.lane.b32.xlu0 %v1948_v44, %s5338_s27  ;;  %v6600_v16 = vpop.permute.xlu2 %1198 }
 0x2a3   : > { %v2005_v56 = vrot.slane %v1990_v20, 4 }
 0x2a4   : > { %v6602_v0 = vpop.permute.xlu0 %1178 }
 0x2a5   : > { %v2006_v2 = vsel %vm258_vm0, 0.0, %v2005_v56 }
 0x2a8   : > { %2016 = vrot.lane.b32.xlu1 %v1934_v27, %s5337_s26  ;;  %2044 = vrot.lane.b32.xlu2 %v1990_v20, %s5337_s26  ;;  %v6620_v27 = vperm.slane %v1980_v37, %v5498_v18 }
 0x2aa   : > { %v949_v52 = vpop.permute.xlu1 %948  ;;  %2024 = vrot.lane.b32.xlu0 %v1942_v58, %s5336_s25  ;;  %v6613_v63 = vpop.permute.xlu2 %1617  ;;  %v2003_v26 = vrot.slane %v6620_v27, 4  ;;  %v1993_v58 = vrot.slane %v1966_v10, 4 }
 0x2ac   : > { %v6615_v60 = vpop.permute.xlu0 %1633  ;;  %v2004_v17 = vsel %vm258_vm0, 0.0, %v2003_v26  ;;  %v1994_v20 = vsel %vm258_vm0, %v1978_v35, %v1993_v58 }
 0x2b0   : > { %2028 = vrot.lane.b32.xlu1 %v1952_v40, %s5332_s23  ;;  %2056 = vrot.lane.b32.xlu2 %v2008_v59, %s5332_s23  ;;  %v2002_v59 = vperm.slane %v1994_v20, %v5498_v18 }
 0x2b2   : > { %v985_v44 = vpop.permute.xlu1 %984  ;;  %2036 = vrot.lane.b32.xlu0 %v1954_v53, %s5333_s22  ;;  %v6627_v41 = vpop.permute.xlu2 %1797  ;;  %v2009_v10 = vrot.slane %v2002_v59, 4 }
 0x2b4   : > { %v6630_v36 = vpop.permute.xlu0 %1813 }
 0x2b8   : > { %2040 = vrot.lane.b32.xlu1 %v2004_v17, %s5338_s27  ;;  %2083 = vrot.lane.b32.xlu2 %v8859_v55, %s5341_s28 }
 0x2ba   : > { %v1171_v50 = vpop.permute.xlu1 %1170  ;;  %2048 = vrot.lane.b32.xlu0 %v2006_v2, %s5334_s24  ;;  %v941_v23 = vpop.permute.xlu2 %940 }
 0x2bb   : > { %v995_v49 = vsel %vm772_vm6, %v6357_v43, %v941_v23 }
 0x2bc   : > { %v957_v61 = vpop.permute.xlu0 %956  ;;  %v996_v37 = vsel %vm774_vm7, %v995_v49, %v6504_v33 }
 0x2bd   : > { %v997_v6 = vsel %vm776_vm8, %v996_v37, %v949_v52 }
 0x2be   : > { %v998_v40 = vsel %vm778_vm9, %v997_v6, %v6447_v32 }
 0x2bf   : > { %v999_v53 = vsel %vm780_vm10, %v998_v40, %v957_v61 }
 0x2c0   : > { %2052 = vrot.lane.b32.xlu1 %v1998_v15, %s5336_s25  ;;  %v1000_v43 = vsel %vm782_vm11, %v999_v53, %v6497_v24  ;;  %2089 = vrot.lane.b32.xlu2 %v8862_v62, %s5341_s28  ;;  %v2010_v15 = vsel %vm258_vm0, 0.0, %v2009_v10 }
 0x2c1   : > { %v1001_v33 = vsel %vm784_vm12, %v1000_v43, %v6501_v34 }
 0x2c2   : > { %v6655_v35 = vpop.permute.xlu1 %1589  ;;  %2060 = vrot.lane.b32.xlu0 %v2002_v59, %s5335_s18  ;;  %v1011_v32 = vrot.slane %v1001_v33, 4  ;;  %v1594_v26 = vpop.permute.xlu2 %1593 }
 0x2c4   : > { %v1191_v52 = vpop.permute.xlu0 %1190  ;;  %1015 = vst [vmem:[#allocation2 + $0x30] sm:$0xf0] %v1011_v32 }
 0x2c8   : > { %2064 = vrot.lane.b32.xlu1 %v2010_v15, %s5333_s22  ;;  %2095 = vrot.lane.b32.xlu2 %v8858_v30, %s5341_s28 }
 0x2ca   : > { %v1626_v24 = vpop.permute.xlu1 %1625  ;;  %2085 = vrot.lane.b32.xlu0 %v8864_v29, %s5341_s28  ;;  %v1630_v56 = vpop.permute.xlu2 %1629 }
 0x2cc   : > { %v1598_v34 = vpop.permute.xlu0 %1597 }
 0x2d0   : > { %2087 = vrot.lane.b32.xlu1 %v8860_v45, %s5341_s28 }
 0x2d2   : > { %v6666_v17 = vpop.permute.xlu1 %1805  ;;  %2091 = vrot.lane.b32.xlu0 %v8857_v28, %s5341_s28  ;;  %v6672_v58 = vpop.permute.xlu2 %1809 }
 0x2d4   : > { %v1610_v2 = vpop.permute.xlu0 %1609 }
 0x2d8   : > { %2093 = vrot.lane.b32.xlu1 %v8861_v22, %s5341_s28 }
 0x2da   : > { %v1638_v23 = vpop.permute.xlu1 %1637  ;;  %2097 = vrot.lane.b32.xlu0 %v8863_v25, %s5341_s28  ;;  %v1822_v33 = vpop.permute.xlu2 %1821 }
 0x2dc   : > { %v969_v49 = vpop.permute.xlu0 %968 }
 0x2dd   : > { %v1002_v61 = vsel %vm772_vm6, %v6388_v12, %v969_v49 }
 0x2de   : > { %v1003_v20 = vsel %vm774_vm7, %v1002_v61, %v6527_v3 }
 0x2df   : > { %v1004_v37 = vsel %vm776_vm8, %v1003_v20, %v6548_v13 }
 0x2e0   : > { %v1005_v6 = vsel %vm778_vm9, %v1004_v37, %v6533_v7 }
 0x2e1   : > { %v1006_v40 = vsel %vm780_vm10, %v1005_v6, %v985_v44 }
 0x2e2   : > { %v1007_v59 = vsel %vm782_vm11, %v1006_v40, %v6383_v11  ;;  %v1818_v53 = vpop.permute.xlu1 %1817 }
 0x2e3   : > { %v1008_v43 = vsel %vm784_vm12, %v1007_v59, %v6580_v31 }
 0x2e4   : > { %v1012_v12 = vrot.slane %v1008_v43, 4  ;;  %v1155_v32 = vpop.permute.xlu0 %1154 }
 0x2e5   : > { %v1209_v3 = vsel %vm772_vm6, %v6408_v47, %v1155_v32 }
 0x2e6   : > { %1016 = vst [vmem:[#allocation2] sm:$0xf0] %v1012_v12  ;;  %v1210_v13 = vsel %vm774_vm7, %v1209_v3, %v6545_v4 }
 0x2e7   : > { %v1211_v7 = vsel %vm776_vm8, %v1210_v13, %v6578_v39 }
 0x2e8   : > { %v1212_v11 = vsel %vm778_vm9, %v1211_v7, %v6553_v57  ;;  %v1834_v57 = vpop.permute.xlu2 %1833 }
 0x2e9   : > { %v1213_v44 = vsel %vm780_vm10, %v1212_v11, %v1171_v50 }
 0x2ea   : > { %v1214_v31 = vsel %vm782_vm11, %v1213_v44, %v6416_v9  ;;  %v1183_v10 = vpop.permute.xlu1 %1182 }
 0x2eb   : > { %v1215_v15 = vsel %vm784_vm12, %v1214_v31, %v6602_v0  ;;  %v1216_v47 = vsel %vm772_vm6, %v6434_v51, %v1183_v10 }
 0x2ec   : > { %1223 = vst [vmem:[#allocation2 + $0x18] sm:$0xf] %v1215_v15  ;;  %v1217_v4 = vsel %vm774_vm7, %v1216_v47, %v6469_v14  ;;  %v1622_v39 = vpop.permute.xlu0 %1621 }
 0x2ed   : > { %v1218_v49 = vsel %vm776_vm8, %v1217_v4, %v1191_v52 }
 0x2ee   : > { %v1219_v50 = vsel %vm778_vm9, %v1218_v49, %v6573_v54 }
 0x2ef   : > { %v1220_v9 = vsel %vm780_vm10, %v1219_v50, %v6600_v16 }
 0x2f0   : > { %v1221_v0 = vsel %vm782_vm11, %v1220_v9, %v6475_v5  ;;  %v1846_v14 = vpop.permute.xlu2 %1845 }
 0x2f1   : > { %v1222_v51 = vsel %vm784_vm12, %v1221_v0, %v6596_v42 }
 0x2f2   : > { %1224 = vst [vmem:[#allocation2 + $0x10] sm:$0xf] %v1222_v51  ;;  %v1602_v61 = vpop.permute.xlu1 %1601 }
 0x2f4   : > { %v1802_v20 = vpop.permute.xlu0 %1801 }
 0x2f8   : > { %v2021_v3 = vpop.permute.xlu2 %2020 }
 0x2fa   : > { %v1614_v37 = vpop.permute.xlu1 %1613 }
 0x2fb   : > { %v1647_v52 = vsel %vm772_vm6, %v6486_v1, %v1614_v37 }
 0x2fc   : > { %v1648_v54 = vsel %vm774_vm7, %v1647_v52, %v6613_v63  ;;  %v1586_v6 = vpop.permute.xlu0 %1585 }
 0x2fd   : > { %v1649_v16 = vsel %vm776_vm8, %v1648_v54, %v1622_v39  ;;  %v1640_v5 = vsel %vm772_vm6, %v6494_v21, %v1586_v6 }
 0x2fe   : > { %v1650_v40 = vsel %vm778_vm9, %v1649_v16, %v1626_v24  ;;  %v1641_v42 = vsel %vm774_vm7, %v1640_v5, %v6655_v35 }
 0x2ff   : > { %v1651_v59 = vsel %vm780_vm10, %v1650_v40, %v1630_v56  ;;  %v1642_v43 = vsel %vm776_vm8, %v1641_v42, %v1594_v26 }
 0x300   : > { %v1652_v1 = vsel %vm782_vm11, %v1651_v59, %v6615_v60  ;;  %v1643_v63 = vsel %vm778_vm9, %v1642_v43, %v1598_v34  ;;  %v2033_v44 = vpop.permute.xlu2 %2032 }
 0x301   : > { %v1653_v12 = vsel %vm784_vm12, %v1652_v1, %v1638_v23  ;;  %v1644_v32 = vsel %vm780_vm10, %v1643_v63, %v1602_v61 }
 0x302   : > { %1655 = vst [vmem:[#allocation2 + $0x28] sm:$0xf] %v1653_v12  ;;  %v1645_v21 = vsel %vm782_vm11, %v1644_v32, %v6530_v38  ;;  %v1794_v24 = vpop.permute.xlu1 %1793 }
 0x303   : > { %v1646_v35 = vsel %vm784_vm12, %v1645_v21, %v1610_v2  ;;  %v1848_v26 = vsel %vm772_vm6, %v6518_v46, %v1794_v24  ;;  %v1855_v46 = vsel %vm772_vm6, %v6459_v19, %v1822_v33 }
 0x304   : > { %1654 = vst [vmem:[#allocation2 + $0x48] sm:$0xf] %v1646_v35  ;;  %v1849_v60 = vsel %vm774_vm7, %v1848_v26, %v6627_v41  ;;  %v1826_v34 = vpop.permute.xlu0 %1825 }
 0x305   : > { %v1850_v56 = vsel %vm776_vm8, %v1849_v60, %v1802_v20  ;;  %v1856_v41 = vsel %vm774_vm7, %v1855_v46, %v1826_v34 }
 0x306   : > { %v1851_v23 = vsel %vm778_vm9, %v1850_v56, %v6666_v17 }
 0x307   : > { %v1852_v13 = vsel %vm780_vm10, %v1851_v23, %v6672_v58 }
 0x308   : > { %v1853_v38 = vsel %vm782_vm11, %v1852_v13, %v6630_v36  ;;  %v2045_v33 = vpop.permute.xlu2 %2044 }
 0x309   : > { %v1854_v2 = vsel %vm784_vm12, %v1853_v38, %v1818_v53 }
 0x30a   : > { %v1864_v7 = vrot.slane %v1854_v2, 4  ;;  %v1830_v11 = vpop.permute.xlu1 %1829 }
 0x30b   : > { %v1857_v31 = vsel %vm776_vm8, %v1856_v41, %v1830_v11 }
 0x30c   : > { %1868 = vst [vmem:[#allocation2 + $0x48] sm:$0xf0] %v1864_v7  ;;  %v1838_v17 = vpop.permute.xlu0 %1837  ;;  %v1858_v10 = vsel %vm778_vm9, %v1857_v31, %v1834_v57 }
 0x30d   : > { %v1859_v58 = vsel %vm780_vm10, %v1858_v10, %v1838_v17 }
 0x310   : > { %v2057_v9 = vpop.permute.xlu2 %2056 }
 0x312   : > { %v1842_v15 = vpop.permute.xlu1 %1841 }
 0x313   : > { %v1860_v36 = vsel %vm782_vm11, %v1859_v58, %v1842_v15 }
 0x314   : > { %v1861_v53 = vsel %vm784_vm12, %v1860_v36, %v1846_v14  ;;  %v2013_v47 = vpop.permute.xlu0 %2012 }
 0x315   : > { %v1865_v19 = vrot.slane %v1861_v53, 4  ;;  %v2067_v39 = vsel %vm772_vm6, %v6569_v48, %v2013_v47 }
 0x317   : > { %1869 = vst [vmem:[#allocation2 + $0x28] sm:$0xf0] %v1865_v19 }
 0x318   : > { %v2084_v52 = vpop.permute.xlu2 %2083 }
 0x319   : > { %v2109_v60 = vrot.slane %v2084_v52, 4 }
 0x31a   : > { %v2017_v4 = vpop.permute.xlu1 %2016 }
 0x31b   : > { %v2068_v49 = vsel %vm774_vm7, %v2067_v39, %v2017_v4 }
 0x31c   : > { %v2025_v50 = vpop.permute.xlu0 %2024  ;;  %v2069_v57 = vsel %vm776_vm8, %v2068_v49, %v2021_v3 }
 0x31d   : > { %v2070_v0 = vsel %vm778_vm9, %v2069_v57, %v2025_v50 }
 0x320   : > { %v2090_v42 = vpop.permute.xlu2 %2089 }
 0x322   : > { %v2029_v51 = vpop.permute.xlu1 %2028 }
 0x323   : > { %v2071_v61 = vsel %vm780_vm10, %v2070_v0, %v2029_v51  ;;  %v2177_v51 = vrot.slane %v2090_v42, 4 }
 0x324   : > { %v2037_v20 = vpop.permute.xlu0 %2036  ;;  %v2072_v14 = vsel %vm782_vm11, %v2071_v61, %v2033_v44 }
 0x325   : > { %v2073_v37 = vsel %vm784_vm12, %v2072_v14, %v2037_v20 }
 0x326   : > { %2081 = vst [vmem:[#allocation2 + $0x8] sm:$0xf] %v2073_v37 }
 0x328   : > { %v2096_v21 = vpop.permute.xlu2 %2095 }
 0x32a   : > { %v2041_v54 = vpop.permute.xlu1 %2040 }
 0x32b   : > { %v2074_v6 = vsel %vm772_vm6, %v6620_v27, %v2041_v54  ;;  %v2119_v27 = vrot.slane %v2096_v21, 4 }
 0x32c   : > { %v2049_v48 = vpop.permute.xlu0 %2048  ;;  %v2075_v16 = vsel %vm774_vm7, %v2074_v6, %v2045_v33 }
 0x32d   : > { %v2076_v40 = vsel %vm776_vm8, %v2075_v16, %v2049_v48 }
 0x332   : > { %v2053_v5 = vpop.permute.xlu1 %2052 }
 0x333   : > { %v2077_v59 = vsel %vm778_vm9, %v2076_v40, %v2053_v5 }
 0x334   : > { %v2061_v43 = vpop.permute.xlu0 %2060  ;;  %v2078_v1 = vsel %vm780_vm10, %v2077_v59, %v2057_v9 }
 0x335   : > { %v2079_v63 = vsel %vm782_vm11, %v2078_v1, %v2061_v43 }
 0x33a   : > { %v2065_v12 = vpop.permute.xlu1 %2064 }
 0x33b   : > { %v2080_v32 = vsel %vm784_vm12, %v2079_v63, %v2065_v12 }
 0x33c   : > { %2082 = vst [vmem:[#allocation2 + $0x20] sm:$0xf] %v2080_v32  ;;  %v2086_v3 = vpop.permute.xlu0 %2085 }
 0x33d   : > { %v2165_v16 = vrot.slane %v2086_v3, 4 }
 0x342   : > { %v2088_v24 = vpop.permute.xlu1 %2087 }
 0x343   : > { %v2120_v35 = vsel %vm258_vm0, %v2119_v27, %v2088_v24  ;;  %v2121_v26 = vrot.slane %v2088_v24, 4 }
 0x344   : > { %v2126_v34 = vperm.slane %v2120_v35, %v5491_v8  ;;  %v2092_v56 = vpop.permute.xlu0 %2091 }
 0x345   : > { %v2122_v23 = vsel %vm258_vm0, %v2096_v21, %v2121_v26  ;;  %v2107_v13 = vrot.slane %v2092_v56, 4  ;;  %v2110_v2 = vsel %vm258_vm0, %v2092_v56, %v2109_v60 }
 0x346   : > { %v2130_v38 = vperm.slane %v2122_v23, %v5491_v8  ;;  %v2131_v7 = vrot.slane %v2126_v34, 4  ;;  %v2118_v44 = vperm.slane %v2110_v2, %v5491_v8 }
 0x347   : > { %v2108_v46 = vsel %vm258_vm0, %v2107_v13, %v2084_v52 }
 0x348   : > { %v2143_v11 = vrot.slane %v2130_v38, 4  ;;  %v2114_v41 = vperm.slane %v2108_v46, %v5491_v8  ;;  %v2145_v61 = vrot.slane %v2118_v44, 4 }
 0x34a   : > { %v2133_v31 = vrot.slane %v2114_v41, 4  ;;  %v2094_v17 = vpop.permute.xlu1 %2093  ;;  %v2132_v10 = vsel %vm258_vm0, %v2131_v7, %v2114_v41  ;;  %v2144_v36 = vsel %vm258_vm0, %v2143_v11, %v2118_v44  ;;  %v2146_v6 = vsel %vm258_vm0, %v2130_v38, %v2145_v61 }
 0x34b   : > { %v2163_v58 = vrot.slane %v2094_v17, 4  ;;  %v6781_v15 = vperm.slane %v2132_v10, %v5498_v18  ;;  %v2150_v39 = vperm.slane %v2144_v36, %v5498_v18  ;;  %v2166_v59 = vsel %vm258_vm0, %v2094_v17, %v2165_v16 }
 0x34c   : > { %v2098_v53 = vpop.permute.xlu0 %2097  ;;  %v2134_v47 = vsel %vm258_vm0, %v2126_v34, %v2133_v31  ;;  %v2154_v43 = vperm.slane %v2146_v6, %v5498_v18  ;;  %v2174_v32 = vperm.slane %v2166_v59, %v5491_v8 }
 0x34d   : > { %v2175_v19 = vrot.slane %v2098_v53, 4  ;;  %v2142_v33 = vperm.slane %v2134_v47, %v5498_v18  ;;  %v2155_v4 = vrot.slane %v6781_v15, 4  ;;  %v2164_v49 = vsel %vm258_vm0, %v2163_v58, %v2086_v3 }
 0x34e   : > { %v2170_v14 = vperm.slane %v2164_v49, %v5491_v8  ;;  %v2159_v52 = vrot.slane %v2150_v39, 4  ;;  %v2178_v54 = vsel %vm258_vm0, %v2098_v53, %v2177_v51  ;;  %v2161_v3 = vrot.slane %v2154_v43, 4 }
 0x34f   : > { %v2176_v50 = vsel %vm258_vm0, %v2175_v19, %v2090_v42  ;;  %2224 = vrot.lane.b32.xlu2 %v2142_v33, %s5337_s26  ;;  %v2157_v57 = vrot.slane %v2142_v33, 4  ;;  %v2156_v0 = vsel %vm258_vm0, 0.0, %v2155_v4  ;;  %v2186_v5 = vperm.slane %v2178_v54, %v5491_v8 }
 0x350   : > { %v2182_v9 = vperm.slane %v2176_v50, %v5491_v8  ;;  %2220 = vrot.lane.b32.xlu1 %v2156_v0, %s5338_s27  ;;  %v2160_v40 = vsel %vm258_vm0, 0.0, %v2159_v52  ;;  %v2189_v1 = vrot.slane %v2170_v14, 4  ;;  %v2201_v35 = vrot.slane %v2174_v32, 4 }
 0x351   : > { %v2158_v20 = vsel %vm258_vm0, 0.0, %v2157_v57  ;;  %v2199_v63 = vrot.slane %v2186_v5, 4  ;;  %v2162_v26 = vsel %vm258_vm0, 0.0, %v2161_v3 }
 0x352   : > { %v2187_v37 = vrot.slane %v2182_v9, 4  ;;  %2228 = vrot.lane.b32.xlu0 %v2158_v20, %s5334_s24  ;;  %v2190_v21 = vsel %vm258_vm0, %v2182_v9, %v2189_v1  ;;  %v2202_v56 = vsel %vm258_vm0, %v2186_v5, %v2201_v35 }
 0x353   : > { %v2200_v24 = vsel %vm258_vm0, %v2199_v63, %v2174_v32  ;;  %v2198_v60 = vperm.slane %v2190_v21, %v5498_v18  ;;  %v2210_v38 = vperm.slane %v2202_v56, %v5498_v18 }
 0x354   : > { %v2188_v48 = vsel %vm258_vm0, %v2187_v37, %v2170_v14  ;;  %v2206_v34 = vperm.slane %v2200_v24, %v5498_v18 }
 0x355   : > { %v2194_v42 = vperm.slane %v2188_v48, %v5498_v18  ;;  %v2213_v23 = vrot.slane %v2198_v60, 4  ;;  %v2217_v7 = vrot.slane %v2210_v38, 4 }
 0x356   : > { %v2215_v13 = vrot.slane %v2206_v34, 4 }
 0x357   : > { %2236 = vrot.lane.b32.xlu2 %v2160_v40, %s5332_s23  ;;  %v2211_v12 = vrot.slane %v2194_v42, 4  ;;  %v2214_v2 = vsel %vm258_vm0, 0.0, %v2213_v23  ;;  %v2218_v11 = vsel %vm258_vm0, 0.0, %v2217_v7 }
 0x358   : > { %2232 = vrot.lane.b32.xlu1 %v2150_v39, %s5336_s25  ;;  %v2216_v46 = vsel %vm258_vm0, 0.0, %v2215_v13 }
 0x359   : > { %v2212_v27 = vsel %vm258_vm0, 0.0, %v2211_v12 }
 0x35a   : > { %2240 = vrot.lane.b32.xlu0 %v2154_v43, %s5335_s18 }
 0x35f   : > { %2248 = vrot.lane.b32.xlu2 %v2212_v27, %s5338_s27 }
 0x360   : > { %2244 = vrot.lane.b32.xlu1 %v2162_v26, %s5333_s22 }
 0x362   : > { %2252 = vrot.lane.b32.xlu0 %v2198_v60, %s5337_s26 }
 0x367   : > { %2260 = vrot.lane.b32.xlu2 %v2206_v34, %s5336_s25 }
 0x368   : > { %2256 = vrot.lane.b32.xlu1 %v2214_v2, %s5334_s24 }
 0x36a   : > { %2264 = vrot.lane.b32.xlu0 %v2216_v46, %s5332_s23 }
 0x36f   : > { %2272 = vrot.lane.b32.xlu2 %v2218_v11, %s5333_s22 }
 0x370   : > { %2268 = vrot.lane.b32.xlu1 %v2210_v38, %s5335_s18 }
 0x372   : > { %2297 = vrot.lane.b32.xlu0 %v8859_v55, %s5344_s5 }
 0x377   : > { %2301 = vrot.lane.b32.xlu2 %v8860_v45, %s5344_s5 }
 0x378   : > { %2299 = vrot.lane.b32.xlu1 %v8864_v29, %s5344_s5 }
 0x37a   : > { %2303 = vrot.lane.b32.xlu0 %v8862_v62, %s5344_s5 }
 0x37f   : > { %2307 = vrot.lane.b32.xlu2 %v8861_v22, %s5344_s5 }
 0x380   : > { %2305 = vrot.lane.b32.xlu1 %v8857_v28, %s5344_s5 }
 0x382   : > { %2309 = vrot.lane.b32.xlu0 %v8858_v30, %s5344_s5 }
 0x388   : > { %2311 = vrot.lane.b32.xlu1 %v8863_v25, %s5344_s5 }
 0x3a9   : > { %v2225_v55 = vpop.permute.xlu2 %2224 }
 0x3b1   : > { %v2237_v44 = vpop.permute.xlu2 %2236 }
 0x3b9   : > { %v2249_v10 = vpop.permute.xlu2 %2248 }
 0x3ba   : > { %v2282_v19 = vsel %vm772_vm6, %v2194_v42, %v2249_v10 }
 0x3c2   : > { %v2221_v45 = vpop.permute.xlu1 %2220 }
 0x3c3   : > { %v2275_v29 = vsel %vm772_vm6, %v6781_v15, %v2221_v45  ;;  %v2261_v15 = vpop.permute.xlu2 %2260 }
 0x3c4   : > { %v2229_v41 = vpop.permute.xlu0 %2228  ;;  %v2276_v62 = vsel %vm774_vm7, %v2275_v29, %v2225_v55 }
 0x3c5   : > { %v2277_v22 = vsel %vm776_vm8, %v2276_v62, %v2229_v41 }
 0x3ca   : > { %v2233_v31 = vpop.permute.xlu1 %2232 }
 0x3cb   : > { %v2278_v28 = vsel %vm778_vm9, %v2277_v22, %v2233_v31  ;;  %v2273_v0 = vpop.permute.xlu2 %2272 }
 0x3cc   : > { %v2241_v17 = vpop.permute.xlu0 %2240  ;;  %v2279_v30 = vsel %vm780_vm10, %v2278_v28, %v2237_v44 }
 0x3cd   : > { %v2280_v25 = vsel %vm782_vm11, %v2279_v30, %v2241_v17 }
 0x3d2   : > { %v2245_v58 = vpop.permute.xlu1 %2244 }
 0x3d3   : > { %v2281_v36 = vsel %vm784_vm12, %v2280_v25, %v2245_v58  ;;  %v2302_v54 = vpop.permute.xlu2 %2301 }
 0x3d4   : > { %v2253_v53 = vpop.permute.xlu0 %2252  ;;  %v2291_v47 = vrot.slane %v2281_v36, 4  ;;  %v2335_v48 = vrot.slane %v2302_v54, 4 }
 0x3d5   : > { %v2283_v4 = vsel %vm774_vm7, %v2282_v19, %v2253_v53 }
 0x3d6   : > { %2295 = vst [vmem:[#allocation2 + $0x8] sm:$0xf0] %v2291_v47 }
 0x3da   : > { %v2257_v33 = vpop.permute.xlu1 %2256 }
 0x3db   : > { %v2284_v49 = vsel %vm776_vm8, %v2283_v4, %v2257_v33  ;;  %v2308_v24 = vpop.permute.xlu2 %2307 }
 0x3dc   : > { %v2265_v39 = vpop.permute.xlu0 %2264  ;;  %v2285_v50 = vsel %vm778_vm9, %v2284_v49, %v2261_v15  ;;  %v2377_v23 = vrot.slane %v2308_v24, 4 }
 0x3dd   : > { %v2286_v57 = vsel %vm780_vm10, %v2285_v50, %v2265_v39 }
 0x3e2   : > { %v2269_v9 = vpop.permute.xlu1 %2268 }
 0x3e3   : > { %v2287_v51 = vsel %vm782_vm11, %v2286_v57, %v2269_v9 }
 0x3e4   : > { %v2298_v61 = vpop.permute.xlu0 %2297  ;;  %v2288_v20 = vsel %vm784_vm12, %v2287_v51, %v2273_v0 }
 0x3e5   : > { %v2292_v14 = vrot.slane %v2288_v20, 4  ;;  %v2323_v6 = vrot.slane %v2298_v61, 4 }
 0x3e7   : > { %2296 = vst [vmem:[#allocation2 + $0x20] sm:$0xf0] %v2292_v14 }
 0x3ea   : > { %v2300_v37 = vpop.permute.xlu1 %2299 }
 0x3eb   : > { %v2378_v11 = vsel %vm258_vm0, %v2377_v23, %v2300_v37  ;;  %v2379_v58 = vrot.slane %v2300_v37, 4 }
 0x3ec   : > { %v2304_v52 = vpop.permute.xlu0 %2303  ;;  %v2384_v22 = vperm.slane %v2378_v11, %v5491_v8 }
 0x3ed   : > { %v2391_v29 = vrot.slane %v2304_v52, 4  ;;  %v2380_v33 = vsel %vm258_vm0, %v2308_v24, %v2379_v58 }
 0x3ee   : > { %v2403_v49 = vrot.slane %v2384_v22, 4  ;;  %v2388_v50 = vperm.slane %v2380_v33, %v5491_v8  ;;  %v2513_v58 = vld [vmem:[#allocation2 + $0x20] sm:$0xff] }
 0x3f0   : > { %v2415_v20 = vrot.slane %v2388_v50, 4 }
 0x3f2   : > { %v2306_v16 = vpop.permute.xlu1 %2305 }
 0x3f3   : > { %v2321_v5 = vrot.slane %v2306_v16, 4  ;;  %v2324_v42 = vsel %vm258_vm0, %v2306_v16, %v2323_v6 }
 0x3f4   : > { %v2310_v40 = vpop.permute.xlu0 %2309  ;;  %v2332_v3 = vperm.slane %v2324_v42, %v5491_v8 }
 0x3f5   : > { %v2333_v59 = vrot.slane %v2310_v40, 4  ;;  %v2336_v43 = vsel %vm258_vm0, %v2310_v40, %v2335_v48  ;;  %v2322_v1 = vsel %vm258_vm0, %v2321_v5, %v2298_v61 }
 0x3f6   : > { %v2344_v63 = vperm.slane %v2336_v43, %v5491_v8  ;;  %v2328_v12 = vperm.slane %v2322_v1, %v5491_v8  ;;  %v2359_v62 = vrot.slane %v2332_v3, 4 }
 0x3f7   : > { %v2334_v32 = vsel %vm258_vm0, %v2333_v59, %v2302_v54 }
 0x3f8   : > { %v2340_v21 = vperm.slane %v2334_v32, %v5491_v8  ;;  %v2357_v27 = vrot.slane %v2344_v63, 4  ;;  %v2347_v35 = vrot.slane %v2328_v12, 4  ;;  %v2360_v36 = vsel %vm258_vm0, %v2344_v63, %v2359_v62  ;;  %v2505_v62 = vld [vmem:[#allocation6] sm:$0xf] }
 0x3f9   : > { %v2368_v19 = vperm.slane %v2360_v36, %v5498_v18  ;;  %v2511_v36 = vld [vmem:[#allocation2 + $0x28] sm:$0xff] }
 0x3fa   : > { %v2345_v26 = vrot.slane %v2340_v21, 4  ;;  %v2358_v60 = vsel %vm258_vm0, %v2357_v27, %v2332_v3  ;;  %v2312_v34 = vpop.permute.xlu1 %2311  ;;  %v2348_v56 = vsel %vm258_vm0, %v2340_v21, %v2347_v35 }
 0x3fb   : > { %v2389_v13 = vrot.slane %v2312_v34, 4  ;;  %v2356_v38 = vperm.slane %v2348_v56, %v5498_v18  ;;  %v2364_v7 = vperm.slane %v2358_v60, %v5498_v18  ;;  %v2392_v30 = vsel %vm258_vm0, %v2312_v34, %v2391_v29 }
 0x3fc   : > { %v2346_v2 = vsel %vm258_vm0, %v2345_v26, %v2328_v12  ;;  %v2400_v53 = vperm.slane %v2392_v30, %v5491_v8  ;;  %v2375_v0 = vrot.slane %v2368_v19, 4 }
 0x3fd   : > { %v2352_v46 = vperm.slane %v2346_v2, %v5498_v18  ;;  %v2390_v55 = vsel %vm258_vm0, %v2389_v13, %v2304_v52  ;;  %2438 = vrot.lane.b32.xlu0 %v2356_v38, %s5337_s26  ;;  %v2371_v45 = vrot.slane %v2356_v38, 4  ;;  %v2373_v10 = vrot.slane %v2364_v7, 4 }
 0x3fe   : > { %v2396_v41 = vperm.slane %v2390_v55, %v5491_v8  ;;  %v2413_v4 = vrot.slane %v2400_v53, 4  ;;  %v2376_v37 = vsel %vm258_vm0, 0.0, %v2375_v0  ;;  %v2416_v52 = vsel %vm258_vm0, %v2400_v53, %v2415_v20  ;;  %v2510_v55 = vld [vmem:[#allocation2 + $0x48] sm:$0xff]  ;;  %v2509_v53 = vld [vmem:[#allocation2 + $0x10] sm:$0xff] }
 0x3ff   : > { %v2369_v44 = vrot.slane %v2352_v46, 4  ;;  %v2372_v31 = vsel %vm258_vm0, 0.0, %v2371_v45  ;;  %v2374_v47 = vsel %vm258_vm0, 0.0, %v2373_v10  ;;  %v2424_v6 = vperm.slane %v2416_v52, %v5498_v18 }
 0x400   : > { %v2401_v17 = vrot.slane %v2396_v41, 4  ;;  %2442 = vrot.lane.b32.xlu1 %v2372_v31, %s5334_s24  ;;  %v2404_v57 = vsel %vm258_vm0, %v2396_v41, %v2403_v49  ;;  %v2414_v51 = vsel %vm258_vm0, %v2413_v4, %v2388_v50 }
 0x401   : > { %v2370_v28 = vsel %vm258_vm0, 0.0, %v2369_v44  ;;  %v2412_v61 = vperm.slane %v2404_v57, %v5498_v18  ;;  %v2420_v14 = vperm.slane %v2414_v51, %v5498_v18  ;;  %v2431_v40 = vrot.slane %v2424_v6, 4  ;;  %v2508_v44 = vld [vmem:[#allocation2 + $0x18] sm:$0xff] }
 0x402   : > { %2434 = vrot.lane.b32.xlu2 %v2370_v28, %s5338_s27  ;;  %v2402_v25 = vsel %vm258_vm0, %v2401_v17, %v2384_v22  ;;  %v2506_v22 = vld [vmem:[#allocation2 + $0x30] sm:$0xff] }
 0x403   : > { %v2408_v15 = vperm.slane %v2402_v25, %v5498_v18  ;;  %v2429_v54 = vrot.slane %v2420_v14, 4  ;;  %v2427_v48 = vrot.slane %v2412_v61, 4  ;;  %v2432_v42 = vsel %vm258_vm0, 0.0, %v2431_v40 }
 0x405   : > { %2450 = vrot.lane.b32.xlu0 %v2374_v47, %s5332_s23  ;;  %v2425_v39 = vrot.slane %v2408_v15, 4  ;;  %v2430_v16 = vsel %vm258_vm0, 0.0, %v2429_v54  ;;  %v2428_v5 = vsel %vm258_vm0, 0.0, %v2427_v48  ;;  %v2507_v47 = vld [vmem:[#allocation2] sm:$0xff] }
 0x407   : > { %v2426_v9 = vsel %vm258_vm0, 0.0, %v2425_v39 }
 0x408   : > { %2454 = vrot.lane.b32.xlu1 %v2368_v19, %s5335_s18 }
 0x40a   : > { %2446 = vrot.lane.b32.xlu2 %v2364_v7, %s5336_s25 }
 0x40d   : > { %2462 = vrot.lane.b32.xlu0 %v2426_v9, %s5338_s27 }
 0x410   : > { %2466 = vrot.lane.b32.xlu1 %v2412_v61, %s5337_s26 }
 0x412   : > { %2458 = vrot.lane.b32.xlu2 %v2376_v37, %s5333_s22 }
 0x415   : > { %2474 = vrot.lane.b32.xlu0 %v2420_v14, %s5336_s25 }
 0x418   : > { %2478 = vrot.lane.b32.xlu1 %v2430_v16, %s5332_s23 }
 0x41a   : > { %2470 = vrot.lane.b32.xlu2 %v2428_v5, %s5334_s24 }
 0x41d   : > { %2486 = vrot.lane.b32.xlu0 %v2432_v42, %s5333_s22 }
 0x422   : > { %2482 = vrot.lane.b32.xlu2 %v2424_v6, %s5335_s18 }
 0x45c   : > { %v2435_v59 = vpop.permute.xlu2 %2434 }
 0x45d   : > { %v2489_v12 = vsel %vm772_vm6, %v2352_v46, %v2435_v59  ;;  %v2512_v46 = vld [vmem:[#allocation2 + $0x8] sm:$0xff] }
 0x464   : > { %v2447_v1 = vpop.permute.xlu2 %2446 }
 0x46c   : > { %v2459_v24 = vpop.permute.xlu2 %2458 }
 0x46f   : > { %v2439_v43 = vpop.permute.xlu0 %2438 }
 0x470   : > { %v2490_v32 = vsel %vm774_vm7, %v2489_v12, %v2439_v43 }
 0x472   : > { %v2443_v63 = vpop.permute.xlu1 %2442 }
 0x473   : > { %v2491_v3 = vsel %vm776_vm8, %v2490_v32, %v2443_v63 }
 0x474   : > { %v2492_v27 = vsel %vm778_vm9, %v2491_v3, %v2447_v1  ;;  %v2471_v13 = vpop.permute.xlu2 %2470 }
 0x477   : > { %v2451_v21 = vpop.permute.xlu0 %2450 }
 0x478   : > { %v2493_v35 = vsel %vm780_vm10, %v2492_v27, %v2451_v21 }
 0x47a   : > { %v2455_v26 = vpop.permute.xlu1 %2454 }
 0x47b   : > { %v2494_v60 = vsel %vm782_vm11, %v2493_v35, %v2455_v26 }
 0x47c   : > { %v2495_v34 = vsel %vm784_vm12, %v2494_v60, %v2459_v24  ;;  %v2483_v17 = vpop.permute.xlu2 %2482 }
 0x47d   : > { %2503 = vst [vmem:[#allocation2 + $0x40] sm:$0xf] %v2495_v34 }
 0x47f   : > { %v2463_v56 = vpop.permute.xlu0 %2462 }
 0x480   : > { %v2496_v2 = vsel %vm772_vm6, %v2408_v15, %v2463_v56 }
 0x482   : > { %v2467_v23 = vpop.permute.xlu1 %2466 }
 0x483   : > { %v2497_v7 = vsel %vm774_vm7, %v2496_v2, %v2467_v23 }
 0x484   : > { %v2514_v38 = vld [vmem:[#allocation2 + $0x40] sm:$0xf]  ;;  %v2498_v45 = vsel %vm776_vm8, %v2497_v7, %v2471_v13 }
 0x485   : > { %5069 = vmatpush.msk.msra.mxu0 %vm8822_vm13, %v2514_v38 }
 0x487   : > { %v2475_v11 = vpop.permute.xlu0 %2474  ;;  %2539 = vmatpush.msra.mxu0 %v2512_v46 }
 0x488   : > { %v2499_v29 = vsel %vm778_vm9, %v2498_v45, %v2475_v11 }
 0x489   : > { %2540 = vmatpush.msra.mxu0 %v2510_v55 }
 0x48a   : > { %v2479_v41 = vpop.permute.xlu1 %2478 }
 0x48b   : > { %2541 = vmatpush.msra.mxu0 %v2508_v44  ;;  %v2500_v31 = vsel %vm780_vm10, %v2499_v29, %v2479_v41 }
 0x48c   : > { %v2501_v10 = vsel %vm782_vm11, %v2500_v31, %v2483_v17 }
 0x48d   : > { %2542 = vmatpush.msra.mxu0 %v2506_v22 }
 0x48e   : > { %5070 = vmatmul.msk.f32.vlgmr.msra.gmra.mxu0 %vm8821_vm14, %v2505_v62 }
 0x48f   : > { %v2487_v28 = vpop.permute.xlu0 %2486 }
 0x490   : > { %v2502_v30 = vsel %vm784_vm12, %v2501_v10, %v2487_v28 }
 0x491   : > { %2504 = vst [vmem:[#allocation2 + $0x38] sm:$0xf] %v2502_v30 }
 0x498   : > { %v2515_v25 = vld [vmem:[#allocation2 + $0x38] sm:$0xf] }
 0x499   : > { %5071 = vmatpush.msk.msra.mxu1 %vm8822_vm13, %v2515_v25 }
 0x49b   : > { %2559 = vmatpush.msra.mxu1 %v2513_v58 }
 0x49d   : > { %2560 = vmatpush.msra.mxu1 %v2511_v36 }
 0x49f   : > { %2561 = vmatpush.msra.mxu1 %v2509_v53 }
 0x4a1   : > { %2562 = vmatpush.msra.mxu1 %v2507_v47 }
 0x4a2   : > { %5072 = vmatmul.msk.f32.vlgmr.msra.gmra.mxu1 %vm8821_vm14, %v2505_v62 }
 0x50b   : > { %v2544_v15 = vpop.f32.mrf.mxu0 }
 0x50c   : > { %v2573_v19 = vmul.f32 %v2544_v15, %v2544_v15  ;;  %v2567_v33 = vsel %vm8822_vm13, %v2544_v15, 0.0 }
 0x50e   : > { %v2575_v39 = vsel %vm8822_vm13, %v2573_v19, 0.0 }
 0x51f   : > { %v2564_v4 = vpop.f32.mrf.mxu1 }
 0x520   : > { %v2568_v49 = vsel %vm8822_vm13, %v2564_v4, 0.0  ;;  %v2574_v50 = vmul.f32 %v2564_v4, %v2564_v4 }
 0x521   : > { %v2569_v57 = vadd.f32 %v2568_v49, %v2567_v33 }
 0x522   : > { %v2576_v9 = vsel %vm8822_vm13, %v2574_v50, 0.0 }
 0x523   : > { %2570 = vadd.xlane.f32.xlu1 %v2569_v57  ;;  %v2577_v0 = vadd.f32 %v2576_v9, %v2575_v39 }
 0x525   : > { %2578 = vadd.xlane.f32.xlu2 %v2577_v0 }
 0x596   : > { %v2571_v51 = vpop.xlane.xlu1 %2570 }
 0x597   : > { %v2572_v61 = vmul.f32 0.00390625, %v2571_v51 }
 0x598   : > { %v2579_v20 = vpop.xlane.xlu2 %2578 }
 0x599   : > { %v2580_v14 = vmul.f32 0.00390625, %v2579_v20  ;;  %v2581_v37 = vmul.f32 %v2572_v61, %v2572_v61  ;;  %v2583_v59 = vsub.f32 %v2544_v15, %v2572_v61  ;;  %v2584_v12 = vsub.f32 %v2564_v4, %v2572_v61 }
 0x59b   : > { %v2582_v52 = vsub.f32 %v2580_v14, %v2581_v37 }
 0x59d   : > { %v2585_v54 = vadd.f32 1e-05, %v2582_v52 }
 0x59f   : > { %5164 = vrsqrt.f32 %v2585_v54  ;;  %vm2592_vm14 = vweird.f32 %v2585_v54 }
 0x5a5   : > { %v5165_v48 = vpop.eup %5164 }
 0x5a6   : > { %v2587_v6 = vmul.f32 %v5165_v48, %v2585_v54  ;;  %vm2593_vm15 = vweird.f32 %v5165_v48 }
 0x5a7   : > { %vm2594_vm13 = vmor %vm2592_vm14, %vm2593_vm15 }
 0x5a8   : > { %v2588_v16 = vmul.f32 %v5165_v48, %v2587_v6 }
 0x5aa   : > { %v2589_v5 = vmul.f32 0.5, %v2588_v16 }
 0x5ac   : > { %v2590_v40 = vsub.f32 1.5, %v2589_v5 }
 0x5ae   : > { %v2591_v42 = vmul.f32 %v5165_v48, %v2590_v40 }
 0x5b0   : > { %v2595_v43 = vsel %vm2594_vm13, %v5165_v48, %v2591_v42 }
 0x5b1   : > { %v2596_v1 = vmul.f32 %v2595_v43, %v2583_v59  ;;  %v2597_v32 = vmul.f32 %v2595_v43, %v2584_v12 }
 0x5b3   : > { %v2598_v63 = vmax.f32 %v2596_v1, 0.0  ;;  %v6938_v3 = vmax.f32 %v2597_v32, 0.0 }
 0x5b5   : > { %2619 = vrot.lane.b32.xlu1 %v2598_v63, %s5338_s27  ;;  %2616 = vrot.lane.b32.xlu2 %v2598_v63, %s5337_s26 }
 0x5b6   : > { %2601 = vrot.lane.b32.xlu0 %v2598_v63, %s5333_s22 }
 0x5bd   : > { %2635 = vrot.lane.b32.xlu1 %v6938_v3, %s5334_s24  ;;  %2632 = vrot.lane.b32.xlu2 %v6938_v3, %s5336_s25 }
 0x5be   : > { %2604 = vrot.lane.b32.xlu0 %v2598_v63, %s5335_s18 }
 0x5c5   : > { %2641 = vrot.lane.b32.xlu2 %v6938_v3, %s5338_s27 }
 0x5c6   : > { %2607 = vrot.lane.b32.xlu0 %v2598_v63, %s5332_s23 }
 0x5ce   : > { %2610 = vrot.lane.b32.xlu0 %v2598_v63, %s5336_s25 }
 0x5d6   : > { %2613 = vrot.lane.b32.xlu0 %v2598_v63, %s5334_s24 }
 0x5de   : > { %2623 = vrot.lane.b32.xlu0 %v6938_v3, %s5333_s22 }
 0x5e6   : > { %2626 = vrot.lane.b32.xlu0 %v6938_v3, %s5335_s18 }
 0x5ee   : > { %2629 = vrot.lane.b32.xlu0 %v6938_v3, %s5332_s23 }
 0x5f6   : > { %2638 = vrot.lane.b32.xlu0 %v6938_v3, %s5337_s26 }
 0x60f   : > { %v2617_v34 = vpop.permute.xlu2 %2616 }
 0x610   : > { %v2656_v38 = vrot.slane %v2617_v34, 4 }
 0x617   : > { %v2633_v19 = vpop.permute.xlu2 %2632 }
 0x61f   : > { %v2642_v37 = vpop.permute.xlu2 %2641 }
 0x620   : > { %v2718_v5 = vrot.slane %v2642_v37, 4 }
 0x627   : > { %v2620_v56 = vpop.permute.xlu1 %2619 }
 0x628   : > { %v2602_v21 = vpop.permute.xlu0 %2601  ;;  %v2662_v2 = vrot.slane %v2620_v56, 4 }
 0x62f   : > { %v2636_v48 = vpop.permute.xlu1 %2635 }
 0x630   : > { %v2605_v27 = vpop.permute.xlu0 %2604  ;;  %v2719_v42 = vsel %vm258_vm0, %v2718_v5, %v2636_v48 }
 0x631   : > { %v2644_v23 = vrot.slane %v2605_v27, 4  ;;  %v2723_v32 = vperm.slane %v2719_v42, %v5491_v8 }
 0x633   : > { %v2645_v7 = vsel %vm258_vm0, %v2644_v23, %v2598_v63  ;;  %v2736_v56 = vrot.slane %v2723_v32, 4 }
 0x634   : > { %v2649_v44 = vperm.slane %v2645_v7, %v5491_v8 }
 0x636   : > { %v2670_v49 = vrot.slane %v2649_v44, 4 }
 0x638   : > { %v2608_v24 = vpop.permute.xlu0 %2607 }
 0x639   : > { %v2650_v35 = vrot.slane %v2608_v24, 4 }
 0x63b   : > { %v2651_v60 = vsel %vm258_vm0, %v2650_v35, %v2602_v21 }
 0x63c   : > { %v2655_v13 = vperm.slane %v2651_v60, %v5491_v8 }
 0x63e   : > { %v2668_v45 = vrot.slane %v2655_v13, 4  ;;  %v2671_v57 = vsel %vm258_vm0, %v2655_v13, %v2670_v49 }
 0x63f   : > { %v2679_v61 = vperm.slane %v2671_v57, %v5498_v18 }
 0x640   : > { %v2611_v26 = vpop.permute.xlu0 %2610  ;;  %v2669_v31 = vsel %vm258_vm0, %v2668_v45, %v2649_v44 }
 0x641   : > { %v2657_v11 = vsel %vm258_vm0, %v2656_v38, %v2611_v26  ;;  %v2675_v30 = vperm.slane %v2669_v31, %v5498_v18  ;;  %v2698_v43 = vrot.slane %v2679_v61, 4 }
 0x642   : > { %v2661_v29 = vperm.slane %v2657_v11, %v5491_v8 }
 0x643   : > { %v2694_v15 = vrot.slane %v2675_v30, 4 }
 0x644   : > { %v2682_v25 = vrot.slane %v2661_v29, 4 }
 0x648   : > { %v2614_v46 = vpop.permute.xlu0 %2613 }
 0x649   : > { %v2663_v55 = vsel %vm258_vm0, %v2662_v2, %v2614_v46 }
 0x64a   : > { %v2667_v41 = vperm.slane %v2663_v55, %v5491_v8 }
 0x64c   : > { %v2680_v62 = vrot.slane %v2667_v41, 4  ;;  %v2683_v36 = vsel %vm258_vm0, %v2667_v41, %v2682_v25 }
 0x64d   : > { %v2691_v4 = vperm.slane %v2683_v36, %v5498_v18 }
 0x64e   : > { %v2681_v22 = vsel %vm258_vm0, %v2680_v62, %v2661_v29 }
 0x64f   : > { %v2687_v17 = vperm.slane %v2681_v22, %v5498_v18  ;;  %v2696_v51 = vrot.slane %v2691_v4, 4  ;;  %v2699_v12 = vsel %vm258_vm0, %v2691_v4, %v2698_v43 }
 0x650   : > { %v2624_v28 = vpop.permute.xlu0 %2623  ;;  %v2763_v26 = vrot.slane %v2699_v12, 1  ;;  %v2781_v60 = vrot.slane %v2699_v12, 7 }
 0x651   : > { %v2692_v10 = vrot.slane %v2687_v17, 4  ;;  %v6979_v39 = vsel %vm258_vm0, %v2687_v17, %v2694_v15  ;;  %v6991_v14 = vsel %vm258_vm0, %v2696_v51, %v2679_v61 }
 0x652   : > { %v2761_v9 = vrot.slane %v6979_v39, 1  ;;  %v2775_v0 = vrot.slane %v6979_v39, 7  ;;  %v2762_v6 = vrot.slane %v6991_v14, 1  ;;  %v2778_v16 = vrot.slane %v6991_v14, 7 }
 0x653   : > { %v2693_v58 = vsel %vm258_vm0, %v2692_v10, %v2675_v30  ;;  %v2803_v46 = vsel %vm425_vm1, %v2763_v26, %v2781_v60 }
 0x654   : > { %v2760_v53 = vrot.slane %v2693_v58, 1  ;;  %v2772_v47 = vrot.slane %v2693_v58, 7  ;;  %v6986_v20 = vsel %vm425_vm1, %v2761_v9, %v2775_v0  ;;  %v6999_v63 = vsel %vm425_vm1, %v2762_v6, %v2778_v16 }
 0x656   : > { %v6973_v33 = vsel %vm425_vm1, %v2760_v53, %v2772_v47 }
 0x657   : > { %2816 = vrot.lane.b32.xlu1 %v6973_v33, %s5341_s28 }
 0x658   : > { %v2627_v50 = vpop.permute.xlu0 %2626 }
 0x659   : > { %v2700_v59 = vrot.slane %v2627_v50, 4 }
 0x65b   : > { %v2701_v27 = vsel %vm258_vm0, %v2700_v59, %v6938_v3 }
 0x65c   : > { %v2705_v23 = vperm.slane %v2701_v27, %v5491_v8 }
 0x65e   : > { %v2726_v10 = vrot.slane %v2705_v23, 4 }
 0x65f   : > { %2822 = vrot.lane.b32.xlu1 %v6986_v20, %s5341_s28 }
 0x660   : > { %v2630_v52 = vpop.permute.xlu0 %2629 }
 0x661   : > { %v2706_v54 = vrot.slane %v2630_v52, 4 }
 0x663   : > { %v2707_v40 = vsel %vm258_vm0, %v2706_v54, %v2624_v28 }
 0x664   : > { %v2711_v1 = vperm.slane %v2707_v40, %v5491_v8 }
 0x666   : > { %v2724_v35 = vrot.slane %v2711_v1, 4  ;;  %v2727_v30 = vsel %vm258_vm0, %v2711_v1, %v2726_v10 }
 0x667   : > { %2828 = vrot.lane.b32.xlu1 %v6999_v63, %s5341_s28  ;;  %v2735_v53 = vperm.slane %v2727_v30, %v5498_v18 }
 0x668   : > { %v2639_v21 = vpop.permute.xlu0 %2638  ;;  %v2725_v38 = vsel %vm258_vm0, %v2724_v35, %v2705_v23 }
 0x669   : > { %v2712_v24 = vrot.slane %v2639_v21, 4  ;;  %v2731_v11 = vperm.slane %v2725_v38, %v5498_v18  ;;  %v2754_v49 = vrot.slane %v2735_v53, 4 }
 0x66b   : > { %v2713_v34 = vsel %vm258_vm0, %v2712_v24, %v2633_v19  ;;  %v2750_v62 = vrot.slane %v2731_v11, 4 }
 0x66c   : > { %v2717_v13 = vperm.slane %v2713_v34, %v5491_v8 }
 0x66e   : > { %v2737_v2 = vsel %vm258_vm0, %v2736_v56, %v2717_v13  ;;  %v2738_v3 = vrot.slane %v2717_v13, 4 }
 0x66f   : > { %v2743_v7 = vperm.slane %v2737_v2, %v5498_v18  ;;  %2834 = vrot.lane.b32.xlu1 %v2803_v46, %s5341_s28 }
 0x670   : > { %v2739_v41 = vsel %vm258_vm0, %v2723_v32, %v2738_v3 }
 0x671   : > { %v2748_v55 = vrot.slane %v2743_v7, 4  ;;  %v2747_v17 = vperm.slane %v2739_v41, %v5498_v18  ;;  %v2751_v28 = vsel %vm258_vm0, %v2743_v7, %v2750_v62 }
 0x672   : > { %v2776_v25 = vrot.slane %v2751_v28, 7  ;;  %v2793_v58 = vrot.slane %v2751_v28, 5 }
 0x673   : > { %v2749_v45 = vsel %vm258_vm0, %v2748_v55, %v2731_v11  ;;  %v2752_v36 = vrot.slane %v2747_v17, 4  ;;  %v2755_v9 = vsel %vm258_vm0, %v2747_v17, %v2754_v49 }
 0x674   : > { %v2773_v44 = vrot.slane %v2749_v45, 7  ;;  %v2792_v29 = vrot.slane %v2749_v45, 5  ;;  %v2777_v15 = vsel %vm425_vm1, %v2775_v0, %v2776_v25  ;;  %v2782_v0 = vrot.slane %v2755_v9, 7 }
 0x675   : > { %v2753_v19 = vsel %vm258_vm0, %v2752_v36, %v2735_v53  ;;  %v2795_v51 = vrot.slane %v2755_v9, 5 }
 0x676   : > { %v2804_v31 = vsel %vm425_vm1, %v2773_v44, %v2792_v29  ;;  %v2774_v22 = vsel %vm425_vm1, %v2772_v47, %v2773_v44  ;;  %v2805_v47 = vsel %vm425_vm1, %v2776_v25, %v2793_v58  ;;  %v2779_v4 = vrot.slane %v2753_v19, 7 }
 0x677   : > { %2852 = vrot.lane.b32.xlu1 %v6973_v33, %s5342_s29  ;;  %2820 = vrot.lane.b32.xlu2 %v2804_v31, %s5341_s28  ;;  %v2794_v39 = vrot.slane %v2753_v19, 5  ;;  %v2807_v61 = vsel %vm425_vm1, %v2782_v0, %v2795_v51  ;;  %v2783_v14 = vsel %vm425_vm1, %v2781_v60, %v2782_v0 }
 0x678   : > { %2818 = vrot.lane.b32.xlu0 %v2774_v22, %s5341_s28  ;;  %v2780_v57 = vsel %vm425_vm1, %v2778_v16, %v2779_v4 }
 0x679   : > { %v2806_v50 = vsel %vm425_vm1, %v2779_v4, %v2794_v39 }
 0x67f   : > { %2858 = vrot.lane.b32.xlu1 %v6986_v20, %s5342_s29  ;;  %2826 = vrot.lane.b32.xlu2 %v2805_v47, %s5341_s28 }
 0x680   : > { %2824 = vrot.lane.b32.xlu0 %v2777_v15, %s5341_s28 }
 0x687   : > { %2864 = vrot.lane.b32.xlu1 %v6999_v63, %s5342_s29  ;;  %2832 = vrot.lane.b32.xlu2 %v2806_v50, %s5341_s28 }
 0x688   : > { %2830 = vrot.lane.b32.xlu0 %v2780_v57, %s5341_s28 }
 0x68f   : > { %2870 = vrot.lane.b32.xlu1 %v2803_v46, %s5342_s29  ;;  %2838 = vrot.lane.b32.xlu2 %v2807_v61, %s5341_s28 }
 0x690   : > { %2836 = vrot.lane.b32.xlu0 %v2783_v14, %s5341_s28 }
 0x697   : > { %2888 = vrot.lane.b32.xlu1 %v6973_v33, %s5343_s30  ;;  %2856 = vrot.lane.b32.xlu2 %v2804_v31, %s5342_s29 }
 0x698   : > { %2854 = vrot.lane.b32.xlu0 %v2774_v22, %s5342_s29 }
 0x69f   : > { %2894 = vrot.lane.b32.xlu1 %v6986_v20, %s5343_s30  ;;  %2862 = vrot.lane.b32.xlu2 %v2805_v47, %s5342_s29 }
 0x6a0   : > { %2860 = vrot.lane.b32.xlu0 %v2777_v15, %s5342_s29 }
 0x6a7   : > { %2900 = vrot.lane.b32.xlu1 %v6999_v63, %s5343_s30  ;;  %2868 = vrot.lane.b32.xlu2 %v2806_v50, %s5342_s29 }
 0x6a8   : > { %2866 = vrot.lane.b32.xlu0 %v2780_v57, %s5342_s29 }
 0x6af   : > { %2906 = vrot.lane.b32.xlu1 %v2803_v46, %s5343_s30  ;;  %2874 = vrot.lane.b32.xlu2 %v2807_v61, %s5342_s29 }
 0x6b0   : > { %2872 = vrot.lane.b32.xlu0 %v2783_v14, %s5342_s29 }
 0x6b7   : > { %2892 = vrot.lane.b32.xlu2 %v2804_v31, %s5343_s30 }
 0x6b8   : > { %2890 = vrot.lane.b32.xlu0 %v2774_v22, %s5343_s30 }
 0x6bf   : > { %2898 = vrot.lane.b32.xlu2 %v2805_v47, %s5343_s30 }
 0x6c0   : > { %2896 = vrot.lane.b32.xlu0 %v2777_v15, %s5343_s30 }
 0x6c7   : > { %2904 = vrot.lane.b32.xlu2 %v2806_v50, %s5343_s30 }
 0x6c8   : > { %2902 = vrot.lane.b32.xlu0 %v2780_v57, %s5343_s30 }
 0x6c9   : > { %v2817_v33 = vpop.permute.xlu1 %2816 }
 0x6cf   : > { %2910 = vrot.lane.b32.xlu2 %v2807_v61, %s5343_s30 }
 0x6d0   : > { %2908 = vrot.lane.b32.xlu0 %v2783_v14, %s5343_s30 }
 0x6d1   : > { %v2823_v20 = vpop.permute.xlu1 %2822  ;;  %v7070_v37 = vpop.permute.xlu2 %2820 }
 0x6d9   : > { %v2829_v52 = vpop.permute.xlu1 %2828  ;;  %v7072_v54 = vpop.permute.xlu2 %2826 }
 0x6e1   : > { %v2835_v48 = vpop.permute.xlu1 %2834  ;;  %v7074_v6 = vpop.permute.xlu2 %2832 }
 0x6e9   : > { %v2853_v16 = vpop.permute.xlu1 %2852  ;;  %v7076_v40 = vpop.permute.xlu2 %2838 }
 0x6ea   : > { %v2819_v5 = vpop.permute.xlu0 %2818  ;;  %v2924_v27 = vsel %vm578_vm2, %v2817_v33, %v2853_v16 }
 0x6f1   : > { %v2859_v42 = vpop.permute.xlu1 %2858  ;;  %v7078_v43 = vpop.permute.xlu2 %2856 }
 0x6f2   : > { %v2825_v59 = vpop.permute.xlu0 %2824  ;;  %v2927_v34 = vsel %vm578_vm2, %v2823_v20, %v2859_v42 }
 0x6f9   : > { %v2865_v1 = vpop.permute.xlu1 %2864  ;;  %v7080_v12 = vpop.permute.xlu2 %2862 }
 0x6fa   : > { %v2831_v63 = vpop.permute.xlu0 %2830  ;;  %v2930_v2 = vsel %vm578_vm2, %v2829_v52, %v2865_v1 }
 0x701   : > { %v2871_v32 = vpop.permute.xlu1 %2870  ;;  %v7085_v35 = vpop.permute.xlu2 %2868 }
 0x702   : > { %v7082_v21 = vpop.permute.xlu0 %2836  ;;  %v2933_v62 = vsel %vm578_vm2, %v2835_v48, %v2871_v32 }
 0x709   : > { %v2889_v24 = vpop.permute.xlu1 %2888  ;;  %v2875_v38 = vpop.permute.xlu2 %2874 }
 0x70a   : > { %v7088_v26 = vsel %vm591_vm3, %v2924_v27, %v2889_v24  ;;  %v2855_v60 = vpop.permute.xlu0 %2854 }
 0x70b   : > { %3140 = vrot.lane.b32.xlu2 %v7088_v26, %s5341_s28  ;;  %v2950_v11 = vrot.slane %v7088_v26, 4  ;;  %v2925_v9 = vsel %vm578_vm2, %v2819_v5, %v2855_v60 }
 0x711   : > { %v2895_v56 = vpop.permute.xlu1 %2894  ;;  %v7106_v41 = vpop.permute.xlu2 %2892 }
 0x712   : > { %v7094_v23 = vsel %vm591_vm3, %v2927_v34, %v2895_v56  ;;  %v2861_v13 = vpop.permute.xlu0 %2860  ;;  %v2929_v56 = vsel %vm578_vm2, %v7072_v54, %v7080_v12 }
 0x713   : > { %3144 = vrot.lane.b32.xlu0 %v7094_v23, %s5341_s28  ;;  %v2962_v31 = vrot.slane %v7094_v23, 4  ;;  %v2928_v14 = vsel %vm578_vm2, %v2825_v59, %v2861_v13  ;;  %v3571_v16 = vrot.slane %v7094_v23, 1  ;;  %v2935_v13 = vsel %vm578_vm2, %v7076_v40, %v2875_v38 }
 0x714   : > { %v4206_v38 = vrot.slane %v7088_v26, 2 }
 0x719   : > { %v2901_v46 = vpop.permute.xlu1 %2900  ;;  %v2899_v39 = vpop.permute.xlu2 %2898 }
 0x71a   : > { %v7100_v7 = vsel %vm591_vm3, %v2930_v2, %v2901_v46  ;;  %v2867_v3 = vpop.permute.xlu0 %2866  ;;  %v7179_v2 = vsel %vm591_vm3, %v2929_v56, %v2899_v39 }
 0x71b   : > { %v2948_v55 = vrot.slane %v7100_v7, 4  ;;  %v2951_v45 = vsel %vm258_vm0, %v7100_v7, %v2950_v11  ;;  %v2931_v42 = vsel %vm578_vm2, %v2831_v63, %v2867_v3  ;;  %v3576_v63 = vrot.slane %v7100_v7, 1 }
 0x71c   : > { %v2959_v29 = vperm.slane %v2951_v45, %v5491_v8  ;;  %v4214_v45 = vrot.slane %v7179_v2, 2 }
 0x71d   : > { %v2949_v44 = vsel %vm258_vm0, %v2948_v55, %v7088_v26 }
 0x71e   : > { %v2955_v10 = vperm.slane %v2949_v44, %v5491_v8  ;;  %v2986_v36 = vrot.slane %v2959_v29, 4  ;;  %v4216_v44 = vrot.slane %v7100_v7, 2 }
 0x720   : > { %v2974_v19 = vrot.slane %v2955_v10, 4 }
 0x721   : > { %v2907_v22 = vpop.permute.xlu1 %2906  ;;  %v7143_v33 = vpop.permute.xlu2 %2904 }
 0x722   : > { %v7114_v17 = vsel %vm591_vm3, %v2933_v62, %v2907_v22  ;;  %v2873_v28 = vpop.permute.xlu0 %2872  ;;  %v3566_v62 = vrot.slane %v7088_v26, 1 }
 0x723   : > { %v2960_v30 = vrot.slane %v7114_v17, 4  ;;  %v2963_v25 = vsel %vm258_vm0, %v7114_v17, %v2962_v31  ;;  %v2934_v31 = vsel %vm578_vm2, %v7082_v21, %v2873_v28  ;;  %v4221_v39 = vrot.slane %v7114_v17, 2 }
 0x724   : > { %v2971_v58 = vperm.slane %v2963_v25, %v5491_v8  ;;  %v3581_v25 = vrot.slane %v7114_v17, 1 }
 0x725   : > { %v2961_v53 = vsel %vm258_vm0, %v2960_v30, %v7094_v23 }
 0x726   : > { %v7124_v47 = vsel %vm258_vm0, %v2971_v58, %v2986_v36  ;;  %v2967_v15 = vperm.slane %v2961_v53, %v5491_v8  ;;  %v2984_v4 = vrot.slane %v2971_v58, 4 }
 0x728   : > { %v7128_v49 = vsel %vm258_vm0, %v2967_v15, %v2974_v19  ;;  %v7131_v50 = vsel %vm258_vm0, %v2984_v4, %v2959_v29  ;;  %v2972_v57 = vrot.slane %v2967_v15, 4 }
 0x729   : > { %v2911_v27 = vpop.permute.xlu2 %2910 }
 0x72a   : > { %v2891_v0 = vpop.permute.xlu0 %2890  ;;  %v7135_v51 = vsel %vm258_vm0, %v2972_v57, %v2955_v10  ;;  %v7189_v11 = vsel %vm591_vm3, %v2935_v13, %v2911_v27 }
 0x72b   : > { %v7138_v61 = vsel %vm591_vm3, %v2925_v9, %v2891_v0  ;;  %v4224_v22 = vrot.slane %v7189_v11, 2 }
 0x72c   : > { %3142 = vrot.lane.b32.xlu1 %v7138_v61, %s5341_s28  ;;  %v3006_v59 = vrot.slane %v7138_v61, 4  ;;  %v3567_v40 = vrot.slane %v7138_v61, 1  ;;  %v4207_v29 = vrot.slane %v7138_v61, 2 }
 0x72e   : > { %v7219_v21 = vsel %vm1229_vm5, %v3566_v62, %v3567_v40  ;;  %v7237_v57 = vsel %vm1870_vm4, %v4206_v38, %v4207_v29  ;;  %v4211_v38 = vrot.slane %v7094_v23, 2 }
 0x72f   : > { %v3596_v62 = vrot.slane %v7219_v21, 4 }
 0x732   : > { %v2897_v20 = vpop.permute.xlu0 %2896 }
 0x733   : > { %v7146_v52 = vsel %vm591_vm3, %v2928_v14, %v2897_v20 }
 0x734   : > { %3148 = vrot.lane.b32.xlu1 %v7100_v7, %s5341_s28  ;;  %3146 = vrot.lane.b32.xlu2 %v7146_v52, %s5341_s28  ;;  %v3572_v48 = vrot.slane %v7146_v52, 1  ;;  %v4212_v55 = vrot.slane %v7146_v52, 2  ;;  %v3018_v10 = vrot.slane %v7146_v52, 4 }
 0x736   : > { %v7157_v5 = vsel %vm1229_vm5, %v3571_v16, %v3572_v48  ;;  %v7214_v53 = vsel %vm1870_vm4, %v4212_v55, %v4214_v45 }
 0x737   : > { %v4304_v14 = vrot.slane %v7214_v53, 4  ;;  %v3608_v20 = vrot.slane %v7157_v5, 4 }
 0x73a   : > { %v2903_v1 = vpop.permute.xlu0 %2902 }
 0x73b   : > { %v7162_v32 = vsel %vm591_vm3, %v2931_v42, %v2903_v1 }
 0x73c   : > { %v3004_v24 = vrot.slane %v7162_v32, 4  ;;  %v3007_v60 = vsel %vm258_vm0, %v7162_v32, %v3006_v59  ;;  %3152 = vrot.lane.b32.xlu2 %v7114_v17, %s5341_s28  ;;  %3150 = vrot.lane.b32.xlu0 %v7162_v32, %s5341_s28  ;;  %v3577_v34 = vrot.slane %v7162_v32, 1  ;;  %v4217_v54 = vrot.slane %v7162_v32, 2 }
 0x73d   : > { %v3015_v13 = vperm.slane %v3007_v60, %v5491_v8 }
 0x73e   : > { %v3005_v46 = vsel %vm258_vm0, %v3004_v24, %v7138_v61  ;;  %v7186_v3 = vsel %vm1229_vm5, %v3576_v63, %v3577_v34  ;;  %v7211_v36 = vsel %vm1870_vm4, %v4216_v44, %v4217_v54  ;;  %v4236_v44 = vrot.slane %v7237_v57, 4 }
 0x73f   : > { %v3594_v12 = vrot.slane %v7186_v3, 4  ;;  %v4234_v59 = vrot.slane %v7211_v36, 4 }
 0x741   : > { %v3595_v4 = vsel %vm258_vm0, %v3594_v12, %v7219_v21 }
 0x742   : > { %v2909_v30 = vpop.permute.xlu0 %2908  ;;  %v3601_v1 = vperm.slane %v3595_v4, %v5491_v8  ;;  %v3042_v4 = vrot.slane %v3015_v13, 4 }
 0x743   : > { %v7206_v58 = vsel %vm591_vm3, %v2934_v31, %v2909_v30  ;;  %v3011_v31 = vperm.slane %v3005_v46, %v5491_v8  ;;  %v4237_v46 = vsel %vm258_vm0, %v7211_v36, %v4236_v44 }
 0x744   : > { %v3019_v28 = vsel %vm258_vm0, %v7206_v58, %v3018_v10  ;;  %3358 = vrot.lane.b32.xlu2 %v7094_v23, %s5344_s5  ;;  %3356 = vrot.lane.b32.xlu0 %v7138_v61, %s5344_s5  ;;  %v4222_v15 = vrot.slane %v7206_v58, 2  ;;  %v3582_v19 = vrot.slane %v7206_v58, 1  ;;  %v3016_v12 = vrot.slane %v7206_v58, 4 }
 0x745   : > { %3154 = vrot.lane.b32.xlu1 %v7206_v58, %s5341_s28  ;;  %v3027_v16 = vperm.slane %v3019_v28, %v5491_v8  ;;  %v7272_v10 = vsel %vm1870_vm4, %v4211_v38, %v4212_v55  ;;  %v4235_v23 = vsel %vm258_vm0, %v4234_v59, %v7237_v57  ;;  %v3620_v55 = vrot.slane %v3601_v1, 4 }
 0x746   : > { %v7240_v9 = vsel %vm1870_vm4, %v4222_v15, %v4224_v22  ;;  %v7245_v0 = vsel %vm1229_vm5, %v3581_v25, %v3582_v19  ;;  %v4223_v27 = vsel %vm1870_vm4, %v4221_v39, %v4222_v15  ;;  %v3597_v39 = vsel %vm258_vm0, %v7186_v3, %v3596_v62 }
 0x747   : > { %v4302_v42 = vrot.slane %v7240_v9, 4  ;;  %v3606_v24 = vrot.slane %v7245_v0, 4  ;;  %v7257_v63 = vsel %vm258_vm0, %v7240_v9, %v4304_v14  ;;  %v3609_v56 = vsel %vm258_vm0, %v7245_v0, %v3608_v20 }
 0x748   : > { %v4246_v22 = vrot.slane %v4223_v27, 4  ;;  %v3040_v30 = vrot.slane %v3027_v16, 4  ;;  %v3617_v28 = vperm.slane %v3609_v56, %v5491_v8  ;;  %v3030_v20 = vrot.slane %v3011_v31, 4 }
 0x749   : > { %v7266_v45 = vsel %vm258_vm0, %v4302_v42, %v7214_v53  ;;  %v3607_v60 = vsel %vm258_vm0, %v3606_v24, %v7157_v5  ;;  %v7302_v59 = vsel %vm258_vm0, %v3027_v16, %v3042_v4  ;;  %v4248_v24 = vrot.slane %v7272_v10, 4 }
 0x74a   : > { %v3613_v25 = vperm.slane %v3607_v60, %v5491_v8  ;;  %v7289_v15 = vsel %vm258_vm0, %v3040_v30, %v3015_v13  ;;  %v4241_v56 = vperm.slane %v4235_v23, %v5491_v8  ;;  %v4245_v38 = vperm.slane %v4237_v46, %v5491_v8 }
 0x74b   : > { %v3605_v44 = vperm.slane %v3597_v39, %v5491_v8  ;;  %v3630_v62 = vrot.slane %v3617_v28, 4  ;;  %v4249_v60 = vsel %vm258_vm0, %v4223_v27, %v4248_v24  ;;  %v7460_v61 = vperm.slane %v7124_v47, %v5498_v18 }
 0x74c   : > { %3364 = vrot.lane.b32.xlu2 %v7162_v32, %s5344_s5  ;;  %3362 = vrot.lane.b32.xlu0 %v7100_v7, %s5344_s5  ;;  %v3017_v7 = vsel %vm258_vm0, %v3016_v12, %v7146_v52  ;;  %v7297_v42 = vsel %vm258_vm0, %v3613_v25, %v3620_v55  ;;  %v4260_v23 = vrot.slane %v4241_v56, 4  ;;  %v4257_v46 = vperm.slane %v4249_v60, %v5491_v8 }
 0x74d   : > { %3354 = vrot.lane.b32.xlu1 %v7088_v26, %s5344_s5  ;;  %v3023_v14 = vperm.slane %v3017_v7, %v5491_v8  ;;  %v4247_v26 = vsel %vm258_vm0, %v4246_v22, %v7272_v10  ;;  %v7317_v30 = vsel %vm258_vm0, %v3630_v62, %v3605_v44  ;;  %v4272_v55 = vrot.slane %v4245_v38, 4 }
 0x74e   : > { %v4253_v22 = vperm.slane %v4247_v26, %v5491_v8  ;;  %v3618_v4 = vrot.slane %v3613_v25, 4  ;;  %v3632_v39 = vrot.slane %v3605_v44, 4  ;;  %v4270_v26 = vrot.slane %v4257_v46, 4 }
 0x74f   : > { %v7307_v13 = vsel %vm258_vm0, %v3023_v14, %v3030_v20  ;;  %v3028_v12 = vrot.slane %v3023_v14, 4  ;;  %v7329_v14 = vsel %vm258_vm0, %v4257_v46, %v4272_v55  ;;  %v3047_v47 = vperm.slane %v7289_v15, %v5498_v18 }
 0x750   : > { %v4258_v7 = vrot.slane %v4253_v22, 4  ;;  %v7332_v20 = vsel %vm258_vm0, %v3617_v28, %v3632_v39  ;;  %v7335_v24 = vsel %vm258_vm0, %v3618_v4, %v3601_v1  ;;  %v7344_v25 = vsel %vm258_vm0, %v4270_v26, %v4245_v38 }
 0x751   : > { %v7314_v16 = vsel %vm258_vm0, %v3028_v12, %v3011_v31  ;;  %v7326_v31 = vsel %vm258_vm0, %v4253_v22, %v4260_v23  ;;  %v3584_v28 = vrot.slane %v7189_v11, 1  ;;  %v3056_v23 = vrot.slane %v3047_v47, 4 }
 0x752   : > { %v7338_v12 = vsel %vm258_vm0, %v4258_v7, %v4241_v56  ;;  %v7498_v44 = vperm.slane %v7314_v16, %v5498_v18  ;;  %v3051_v16 = vperm.slane %v7302_v59, %v5498_v18  ;;  %v7521_v26 = vperm.slane %v7135_v51, %v5498_v18 }
 0x753   : > { %v7352_v1 = vsel %vm1229_vm5, %v3582_v19, %v3584_v28  ;;  %v3057_v7 = vsel %vm258_vm0, 0.0, %v3056_v23 }
 0x754   : > { %3368 = vrot.lane.b32.xlu0 %v7206_v58, %s5344_s5  ;;  %4430 = vrot.lane.b32.xlu2 %v4223_v27, %s5341_s28  ;;  %v3052_v46 = vrot.slane %v7498_v44, 4 }
 0x755   : > { %3360 = vrot.lane.b32.xlu1 %v7146_v52, %s5344_s5 }
 0x756   : > { %v3053_v4 = vsel %vm258_vm0, 0.0, %v3052_v46 }
 0x75c   : > { %4644 = vrot.lane.b32.xlu0 %v4223_v27, %s5344_s5  ;;  %4646 = vrot.lane.b32.xlu2 %v7240_v9, %s5344_s5  ;;  %v2932_v27 = vsel %vm578_vm2, %v7074_v6, %v7085_v35  ;;  %v3574_v6 = vrot.slane %v7179_v2, 1 }
 0x75d   : > { %3366 = vrot.lane.b32.xlu1 %v7114_v17, %s5344_s5  ;;  %v2944_v17 = vsel %vm591_vm3, %v2932_v27, %v7143_v33  ;;  %v2926_v33 = vsel %vm578_vm2, %v7070_v37, %v7078_v43  ;;  %vm8925_vm2 = vcmask 293888  }
 0x75e   : > { %v4219_v11 = vrot.slane %v2944_v17, 2  ;;  %v7392_v35 = vsel %vm1229_vm5, %v3572_v48, %v3574_v6  ;;  %v2938_v2 = vsel %vm591_vm3, %v2926_v33, %v7106_v41  ;;  %v3579_v43 = vrot.slane %v2944_v17, 1  ;;  %vm8926_vm3 = vmmov %vm8925_vm2 }
 0x75f   : > { %v4209_v48 = vrot.slane %v2938_v2, 2  ;;  %v3569_v32 = vrot.slane %v2938_v2, 1  ;;  %v3664_v55 = vrot.slane %v7392_v35, 4  ;;  %v2996_v33 = vrot.slane %v7521_v26, 4 }
 0x760   : > { %v7368_v58 = vsel %vm1870_vm4, %v4217_v54, %v4219_v11  ;;  %v7427_v41 = vsel %vm1229_vm5, %v3577_v34, %v3579_v43  ;;  %v3058_v11 = vrot.slane %v3051_v16, 4 }
 0x761   : > { %v7410_v54 = vsel %vm1870_vm4, %v4207_v29, %v4209_v48  ;;  %v7444_v34 = vsel %vm1229_vm5, %v3567_v40, %v3569_v32  ;;  %v2983_v40 = vperm.slane %v7128_v49, %v5498_v18  ;;  %v7479_v49 = vperm.slane %v7307_v13, %v5498_v18 }
 0x762   : > { %v3665_v39 = vsel %vm258_vm0, %v7352_v1, %v3664_v55  ;;  %v3652_v6 = vrot.slane %v7444_v34, 4  ;;  %v4290_v2 = vrot.slane %v7368_v58, 4  ;;  %v7538_v48 = vperm.slane %v7297_v42, %v5498_v18 }
 0x763   : > { %v2998_v13 = vrot.slane %v2983_v40, 4  ;;  %v3673_v27 = vperm.slane %v3665_v39, %v5491_v8  ;;  %v3059_v43 = vsel %vm258_vm0, 0.0, %v3058_v11  ;;  %v3637_v55 = vperm.slane %v7317_v30, %v5498_v18 }
 0x764   : > { %4422 = vrot.lane.b32.xlu2 %v7272_v10, %s5341_s28  ;;  %4006 = vrot.lane.b32.xlu0 %v7352_v1, %s5344_s5  ;;  %v3653_v51 = vsel %vm258_vm0, %v7427_v41, %v3652_v6 }
 0x765   : > { %4432 = vrot.lane.b32.xlu1 %v7240_v9, %s5341_s28  ;;  %v7405_v52 = vpop.permute.xlu2 %3140  ;;  %v3686_v32 = vrot.slane %v3673_v27, 4 }
 0x76c   : > { %4428 = vrot.lane.b32.xlu2 %v7368_v58, %s5341_s28  ;;  %4426 = vrot.lane.b32.xlu0 %v7211_v36, %s5341_s28 }
 0x76d   : > { %4004 = vrot.lane.b32.xlu1 %v7245_v0, %s5344_s5 }
 0x774   : > { %4640 = vrot.lane.b32.xlu2 %v7211_v36, %s5344_s5  ;;  %4638 = vrot.lane.b32.xlu0 %v7214_v53, %s5344_s5 }
 0x775   : > { %4424 = vrot.lane.b32.xlu1 %v7214_v53, %s5341_s28 }
 0x77c   : > { %3798 = vrot.lane.b32.xlu2 %v7352_v1, %s5341_s28  ;;  %3796 = vrot.lane.b32.xlu0 %v7245_v0, %s5341_s28  ;;  %v2991_v0 = vperm.slane %v7131_v50, %v5498_v18  ;;  %v2999_v50 = vsel %vm258_vm0, 0.0, %v2998_v13 }
 0x77d   : > { %4636 = vrot.lane.b32.xlu1 %v7272_v10, %s5344_s5 }
 0x77e   : > { %v3000_v56 = vrot.slane %v2991_v0, 4 }
 0x780   : > { %v3001_v38 = vsel %vm258_vm0, 0.0, %v3000_v56 }
 0x784   : > { %4000 = vrot.lane.b32.xlu2 %v7186_v3, %s5344_s5  ;;  %3998 = vrot.lane.b32.xlu0 %v7392_v35, %s5344_s5 }
 0x785   : > { %4642 = vrot.lane.b32.xlu1 %v7368_v58, %s5344_s5 }
 0x78c   : > { %4420 = vrot.lane.b32.xlu2 %v7410_v54, %s5341_s28  ;;  %4418 = vrot.lane.b32.xlu0 %v7237_v57, %s5341_s28 }
 0x78d   : > { %3996 = vrot.lane.b32.xlu1 %v7157_v5, %s5344_s5 }
 0x78e   : > { %v7418_v37 = vpop.permute.xlu2 %3146 }
 0x794   : > { %3788 = vrot.lane.b32.xlu2 %v7157_v5, %s5341_s28  ;;  %4634 = vrot.lane.b32.xlu0 %v7410_v54, %s5344_s5 }
 0x795   : > { %4002 = vrot.lane.b32.xlu1 %v7427_v41, %s5344_s5 }
 0x796   : > { %v7431_v29 = vpop.permute.xlu2 %3152 }
 0x79c   : > { %3794 = vrot.lane.b32.xlu2 %v7427_v41, %s5341_s28  ;;  %3792 = vrot.lane.b32.xlu0 %v7186_v3, %s5341_s28  ;;  %v7454_v3 = vpop.permute.xlu0 %3144 }
 0x79d   : > { %4632 = vrot.lane.b32.xlu1 %v7237_v57, %s5344_s5 }
 0x79e   : > { %v7439_v5 = vpop.permute.xlu2 %3358  ;;  %v7450_v36 = vpop.permute.xlu1 %3142 }
 0x7a4   : > { %3784 = vrot.lane.b32.xlu2 %v7219_v21, %s5341_s28  ;;  %3994 = vrot.lane.b32.xlu0 %v7444_v34, %s5344_s5 }
 0x7a5   : > { %3790 = vrot.lane.b32.xlu1 %v7392_v35, %s5341_s28 }
 0x7a6   : > { %v7456_v53 = vpop.permute.xlu2 %3364  ;;  %v7473_v9 = vpop.permute.xlu1 %3148 }
 0x7ac   : > { %3081 = vrot.lane.b32.xlu2 %v7460_v61, %s5335_s18  ;;  %3065 = vrot.lane.b32.xlu0 %v2983_v40, %s5337_s26  ;;  %v2997_v40 = vsel %vm258_vm0, 0.0, %v2996_v33  ;;  %v3054_v33 = vrot.slane %v7479_v49, 4 }
 0x7ad   : > { %3992 = vrot.lane.b32.xlu1 %v7219_v21, %s5344_s5 }
 0x7ae   : > { %v7469_v19 = vpop.permute.xlu2 %4430  ;;  %v7471_v57 = vpop.permute.xlu0 %3150 }
 0x7af   : > { %8865 = vst [vmem:[#allocation18_spill] sm:$0xff] %v7469_v19 }
 0x7b4   : > { %3101 = vrot.lane.b32.xlu0 %v3047_v47, %s5336_s25  ;;  %3093 = vrot.lane.b32.xlu2 %v7479_v49, %s5337_s26  ;;  %v3661_v47 = vperm.slane %v3653_v51, %v5491_v8 }
 0x7b5   : > { %3786 = vrot.lane.b32.xlu1 %v7444_v34, %s5341_s28 }
 0x7b6   : > { %v7488_v21 = vpop.permute.xlu2 %4646  ;;  %v7490_v10 = vpop.permute.xlu0 %3356 }
 0x7b7   : > { %8866 = vst [vmem:[#allocation20_spill] sm:$0xff] %v7488_v21  ;;  %v7492_v15 = vpop.permute.xlu1 %3154  ;;  %v3164_v21 = vrot.slane %v7473_v9, 4 }
 0x7bc   : > { %3077 = vrot.lane.b32.xlu0 %v3001_v38, %s5332_s23  ;;  %3069 = vrot.lane.b32.xlu2 %v2999_v50, %s5334_s24  ;;  %v3687_v38 = vsel %vm258_vm0, %v3686_v32, %v3661_v47  ;;  %v3002_v50 = vrot.slane %v7460_v61, 4  ;;  %v3650_v32 = vrot.slane %v7427_v41, 4  ;;  %v4313_v41 = vperm.slane %v7257_v63, %v5491_v8 }
 0x7bd   : > { %3073 = vrot.lane.b32.xlu1 %v2991_v0, %s5336_s25  ;;  %v4291_v0 = vsel %vm258_vm0, %v4290_v2, %v7410_v54  ;;  %v7561_v46 = vperm.slane %v3687_v38, %v5498_v18  ;;  %v3662_v2 = vrot.slane %v7352_v1, 4  ;;  %v7622_v63 = vperm.slane %v7326_v31, %v5498_v18 }
 0x7be   : > { %v7503_v62 = vpop.permute.xlu2 %4422  ;;  %v7505_v60 = vpop.permute.xlu0 %3362  ;;  %v7558_v23 = vperm.slane %v4291_v0, %v5491_v8 }
 0x7bf   : > { %8867 = vst [vmem:[#allocation14_spill] sm:$0xff] %v7503_v62  ;;  %v7507_v22 = vpop.permute.xlu1 %3354  ;;  %v3663_v49 = vsel %vm258_vm0, %v3662_v2, %v7392_v35 }
 0x7c0   : > { %v4316_v61 = vrot.slane %v7558_v23, 4  ;;  %v3669_v38 = vperm.slane %v3663_v49, %v5491_v8 }
 0x7c4   : > { %3105 = vrot.lane.b32.xlu2 %v3057_v7, %s5332_s23  ;;  %3089 = vrot.lane.b32.xlu0 %v3053_v4, %s5338_s27  ;;  %v3003_v7 = vsel %vm258_vm0, 0.0, %v3002_v50  ;;  %v3688_v4 = vrot.slane %v3661_v47, 4  ;;  %v3651_v47 = vsel %vm258_vm0, %v3650_v32, %v7444_v34  ;;  %v4292_v50 = vrot.slane %v7410_v54, 4 }
 0x7c5   : > { %3109 = vrot.lane.b32.xlu1 %v3051_v16, %s5335_s18  ;;  %v7567_v16 = vperm.slane %v7266_v45, %v5491_v8  ;;  %v3641_v34 = vperm.slane %v7332_v20, %v5498_v18  ;;  %v3646_v20 = vrot.slane %v3637_v55, 4 }
 0x7c6   : > { %v7524_v28 = vpop.permute.xlu2 %4428  ;;  %v7526_v59 = vpop.permute.xlu0 %3368  ;;  %v3689_v6 = vsel %vm258_vm0, %v3673_v27, %v3688_v4  ;;  %v4293_v35 = vsel %vm258_vm0, %v7368_v58, %v4292_v50  ;;  %v4326_v4 = vrot.slane %v4313_v41, 4 }
 0x7c7   : > { %8868 = vst [vmem:[#allocation16_spill] sm:$0xff] %v7524_v28  ;;  %v7529_v17 = vpop.permute.xlu1 %3360  ;;  %v4317_v45 = vsel %vm258_vm0, %v7567_v16, %v4316_v61  ;;  %v7618_v61 = vperm.slane %v7329_v14, %v5498_v18  ;;  %v4301_v14 = vperm.slane %v4293_v35, %v5491_v8  ;;  %v3647_v49 = vsel %vm258_vm0, 0.0, %v3646_v20 }
 0x7c8   : > { %v7587_v51 = vperm.slane %v4317_v45, %v5498_v18  ;;  %v3674_v45 = vrot.slane %v3669_v38, 4  ;;  %v7649_v35 = vperm.slane %v7335_v24, %v5498_v18  ;;  %v7665_v24 = vperm.slane %v7344_v25, %v5498_v18 }
 0x7ca   : > { %8875 = vst [vmem:[#allocation23_spill] sm:$0xff] %v7649_v35  ;;  %v4286_v19 = vrot.slane %v7665_v24, 4 }
 0x7cc   : > { %3711 = vrot.lane.b32.xlu2 %v7538_v48, %s5337_s26  ;;  %3113 = vrot.lane.b32.xlu0 %v3059_v43, %s5333_s22  ;;  %v7590_v43 = vperm.slane %v3689_v6, %v5498_v18 }
 0x7cd   : > { %3061 = vrot.lane.b32.xlu1 %v2997_v40, %s5338_s27  ;;  %v3055_v40 = vsel %vm258_vm0, 0.0, %v3054_v33  ;;  %v4327_v33 = vsel %vm258_vm0, %v4326_v4, %v4301_v14 }
 0x7ce   : > { %v7549_v56 = vpop.permute.xlu2 %4640  ;;  %v7551_v42 = vpop.permute.xlu0 %4644  ;;  %8871 = vst [vmem:[#allocation19_spill] sm:$0xff] %v7590_v43 }
 0x7cf   : > { %8869 = vst [vmem:[#allocation17_spill] sm:$0xff] %v7549_v56  ;;  %v7553_v13 = vpop.permute.xlu1 %3366 }
 0x7d0   : > { %8870 = vst [vmem:[#allocation15_spill] sm:$0xff] %v7551_v42 }
 0x7d4   : > { %3747 = vrot.lane.b32.xlu2 %v7561_v46, %s5336_s25  ;;  %3719 = vrot.lane.b32.xlu0 %v3637_v55, %s5336_s25 }
 0x7d5   : > { %3085 = vrot.lane.b32.xlu1 %v3003_v7, %s5333_s22  ;;  %v3657_v7 = vperm.slane %v3651_v47, %v5491_v8 }
 0x7d6   : > { %v7575_v39 = vpop.permute.xlu2 %3798  ;;  %v7577_v11 = vpop.permute.xlu0 %4006 }
 0x7d7   : > { %v7579_v30 = vpop.permute.xlu1 %4432  ;;  %v3676_v58 = vrot.slane %v3657_v7, 4  ;;  %v3675_v32 = vsel %vm258_vm0, %v3674_v45, %v3657_v7  ;;  %v3642_v45 = vrot.slane %v7649_v35, 4 }
 0x7d8   : > { %v7645_v50 = vperm.slane %v3675_v32, %v5498_v18 }
 0x7d9   : > { %v3677_v2 = vsel %vm258_vm0, %v3669_v38, %v3676_v58  ;;  %v3643_v20 = vsel %vm258_vm0, 0.0, %v3642_v45  ;;  %v3648_v45 = vrot.slane %v3641_v34, 4 }
 0x7da   : > { %v3685_v47 = vperm.slane %v3677_v2, %v5498_v18  ;;  %8874 = vst [vmem:[#allocation22_spill] sm:$0xff] %v7645_v50  ;;  %v3698_v4 = vrot.slane %v7645_v50, 4 }
 0x7db   : > { %v3649_v35 = vsel %vm258_vm0, 0.0, %v3648_v45 }
 0x7dc   : > { %4379 = vrot.lane.b32.xlu2 %v7587_v51, %s5337_s26  ;;  %3755 = vrot.lane.b32.xlu0 %v7590_v43, %s5335_s18  ;;  %v3699_v58 = vsel %vm258_vm0, 0.0, %v3698_v4  ;;  %v3700_v45 = vrot.slane %v3685_v47, 4 }
 0x7dd   : > { %3097 = vrot.lane.b32.xlu1 %v3055_v40, %s5334_s24  ;;  %v4333_v40 = vperm.slane %v4327_v33, %v5498_v18  ;;  %v7670_v33 = vperm.slane %v7338_v12, %v5498_v18  ;;  %v4314_v12 = vrot.slane %v7567_v16, 4  ;;  %v3644_v16 = vrot.slane %v7538_v48, 4 }
 0x7de   : > { %v7601_v1 = vpop.permute.xlu2 %4000  ;;  %v7603_v27 = vpop.permute.xlu0 %4426 }
 0x7df   : > { %8872 = vst [vmem:[#allocation13_spill] sm:$0xff] %v7603_v27  ;;  %v7609_v0 = vpop.permute.xlu1 %4004  ;;  %v4282_v4 = vrot.slane %v7670_v33, 4  ;;  %v3645_v62 = vsel %vm258_vm0, 0.0, %v3644_v16  ;;  %v3222_v16 = vrot.slane %v7450_v36, 4 }
 0x7e0   : > { %8877 = vst [vmem:[#allocation25_spill] sm:$0xff] %v7670_v33  ;;  %v3702_v33 = vrot.slane %v7561_v46, 4 }
 0x7e4   : > { %4367 = vrot.lane.b32.xlu2 %v7618_v61, %s5335_s18  ;;  %4351 = vrot.lane.b32.xlu0 %v7622_v63, %s5337_s26 }
 0x7e5   : > { %3727 = vrot.lane.b32.xlu1 %v3641_v34, %s5335_s18  ;;  %v4284_v34 = vrot.slane %v7622_v63, 4  ;;  %v3166_v63 = vrot.slane %v7405_v52, 4 }
 0x7e6   : > { %v7632_v54 = vpop.permute.xlu2 %4420  ;;  %v7634_v31 = vpop.permute.xlu0 %4638 }
 0x7e7   : > { %8873 = vst [vmem:[#allocation21_spill] sm:$0xff] %v7634_v31  ;;  %v7636_v6 = vpop.permute.xlu1 %4424  ;;  %v4285_v48 = vsel %vm258_vm0, 0.0, %v4284_v34  ;;  %v3167_v46 = vsel %vm258_vm0, %v7473_v9, %v3166_v63  ;;  %v3703_v34 = vsel %vm258_vm0, 0.0, %v3702_v33 }
 0x7ec   : > { %3723 = vrot.lane.b32.xlu2 %v3647_v49, %s5332_s23  ;;  %4387 = vrot.lane.b32.xlu0 %v4333_v40, %s5336_s25  ;;  %v4328_v49 = vrot.slane %v4301_v14, 4 }
 0x7ed   : > { %3739 = vrot.lane.b32.xlu1 %v3685_v47, %s5337_s26 }
 0x7ee   : > { %v7654_v55 = vpop.permute.xlu2 %3788  ;;  %v7656_v38 = vpop.permute.xlu0 %3796  ;;  %v4329_v43 = vsel %vm258_vm0, %v4313_v41, %v4328_v49  ;;  %v3176_v49 = vrot.slane %v7431_v29, 4 }
 0x7ef   : > { %v7658_v7 = vpop.permute.xlu1 %4636  ;;  %v3822_v9 = vrot.slane %v7654_v55, 4 }
 0x7f0   : > { %8876 = vst [vmem:[#allocation24_spill] sm:$0xff] %v7658_v7 }
 0x7f4   : > { %3735 = vrot.lane.b32.xlu2 %v3699_v58, %s5338_s27  ;;  %3707 = vrot.lane.b32.xlu0 %v3643_v20, %s5338_s27  ;;  %v4283_v58 = vsel %vm258_vm0, 0.0, %v4282_v4  ;;  %v7685_v20 = vperm.slane %v4329_v43, %v5498_v18  ;;  %v3178_v43 = vrot.slane %v7454_v3, 4 }
 0x7f5   : > { %4359 = vrot.lane.b32.xlu1 %v7665_v24, %s5336_s25 }
 0x7f6   : > { %v7676_v2 = vpop.permute.xlu2 %3794  ;;  %v7678_v32 = vpop.permute.xlu0 %3998  ;;  %v3179_v31 = vsel %vm258_vm0, %v7431_v29, %v3178_v43  ;;  %v4288_v29 = vrot.slane %v7618_v61, 4  ;;  %v4344_v61 = vrot.slane %v7685_v20, 4 }
 0x7f7   : > { %v4643_v25 = vpop.permute.xlu1 %4642 }
 0x7f8   : > { %v4712_v43 = vrot.slane %v4643_v25, 4 }
 0x7fc   : > { %4347 = vrot.lane.b32.xlu2 %v4283_v58, %s5338_s27  ;;  %3731 = vrot.lane.b32.xlu0 %v3649_v35, %s5333_s22  ;;  %v4315_v35 = vsel %vm258_vm0, %v4314_v12, %v7558_v23  ;;  %v4342_v58 = vrot.slane %v4333_v40, 4  ;;  %v3177_v23 = vsel %vm258_vm0, %v3176_v49, %v7454_v3  ;;  %v3701_v40 = vsel %vm258_vm0, 0.0, %v3700_v45 }
 0x7fd   : > { %4395 = vrot.lane.b32.xlu1 %v7685_v20, %s5335_s18  ;;  %v7713_v47 = vperm.slane %v4315_v35, %v5498_v18  ;;  %v7722_v12 = vperm.slane %v3179_v31, %v5491_v8  ;;  %v4340_v3 = vrot.slane %v7587_v51, 4  ;;  %v7734_v31 = vperm.slane %v3177_v23, %v5491_v8 }
 0x7fe   : > { %v7693_v14 = vpop.permute.xlu2 %3784  ;;  %v7695_v41 = vpop.permute.xlu0 %4418  ;;  %v4343_v24 = vsel %vm258_vm0, 0.0, %v4342_v58  ;;  %v3165_v49 = vsel %vm258_vm0, %v3164_v21, %v7405_v52  ;;  %v7739_v45 = vperm.slane %v3167_v46, %v5491_v8  ;;  %v3223_v58 = vsel %vm258_vm0, %v7471_v57, %v3222_v16 }
 0x7ff   : > { %8878 = vst [vmem:[#allocation26_spill] sm:$0xff] %v7695_v41  ;;  %v7700_v4 = vpop.permute.xlu1 %3996  ;;  %v4338_v35 = vrot.slane %v7713_v47, 4  ;;  %v3200_v52 = vrot.slane %v7722_v12, 4  ;;  %v4668_v21 = vrot.slane %v7551_v42, 4  ;;  %v4287_v23 = vsel %vm258_vm0, 0.0, %v4286_v19 }
 0x800   : > { %8879 = vst [vmem:[#allocation27_spill] sm:$0xff] %v7713_v47  ;;  %v4289_v46 = vsel %vm258_vm0, 0.0, %v4288_v29  ;;  %v3823_v16 = vsel %vm258_vm0, %v7656_v38, %v3822_v9  ;;  %v3392_v9 = vrot.slane %v7439_v5, 4 }
 0x801   : > { %v4669_v19 = vsel %vm258_vm0, %v4668_v21, %v7658_v7  ;;  %v3201_v29 = vsel %vm258_vm0, %v3200_v52, %v7739_v45  ;;  %v7785_v21 = vperm.slane %v3823_v16, %v5491_v8  ;;  %v4656_v52 = vrot.slane %v7549_v56, 4 }
 0x802   : > { %v3380_v7 = vrot.slane %v7507_v22, 4 }
 0x803   : > { %v3844_v56 = vrot.slane %v7785_v21, 4 }
 0x804   : > { %4355 = vrot.lane.b32.xlu2 %v4285_v48, %s5334_s24  ;;  %3743 = vrot.lane.b32.xlu0 %v3701_v40, %s5334_s24  ;;  %v3171_v40 = vperm.slane %v3165_v49, %v5491_v8  ;;  %v3188_v49 = vrot.slane %v7734_v31, 4 }
 0x805   : > { %3715 = vrot.lane.b32.xlu1 %v3645_v62, %s5334_s24  ;;  %v3820_v62 = vrot.slane %v7656_v38, 4 }
 0x806   : > { %v7741_v33 = vpop.permute.xlu2 %3081  ;;  %v4635_v51 = vpop.permute.xlu0 %4634 }
 0x807   : > { %v7747_v20 = vpop.permute.xlu1 %4002  ;;  %v7750_v63 = vsel %vm258_vm0, %v4712_v43, %v4635_v51  ;;  %v4714_v48 = vrot.slane %v4635_v51, 4  ;;  %v7763_v43 = vsel %vm258_vm0, 0.0, %v4340_v3  ;;  %v3234_v51 = vrot.slane %v7418_v37, 4 }
 0x808   : > { %8880 = vst [vmem:[#allocation28_spill] sm:$0xff] %v7750_v63  ;;  %v7767_v63 = vperm.slane %v3223_v58, %v5491_v8  ;;  %v3821_v38 = vsel %vm258_vm0, %v3820_v62, %v7654_v55  ;;  %v7778_v3 = vsel %vm258_vm0, 0.0, %v4344_v61  ;;  %v3202_v58 = vrot.slane %v7739_v45, 4 }
 0x809   : > { %v7760_v47 = vsel %vm258_vm0, %v4643_v25, %v4714_v48  ;;  %v4339_v25 = vsel %vm258_vm0, 0.0, %v4338_v35  ;;  %v3235_v48 = vsel %vm258_vm0, %v7492_v15, %v3234_v51  ;;  %v3190_v55 = vrot.slane %v3171_v40, 4 }
 0x80a   : > { %8881 = vst [vmem:[#allocation29_spill] sm:$0xff] %v7760_v47  ;;  %v7790_v35 = vperm.slane %v4669_v19, %v5491_v8  ;;  %v3810_v61 = vrot.slane %v7693_v14, 4  ;;  %v7795_v45 = vperm.slane %v3201_v29, %v5498_v18  ;;  %v3258_v62 = vrot.slane %v7767_v63, 4 }
 0x80b   : > { %v3827_v16 = vperm.slane %v3821_v38, %v5491_v8  ;;  %v3243_v19 = vperm.slane %v3235_v48, %v5491_v8  ;;  %v4084_v47 = vrot.slane %v7577_v11, 4 }
 0x80c   : > { %4391 = vrot.lane.b32.xlu2 %v4343_v24, %s5332_s23  ;;  %4363 = vrot.lane.b32.xlu0 %v4287_v23, %s5332_s23  ;;  %v4086_v24 = vrot.slane %v7678_v32, 4  ;;  %v4680_v41 = vrot.slane %v7790_v35, 4 }
 0x80d   : > { %3751 = vrot.lane.b32.xlu1 %v3703_v34, %s5332_s23  ;;  %v4085_v48 = vsel %vm258_vm0, %v4084_v47, %v7678_v32  ;;  %v3191_v47 = vsel %vm258_vm0, %v7734_v31, %v3190_v55  ;;  %v3381_v55 = vsel %vm258_vm0, %v7505_v60, %v3380_v7  ;;  %v4028_v7 = vrot.slane %v7609_v0, 4 }
 0x80e   : > { %v7801_v23 = vpop.permute.xlu2 %3093  ;;  %v3793_v51 = vpop.permute.xlu0 %3792  ;;  %v4087_v27 = vsel %vm258_vm0, %v7577_v11, %v4086_v24  ;;  %v4091_v11 = vperm.slane %v4085_v48, %v5491_v8  ;;  %v7861_v48 = vperm.slane %v3191_v47, %v5498_v18  ;;  %v3446_v47 = vrot.slane %v7526_v59, 4 }
 0x80f   : > { %v7805_v42 = vpop.permute.xlu1 %4632  ;;  %v3808_v34 = vrot.slane %v3793_v51, 4  ;;  %v3811_v29 = vsel %vm258_vm0, %v3793_v51, %v3810_v61  ;;  %v3832_v51 = vrot.slane %v3827_v16, 4  ;;  %v4095_v31 = vperm.slane %v4087_v27, %v5491_v8 }
 0x810   : > { %8882 = vst [vmem:[#allocation30_spill] sm:$0xff] %v7805_v42  ;;  %v4657_v38 = vsel %vm258_vm0, %v4656_v52, %v7805_v42  ;;  %v7813_v50 = vperm.slane %v3811_v29, %v5491_v8  ;;  %v3434_v42 = vrot.slane %v7456_v53, 4  ;;  %v3393_v27 = vsel %vm258_vm0, %v7553_v13, %v3392_v9 }
 0x811   : > { %v7819_v28 = vperm.slane %v4657_v38, %v5491_v8  ;;  %v3809_v61 = vsel %vm258_vm0, %v3808_v34, %v7693_v14  ;;  %v7839_v14 = vsel %vm258_vm0, %v7722_v12, %v3202_v58  ;;  %v3220_v34 = vrot.slane %v7471_v57, 4 }
 0x812   : > { %v3815_v52 = vperm.slane %v3809_v61, %v5491_v8  ;;  %v7828_v29 = vsel %vm258_vm0, %v3844_v56, %v7813_v50  ;;  %v3259_v56 = vsel %vm258_vm0, %v3243_v19, %v3258_v62  ;;  %v4072_v12 = vrot.slane %v7747_v20, 4 }
 0x813   : > { %v7833_v32 = vsel %vm258_vm0, %v4680_v41, %v7819_v28  ;;  %v7854_v58 = vsel %vm258_vm0, %v3188_v49, %v3171_v40  ;;  %v4096_v61 = vrot.slane %v4091_v11, 4  ;;  %v4108_v9 = vrot.slane %v4095_v31, 4 }
 0x814   : > { %8883 = vst [vmem:[#allocation31_spill] sm:$0xff] %v7833_v32  ;;  %v3834_v24 = vrot.slane %v3815_v52, 4  ;;  %4371 = vrot.lane.b32.xlu2 %v4289_v46, %s5333_s22  ;;  %3289 = vrot.lane.b32.xlu0 %v7795_v45, %s5336_s25  ;;  %v7847_v41 = vsel %vm258_vm0, %v3832_v51, %v3815_v52  ;;  %v3256_v46 = vrot.slane %v3243_v19, 4  ;;  %v7870_v19 = vperm.slane %v3259_v56, %v5498_v18 }
 0x815   : > { %8884 = vst [vmem:[#allocation32_spill] sm:$0xff] %v7847_v41  ;;  %4375 = vrot.lane.b32.xlu1 %v4339_v25, %s5338_s27  ;;  %v4030_v51 = vrot.slane %v7700_v4, 4  ;;  %v4029_v56 = vsel %vm258_vm0, %v4028_v7, %v7700_v4  ;;  %v3401_v32 = vperm.slane %v3393_v27, %v5491_v8 }
 0x816   : > { %v7858_v38 = vpop.permute.xlu2 %3069  ;;  %v3995_v62 = vpop.permute.xlu0 %3994  ;;  %v7864_v57 = vsel %vm258_vm0, %v3827_v16, %v3834_v24  ;;  %v7876_v16 = vperm.slane %v3381_v55, %v5491_v8  ;;  %v3435_v55 = vsel %vm258_vm0, %v3434_v42, %v7490_v10 }
 0x817   : > { %v3791_v25 = vpop.permute.xlu1 %3790  ;;  %v4073_v40 = vsel %vm258_vm0, %v4072_v12, %v3995_v62  ;;  %v4074_v49 = vrot.slane %v3995_v62, 4  ;;  %v4031_v4 = vsel %vm258_vm0, %v7609_v0, %v4030_v51  ;;  %v4035_v0 = vperm.slane %v4029_v56, %v5491_v8 }
 0x818   : > { %v4079_v52 = vperm.slane %v4073_v40, %v5491_v8  ;;  %v7889_v40 = vsel %vm258_vm0, %v3220_v34, %v7450_v36  ;;  %v3232_v34 = vrot.slane %v7492_v15, 4  ;;  %v7915_v27 = vperm.slane %v3435_v55, %v5491_v8 }
 0x819   : > { %v4075_v24 = vsel %vm258_vm0, %v7747_v20, %v4074_v49  ;;  %v3257_v20 = vsel %vm258_vm0, %v3256_v46, %v7767_v63  ;;  %v3436_v63 = vrot.slane %v7490_v10, 4  ;;  %v3416_v46 = vrot.slane %v7876_v16, 4 }
 0x81a   : > { %v4083_v12 = vperm.slane %v4075_v24, %v5491_v8  ;;  %v7885_v62 = vsel %vm258_vm0, %v4096_v61, %v4079_v52  ;;  %v4098_v41 = vrot.slane %v4079_v52, 4  ;;  %v3876_v61 = vrot.slane %v7575_v39, 4 }
 0x81b   : > { %8885 = vst [vmem:[#allocation33_spill] sm:$0xff] %v7885_v62  ;;  %v4039_v51 = vperm.slane %v4031_v4, %v5491_v8  ;;  %v7930_v52 = vperm.slane %v3257_v20, %v5498_v18  ;;  %v3878_v24 = vrot.slane %v3791_v25, 4  ;;  %v3448_v55 = vrot.slane %v7529_v17, 4 }
 0x81c   : > { %v4110_v49 = vrot.slane %v4083_v12, 4  ;;  %3281 = vrot.lane.b32.xlu2 %v7861_v48, %s5337_s26  ;;  %3325 = vrot.lane.b32.xlu0 %v7870_v19, %s5335_s18  ;;  %v7903_v36 = vsel %vm258_vm0, %v4091_v11, %v4098_v41  ;;  %v7906_v42 = vsel %vm258_vm0, %v4108_v9, %v4083_v12  ;;  %v3447_v11 = vsel %vm258_vm0, %v3446_v47, %v7529_v17 }
 0x81d   : > { %8886 = vst [vmem:[#allocation34_spill] sm:$0xff] %v7906_v42  ;;  %4383 = vrot.lane.b32.xlu1 %v7763_v43, %s5334_s24  ;;  %v4016_v41 = vrot.slane %v7601_v1, 4  ;;  %v3417_v9 = vsel %vm258_vm0, %v3401_v32, %v3416_v46  ;;  %v3846_v47 = vrot.slane %v7813_v50, 4  ;;  %v3414_v62 = vrot.slane %v3401_v32, 4 }
 0x81e   : > { %v7920_v7 = vpop.permute.xlu2 %3105  ;;  %v7922_v15 = vpop.permute.xlu0 %3065  ;;  %v7925_v10 = vsel %vm258_vm0, %v4095_v31, %v4110_v49  ;;  %v7937_v31 = vperm.slane %v3447_v11, %v5491_v8  ;;  %v4040_v49 = vrot.slane %v4035_v0, 4  ;;  %v3877_v20 = vsel %vm258_vm0, %v3876_v61, %v3791_v25 }
 0x81f   : > { %v3993_v43 = vpop.permute.xlu1 %3992  ;;  %v7944_v50 = vperm.slane %v3417_v9, %v5498_v18  ;;  %v4052_v42 = vrot.slane %v4039_v51, 4  ;;  %v3460_v32 = vrot.slane %v7915_v27, 4  ;;  %v3879_v25 = vsel %vm258_vm0, %v7575_v39, %v3878_v24 }
 0x820   : > { %v4017_v56 = vsel %vm258_vm0, %v4016_v41, %v3993_v43  ;;  %v4018_v12 = vrot.slane %v3993_v43, 4  ;;  %v3437_v43 = vsel %vm258_vm0, %v7456_v53, %v3436_v63  ;;  %v3883_v61 = vperm.slane %v3877_v20, %v5491_v8 }
 0x821   : > { %v4023_v4 = vperm.slane %v4017_v56, %v5491_v8  ;;  %v3449_v63 = vsel %vm258_vm0, %v7526_v59, %v3448_v55  ;;  %v3864_v24 = vrot.slane %v7676_v2, 4  ;;  %v3461_v59 = vsel %vm258_vm0, %v7937_v31, %v3460_v32 }
 0x822   : > { %v4019_v46 = vsel %vm258_vm0, %v7601_v1, %v4018_v12  ;;  %v7961_v1 = vsel %vm258_vm0, %v7785_v21, %v3846_v47  ;;  %v3211_v47 = vperm.slane %v7839_v14, %v5498_v18  ;;  %v3415_v12 = vsel %vm258_vm0, %v3414_v62, %v7876_v16 }
 0x823   : > { %v4027_v41 = vperm.slane %v4019_v46, %v5491_v8  ;;  %v7948_v17 = vsel %vm258_vm0, %v4040_v49, %v4023_v4  ;;  %v4042_v11 = vrot.slane %v4023_v4, 4  ;;  %8887 = vst [vmem:[#allocation35_spill] sm:$0xff] %v7961_v1  ;;  %v3227_v49 = vperm.slane %v7889_v40, %v5491_v8 }
 0x824   : > { %3317 = vrot.lane.b32.xlu2 %v7930_v52, %s5336_s25  ;;  %3511 = vrot.lane.b32.xlu0 %v7944_v50, %s5335_s18  ;;  %v7996_v14 = vperm.slane %v3437_v43, %v5491_v8  ;;  %v3233_v20 = vsel %vm258_vm0, %v3232_v34, %v7418_v37  ;;  %v3378_v16 = vrot.slane %v7505_v60, 4  ;;  %v3888_v62 = vrot.slane %v3883_v61, 4 }
 0x825   : > { %v4054_v9 = vrot.slane %v4027_v41, 4  ;;  %4399 = vrot.lane.b32.xlu1 %v7778_v3, %s5333_s22  ;;  %v7967_v53 = vsel %vm258_vm0, %v4052_v42, %v4027_v41  ;;  %v7970_v39 = vsel %vm258_vm0, %v4035_v0, %v4042_v11  ;;  %v7983_v3 = vperm.slane %v7854_v58, %v5498_v18 }
 0x826   : > { %v7975_v56 = vpop.permute.xlu2 %3711  ;;  %v7977_v21 = vpop.permute.xlu0 %3101  ;;  %v3887_v42 = vperm.slane %v3879_v25, %v5491_v8  ;;  %v8007_v40 = vperm.slane %v3415_v12, %v5498_v18  ;;  %v8010_v11 = vperm.slane %v3461_v59, %v5498_v18  ;;  %v3239_v34 = vperm.slane %v3233_v20, %v5491_v8 }
 0x827   : > { %v3787_v0 = vpop.permute.xlu1 %3786  ;;  %v7991_v55 = vsel %vm258_vm0, %v4039_v51, %v4054_v9  ;;  %v3457_v51 = vperm.slane %v3449_v63, %v5491_v8  ;;  %v3472_v25 = vrot.slane %v7996_v14, 4 }
 0x828   : > { %v3865_v58 = vsel %vm258_vm0, %v3864_v24, %v3787_v0  ;;  %v3866_v4 = vrot.slane %v3787_v0, 4  ;;  %v3900_v43 = vrot.slane %v3887_v42, 4  ;;  %v3246_v0 = vrot.slane %v3227_v49, 4 }
 0x829   : > { %v3871_v46 = vperm.slane %v3865_v58, %v5491_v8  ;;  %v3379_v58 = vsel %vm258_vm0, %v3378_v16, %v7507_v22  ;;  %v3473_v20 = vsel %vm258_vm0, %v3457_v51, %v3472_v25 }
 0x82a   : > { %v3867_v41 = vsel %vm258_vm0, %v7676_v2, %v3866_v4  ;;  %v3390_v2 = vrot.slane %v7553_v13, 4  ;;  %v3212_v13 = vrot.slane %v7983_v3, 4 }
 0x82b   : > { %v3875_v32 = vperm.slane %v3867_v41, %v5491_v8  ;;  %v8014_v37 = vsel %vm258_vm0, %v3888_v62, %v3871_v46  ;;  %v3890_v60 = vrot.slane %v3871_v46, 4  ;;  %v3385_v41 = vperm.slane %v3379_v58, %v5491_v8 }
 0x82c   : > { %3503 = vrot.lane.b32.xlu2 %v8007_v40, %s5336_s25  ;;  %3523 = vrot.lane.b32.xlu0 %v8010_v11, %s5337_s26  ;;  %v3391_v46 = vsel %vm258_vm0, %v3390_v2, %v7439_v5  ;;  %v3213_v16 = vsel %vm258_vm0, 0.0, %v3212_v13 }
 0x82d   : > { %v3902_v9 = vrot.slane %v3875_v32, 4  ;;  %3297 = vrot.lane.b32.xlu1 %v3211_v47, %s5335_s18  ;;  %v8025_v63 = vsel %vm258_vm0, %v3883_v61, %v3890_v60  ;;  %v8028_v24 = vsel %vm258_vm0, %v3900_v43, %v3875_v32  ;;  %v3247_v61 = vsel %vm258_vm0, %v3239_v34, %v3246_v0 }
 0x82e   : > { %v8030_v12 = vpop.permute.xlu2 %3747  ;;  %v3078_v59 = vpop.permute.xlu0 %3077  ;;  %v8044_v43 = vperm.slane %v3473_v20, %v5498_v18  ;;  %v3255_v22 = vperm.slane %v3247_v61, %v5498_v18  ;;  %v3244_v32 = vrot.slane %v3239_v34, 4  ;;  %v3397_v60 = vperm.slane %v3391_v46, %v5491_v8 }
 0x82f   : > { %v3074_v4 = vpop.permute.xlu1 %3073  ;;  %v8037_v62 = vsel %vm258_vm0, %v3887_v42, %v3902_v9  ;;  %v3404_v5 = vrot.slane %v3385_v41, 4  ;;  %v3216_v9 = vrot.slane %v7795_v45, 4  ;;  %v3218_v0 = vrot.slane %v3211_v47, 4 }
 0x830   : > { %8888 = vst [vmem:[#allocation36_spill] sm:$0xff] %v8037_v62  ;;  %v3245_v34 = vsel %vm258_vm0, %v3244_v32, %v3227_v49  ;;  %v3402_v1 = vrot.slane %v3397_v60, 4 }
 0x831   : > { %v3405_v58 = vsel %vm258_vm0, %v3397_v60, %v3404_v5  ;;  %v3217_v13 = vsel %vm258_vm0, 0.0, %v3216_v9  ;;  %v3219_v61 = vsel %vm258_vm0, 0.0, %v3218_v0  ;;  %v8062_v46 = vperm.slane %v3245_v34, %v5498_v18 }
 0x832   : > { %v3413_v20 = vperm.slane %v3405_v58, %v5498_v18  ;;  %v3270_v5 = vrot.slane %v3255_v22, 4 }
 0x833   : > { %v3268_v32 = vrot.slane %v8062_v46, 4 }
 0x834   : > { %3539 = vrot.lane.b32.xlu2 %v8044_v43, %s5335_s18  ;;  %3277 = vrot.lane.b32.xlu0 %v3213_v16, %s5338_s27  ;;  %v3470_v16 = vrot.slane %v3457_v51, 4 }
 0x835   : > { %3309 = vrot.lane.b32.xlu1 %v3255_v22, %s5337_s26  ;;  %v3269_v34 = vsel %vm258_vm0, 0.0, %v3268_v32  ;;  %v3214_v32 = vrot.slane %v7861_v48, 4 }
 0x836   : > { %v8053_v42 = vpop.permute.xlu2 %4379  ;;  %v3090_v25 = vpop.permute.xlu0 %3089  ;;  %v3471_v0 = vsel %vm258_vm0, %v3470_v16, %v7996_v14 }
 0x837   : > { %v3110_v2 = vpop.permute.xlu1 %3109 }
 0x83c   : > { %3293 = vrot.lane.b32.xlu2 %v3217_v13, %s5332_s23  ;;  %3301 = vrot.lane.b32.xlu0 %v3219_v61, %s5333_s22  ;;  %v3477_v13 = vperm.slane %v3471_v0, %v5498_v18  ;;  %v3271_v61 = vsel %vm258_vm0, 0.0, %v3270_v5  ;;  %v3403_v5 = vsel %vm258_vm0, %v3402_v1, %v3385_v41 }
 0x83d   : > { %3495 = vrot.lane.b32.xlu1 %v3413_v20, %s5337_s26  ;;  %v8099_v0 = vperm.slane %v3403_v5, %v5498_v18 }
 0x83e   : > { %v8067_v45 = vpop.permute.xlu2 %4367  ;;  %v3114_v47 = vpop.permute.xlu0 %3113 }
 0x83f   : > { %v3062_v49 = vpop.permute.xlu1 %3061  ;;  %8889 = vst [vmem:[#allocation37_spill] sm:$0xff] %v8099_v0 }
 0x840   : > { %v3116_v9 = vsel %vm772_vm6, %v7521_v26, %v3062_v49  ;;  %v3274_v49 = vrot.slane %v7870_v19, 4  ;;  %v3215_v19 = vsel %vm258_vm0, 0.0, %v3214_v32 }
 0x841   : > { %v3117_v51 = vsel %vm774_vm7, %v3116_v9, %v7922_v15 }
 0x842   : > { %v3118_v58 = vsel %vm776_vm8, %v3117_v51, %v7858_v38  ;;  %v3426_v51 = vrot.slane %v8099_v0, 4 }
 0x843   : > { %v3119_v22 = vsel %vm778_vm9, %v3118_v58, %v3074_v4  ;;  %v3428_v4 = vrot.slane %v3413_v20, 4  ;;  %v3486_v58 = vrot.slane %v3477_v13, 4 }
 0x844   : > { %3305 = vrot.lane.b32.xlu2 %v3269_v34, %s5338_s27  ;;  %3313 = vrot.lane.b32.xlu0 %v3271_v61, %s5334_s24  ;;  %v3120_v26 = vsel %vm780_vm10, %v3119_v22, %v3078_v59  ;;  %v3275_v59 = vsel %vm258_vm0, 0.0, %v3274_v49  ;;  %v3272_v34 = vrot.slane %v7930_v52, 4 }
 0x845   : > { %3531 = vrot.lane.b32.xlu1 %v3477_v13, %s5336_s25  ;;  %v3121_v16 = vsel %vm782_vm11, %v3120_v26, %v7741_v33  ;;  %v3429_v9 = vsel %vm258_vm0, 0.0, %v3428_v4  ;;  %v3123_v33 = vsel %vm772_vm6, %v7498_v44, %v3090_v25  ;;  %v4512_v44 = vrot.slane %v7636_v6, 4 }
 0x846   : > { %v8086_v15 = vpop.permute.xlu2 %3723  ;;  %v8088_v38 = vpop.permute.xlu0 %3719  ;;  %v3124_v20 = vsel %vm774_vm7, %v3123_v33, %v7801_v23  ;;  %v4682_v26 = vrot.slane %v7819_v28, 4  ;;  %v3427_v23 = vsel %vm258_vm0, 0.0, %v3426_v51  ;;  %v3487_v13 = vsel %vm258_vm0, 0.0, %v3486_v58  ;;  %v8891_v33 = vld [vmem:[#allocation16_spill] sm:$0xff]  ;;  %v8892_v51 = vld [vmem:[#allocation26_spill] sm:$0xff] }
 0x847   : > { %v3086_v14 = vpop.permute.xlu1 %3085  ;;  %v3273_v52 = vsel %vm258_vm0, 0.0, %v3272_v34  ;;  %v4500_v28 = vrot.slane %v7632_v54, 4 }
 0x848   : > { %v3122_v60 = vsel %vm784_vm12, %v3121_v16, %v3086_v14  ;;  %v4513_v16 = vsel %vm258_vm0, %v7579_v30, %v4512_v44  ;;  %v4683_v32 = vsel %vm258_vm0, %v7790_v35, %v4682_v26 }
 0x849   : > { %3130 = vst [vmem:[#allocation2 + $0x30] sm:$0xf] %v3122_v60  ;;  %v8137_v4 = vperm.slane %v4513_v16, %v5491_v8  ;;  %v3432_v60 = vrot.slane %v7944_v50, 4 }
 0x84b   : > { %v3433_v50 = vsel %vm258_vm0, 0.0, %v3432_v60  ;;  %v8897_v60 = vld [vmem:[#allocation14_spill] sm:$0xff] }
 0x84c   : > { %3329 = vrot.lane.b32.xlu2 %v3275_v59, %s5333_s22  ;;  %3499 = vrot.lane.b32.xlu0 %v3429_v9, %s5334_s24  ;;  %v8890_v59 = vld [vmem:[#allocation13_spill] sm:$0xff] }
 0x84d   : > { %3285 = vrot.lane.b32.xlu1 %v3215_v19, %s5334_s24  ;;  %v4442_v9 = vrot.slane %v8890_v59, 4  ;;  %v4501_v19 = vsel %vm258_vm0, %v8891_v33, %v4500_v28 }
 0x84e   : > { %v3736_v48 = vpop.permute.xlu2 %3735  ;;  %v8107_v1 = vpop.permute.xlu0 %3755  ;;  %v8165_v58 = vperm.slane %v4501_v19, %v5491_v8 }
 0x84f   : > { %v3098_v41 = vpop.permute.xlu1 %3097  ;;  %v4443_v35 = vsel %vm258_vm0, %v4442_v9, %v8892_v51  ;;  %v8899_v9 = vld [vmem:[#allocation17_spill] sm:$0xff] }
 0x850   : > { %v3125_v25 = vsel %vm776_vm8, %v3124_v20, %v3098_v41  ;;  %v8151_v41 = vperm.slane %v4683_v32, %v5498_v18  ;;  %v4534_v20 = vrot.slane %v8137_v4, 4  ;;  %v8173_v34 = vperm.slane %v4443_v35, %v5491_v8  ;;  %v8900_v35 = vld [vmem:[#allocation24_spill] sm:$0xff] }
 0x851   : > { %v3126_v61 = vsel %vm778_vm9, %v3125_v25, %v7977_v21 }
 0x852   : > { %v3127_v22 = vsel %vm780_vm10, %v3126_v61, %v7920_v7  ;;  %v3458_v7 = vrot.slane %v7937_v31, 4  ;;  %v3430_v31 = vrot.slane %v8007_v40, 4  ;;  %v8894_v61 = vld [vmem:[#allocation22_spill] sm:$0xff] }
 0x853   : > { %v3128_v14 = vsel %vm782_vm11, %v3127_v22, %v3110_v2  ;;  %v3769_v22 = vsel %vm772_vm6, %v8894_v61, %v3736_v48  ;;  %v4498_v48 = vrot.slane %v8891_v33, 4 }
 0x854   : > { %v3129_v49 = vsel %vm784_vm12, %v3128_v14, %v3114_v47  ;;  %3491 = vrot.lane.b32.xlu2 %v3427_v23, %s5338_s27  ;;  %3535 = vrot.lane.b32.xlu0 %v3487_v13, %s5332_s23  ;;  %v3459_v5 = vsel %vm258_vm0, %v3458_v7, %v7915_v27  ;;  %v3431_v40 = vsel %vm258_vm0, 0.0, %v3430_v31  ;;  %v3484_v14 = vrot.slane %v8010_v11, 4  ;;  %v8895_v13 = vld [vmem:[#allocation18_spill] sm:$0xff] }
 0x855   : > { %3131 = vst [vmem:[#allocation2] sm:$0xf] %v3129_v49  ;;  %3321 = vrot.lane.b32.xlu1 %v3273_v52, %s5332_s23  ;;  %v8162_v27 = vperm.slane %v3459_v5, %v5498_v18  ;;  %v4535_v23 = vsel %vm258_vm0, %v4534_v20, %v8165_v58  ;;  %v4454_v16 = vrot.slane %v8895_v13, 4  ;;  %v8896_v49 = vld [vmem:[#allocation30_spill] sm:$0xff]  ;;  %v4468_v11 = vrot.slane %v8173_v34, 4 }
 0x856   : > { %v8132_v21 = vpop.permute.xlu2 %4347  ;;  %v8134_v2 = vpop.permute.xlu0 %4351  ;;  %v4658_v52 = vrot.slane %v8896_v49, 4  ;;  %v8187_v31 = vperm.slane %v4535_v23, %v5498_v18  ;;  %v3485_v5 = vsel %vm258_vm0, 0.0, %v3484_v14  ;;  %v4499_v33 = vsel %vm258_vm0, %v4498_v48, %v7632_v54  ;;  %v8902_v54 = vld [vmem:[#allocation20_spill] sm:$0xff] }
 0x857   : > { %v8139_v47 = vpop.permute.xlu1 %3727  ;;  %8893 = vst [vmem:[#allocation13_spill] sm:$0xff] %v8162_v27  ;;  %v3482_v28 = vrot.slane %v8162_v27, 4  ;;  %v4455_v32 = vsel %vm258_vm0, %v4454_v16, %v8897_v60  ;;  %v4510_v48 = vrot.slane %v7579_v30, 4 }
 0x858   : > { %8898 = vst [vmem:[#allocation16_spill] sm:$0xff] %v8187_v31  ;;  %v4659_v19 = vsel %vm258_vm0, %v8899_v9, %v4658_v52  ;;  %v4724_v52 = vrot.slane %v8902_v54, 4 }
 0x859   : > { %v3483_v20 = vsel %vm258_vm0, 0.0, %v3482_v28  ;;  %v8212_v23 = vperm.slane %v4659_v19, %v5491_v8  ;;  %v8220_v28 = vperm.slane %v4499_v33, %v5491_v8  ;;  %v4511_v33 = vsel %vm258_vm0, %v4510_v48, %v7636_v6 }
 0x85a   : > { %v8251_v6 = vperm.slane %v4511_v33, %v5491_v8  ;;  %v4456_v33 = vrot.slane %v8897_v60, 4 }
 0x85b   : > { %v4694_v30 = vrot.slane %v8212_v23, 4 }
 0x85c   : > { %3515 = vrot.lane.b32.xlu2 %v3433_v50, %s5333_s22  ;;  %4773 = vrot.lane.b32.xlu0 %v8151_v41, %s5337_s26  ;;  %v8199_v50 = vperm.slane %v4455_v32, %v5491_v8  ;;  %v3488_v32 = vrot.slane %v8044_v43, 4 }
 0x85d   : > { %3507 = vrot.lane.b32.xlu1 %v3431_v40, %s5332_s23  ;;  %v4670_v40 = vrot.slane %v8900_v35, 4  ;;  %v8230_v35 = vperm.slane %v7967_v53, %v5498_v18 }
 0x85e   : > { %v8168_v44 = vpop.permute.xlu2 %4355  ;;  %v8170_v25 = vpop.permute.xlu0 %4387  ;;  %v4469_v49 = vsel %vm258_vm0, %v8199_v50, %v4468_v11 }
 0x85f   : > { %v3740_v26 = vpop.permute.xlu1 %3739  ;;  %8905 = vst [vmem:[#allocation26_spill] sm:$0xff] %v8230_v35  ;;  %v8233_v11 = vperm.slane %v4469_v49, %v5498_v18 }
 0x860   : > { %v3770_v7 = vsel %vm774_vm7, %v3769_v22, %v3740_v26  ;;  %v8901_v26 = vld [vmem:[#allocation28_spill] sm:$0xff] }
 0x861   : > { %v8209_v14 = vperm.slane %v8901_v26, %v5491_v8  ;;  %v4524_v26 = vrot.slane %v8220_v28, 4 }
 0x863   : > { %v4738_v43 = vrot.slane %v8209_v14, 4 }
 0x864   : > { %3527 = vrot.lane.b32.xlu2 %v3485_v5, %s5334_s24  ;;  %4595 = vrot.lane.b32.xlu0 %v8187_v31, %s5336_s25  ;;  %v8903_v5 = vld [vmem:[#allocation21_spill] sm:$0xff] }
 0x865   : > { %3519 = vrot.lane.b32.xlu1 %v3483_v20, %s5338_s27  ;;  %v4725_v9 = vsel %vm258_vm0, %v4724_v52, %v8903_v5  ;;  %v8904_v20 = vld [vmem:[#allocation15_spill] sm:$0xff]  ;;  %v3489_v52 = vsel %vm258_vm0, 0.0, %v3488_v32 }
 0x866   : > { %v8205_v61 = vpop.permute.xlu2 %4391  ;;  %v3708_v22 = vpop.permute.xlu0 %3707  ;;  %v4671_v19 = vsel %vm258_vm0, %v8904_v20, %v4670_v40  ;;  %v8246_v53 = vperm.slane %v4725_v9, %v5491_v8  ;;  %v4525_v9 = vsel %vm258_vm0, %v8251_v6, %v4524_v26  ;;  %v4457_v26 = vsel %vm258_vm0, %v8895_v13, %v4456_v33 }
 0x867   : > { %v8214_v16 = vpop.permute.xlu1 %4359  ;;  %v4679_v40 = vperm.slane %v4671_v19, %v5491_v8  ;;  %v8295_v13 = vperm.slane %v4457_v26, %v5491_v8  ;;  %v4726_v33 = vrot.slane %v8903_v5, 4 }
 0x868   : > { %v4739_v62 = vsel %vm258_vm0, %v8246_v53, %v4738_v43  ;;  %v4444_v43 = vrot.slane %v8892_v51, 4 }
 0x869   : > { %v4695_v32 = vsel %vm258_vm0, %v4679_v40, %v4694_v30  ;;  %v8264_v19 = vperm.slane %v4739_v62, %v5498_v18 }
 0x86a   : > { %v8261_v27 = vperm.slane %v4695_v32, %v5498_v18  ;;  %v4445_v51 = vsel %vm258_vm0, %v8890_v59, %v4444_v43  ;;  %v8305_v59 = vperm.slane %v7828_v29, %v5498_v18  ;;  %v4692_v29 = vrot.slane %v4679_v40, 4 }
 0x86b   : > { %v4727_v40 = vsel %vm258_vm0, %v8902_v54, %v4726_v33 }
 0x86c   : > { %4141 = vrot.lane.b32.xlu0 %v8230_v35, %s5336_s25  ;;  %4559 = vrot.lane.b32.xlu2 %v8233_v11, %s5337_s26  ;;  %8906 = vst [vmem:[#allocation22_spill] sm:$0xff] %v8261_v27  ;;  %v8907_v35 = vld [vmem:[#allocation23_spill] sm:$0xff] }
 0x86d   : > { %3543 = vrot.lane.b32.xlu1 %v3489_v52, %s5333_s22  ;;  %v8268_v52 = vperm.slane %v4525_v9, %v5498_v18  ;;  %v3762_v30 = vsel %vm772_vm6, %v8907_v35, %v3708_v22 }
 0x86e   : > { %v4372_v49 = vpop.permute.xlu2 %4371  ;;  %v3732_v48 = vpop.permute.xlu0 %3731  ;;  %v3763_v22 = vsel %vm774_vm7, %v3762_v30, %v7975_v56 }
 0x86f   : > { %v8253_v20 = vpop.permute.xlu1 %4395 }
 0x874   : > { %4789 = vrot.lane.b32.xlu0 %v8261_v27, %s5335_s18  ;;  %4801 = vrot.lane.b32.xlu2 %v8264_v19, %s5337_s26  ;;  %v8908_v27 = vld [vmem:[#allocation25_spill] sm:$0xff] }
 0x875   : > { %4587 = vrot.lane.b32.xlu1 %v8268_v52, %s5337_s26  ;;  %v4402_v0 = vsel %vm772_vm6, %v8908_v27, %v8132_v21  ;;  %v8315_v27 = vperm.slane %v4445_v51, %v5491_v8 }
 0x876   : > { %v8279_v62 = vpop.permute.xlu2 %3281  ;;  %v3744_v60 = vpop.permute.xlu0 %3743 }
 0x877   : > { %v3716_v32 = vpop.permute.xlu1 %3715  ;;  %v3771_v35 = vsel %vm776_vm8, %v3770_v7, %v3744_v60  ;;  %v8301_v7 = vperm.slane %v7970_v39, %v5498_v18  ;;  %v4403_v39 = vsel %vm774_vm7, %v4402_v0, %v8134_v2  ;;  %v4478_v0 = vrot.slane %v8295_v13, 4 }
 0x878   : > { %v3764_v9 = vsel %vm776_vm8, %v3763_v22, %v3716_v32  ;;  %v8354_v22 = vperm.slane %v4727_v40, %v5491_v8 }
 0x879   : > { %v3765_v31 = vsel %vm778_vm9, %v3764_v9, %v8088_v38  ;;  %v8312_v38 = vperm.slane %v7903_v36, %v5498_v18  ;;  %v4479_v54 = vsel %vm258_vm0, %v4478_v0, %v8315_v27 }
 0x87a   : > { %v3766_v56 = vsel %vm780_vm10, %v3765_v31, %v8086_v15  ;;  %v4466_v31 = vrot.slane %v8199_v50, 4  ;;  %v4693_v50 = vsel %vm258_vm0, %v4692_v29, %v8212_v23  ;;  %v8361_v23 = vperm.slane %v7925_v10, %v5498_v18 }
 0x87b   : > { %v3767_v21 = vsel %vm782_vm11, %v3766_v56, %v8139_v47  ;;  %v4404_v47 = vsel %vm776_vm8, %v4403_v39, %v8168_v44  ;;  %v3772_v44 = vsel %vm778_vm9, %v3771_v35, %v8030_v12  ;;  %v4736_v10 = vrot.slane %v8246_v53, 4 }
 0x87c   : > { %v3768_v15 = vsel %vm784_vm12, %v3767_v21, %v3732_v48  ;;  %4133 = vrot.lane.b32.xlu2 %v8301_v7, %s5337_s26  ;;  %3933 = vrot.lane.b32.xlu0 %v8305_v59, %s5336_s25  ;;  %v4405_v2 = vsel %vm778_vm9, %v4404_v47, %v8214_v16  ;;  %v4467_v60 = vsel %vm258_vm0, %v4466_v31, %v8173_v34  ;;  %v4748_v9 = vrot.slane %v8354_v22, 4 }
 0x87d   : > { %v3778_v36 = vrot.slane %v3768_v15, 4  ;;  %4161 = vrot.lane.b32.xlu1 %v8312_v38, %s5337_s26  ;;  %v8357_v34 = vperm.slane %v4693_v50, %v5498_v18  ;;  %v4737_v21 = vsel %vm258_vm0, %v4736_v10, %v8209_v14  ;;  %v8389_v15 = vperm.slane %v7864_v57, %v5498_v18 }
 0x87e   : > { %v8332_v5 = vpop.permute.xlu2 %3317  ;;  %v4364_v48 = vpop.permute.xlu0 %4363  ;;  %v8396_v47 = vperm.slane %v4737_v21, %v5498_v18  ;;  %v4480_v50 = vrot.slane %v8315_v27, 4 }
 0x87f   : > { %3782 = vst [vmem:[#allocation2 + $0x18] sm:$0xf0] %v3778_v36  ;;  %v3752_v30 = vpop.permute.xlu1 %3751  ;;  %v4406_v43 = vsel %vm780_vm10, %v4405_v2, %v4364_v48  ;;  %v8910_v36 = vld [vmem:[#allocation27_spill] sm:$0xff] }
 0x880   : > { %v3773_v16 = vsel %vm780_vm10, %v3772_v44, %v3752_v30  ;;  %v4407_v26 = vsel %vm782_vm11, %v4406_v43, %v8067_v45  ;;  %v8364_v45 = vperm.slane %v4479_v54, %v5498_v18  ;;  %v4760_v48 = vrot.slane %v8396_v47, 4  ;;  %v8911_v44 = vld [vmem:[#allocation34_spill] sm:$0xff] }
 0x881   : > { %v4408_v32 = vsel %vm784_vm12, %v4407_v26, %v4372_v49  ;;  %v8351_v12 = vsel %vm782_vm11, %v3773_v16, %v8107_v1  ;;  %v8367_v49 = vperm.slane %v4467_v60, %v5498_v18  ;;  %v8909_v1 = vld [vmem:[#allocation29_spill] sm:$0xff]  ;;  %v8417_v43 = vperm.slane %v8911_v44, %v5498_v18 }
 0x882   : > { %4416 = vst [vmem:[#allocation2 + $0x8] sm:$0xf] %v4408_v32  ;;  %v4723_v35 = vperm.slane %v8909_v1, %v5491_v8  ;;  %v4761_v60 = vsel %vm258_vm0, 0.0, %v4760_v48  ;;  %v8423_v16 = vperm.slane %v8025_v63, %v5498_v18  ;;  %v4536_v54 = vrot.slane %v8165_v58, 4 }
 0x883   : > { %v4490_v8 = vrot.slane %v8367_v49, 4  ;;  %v4481_v58 = vsel %vm258_vm0, %v8295_v13, %v4480_v50  ;;  %v8496_v50 = vperm.slane %v8028_v24, %v5498_v18  ;;  %v8512_v24 = vperm.slane %v7948_v17, %v5498_v18 }
 0x884   : > { %4781 = vrot.lane.b32.xlu2 %v8357_v34, %s5336_s25  ;;  %4177 = vrot.lane.b32.xlu0 %v8361_v23, %s5335_s18  ;;  %v4749_v39 = vsel %vm258_vm0, %v4748_v9, %v4723_v35 }
 0x885   : > { %4567 = vrot.lane.b32.xlu1 %v8364_v45, %s5336_s25  ;;  %v4491_v53 = vsel %vm258_vm0, 0.0, %v4490_v8  ;;  %v8393_v29 = vperm.slane %v4749_v39, %v5498_v18  ;;  %v4750_v8 = vrot.slane %v4723_v35, 4 }
 0x886   : > { %v8379_v51 = vpop.permute.xlu2 %3503  ;;  %v8381_v56 = vpop.permute.xlu0 %3289 }
 0x887   : > { %v4376_v33 = vpop.permute.xlu1 %4375  ;;  %v4751_v35 = vsel %vm258_vm0, %v8354_v22, %v4750_v8  ;;  %v8913_v22 = vld [vmem:[#allocation31_spill] sm:$0xff] }
 0x888   : > { %v4409_v31 = vsel %vm772_vm6, %v8910_v36, %v4376_v33  ;;  %v8450_v33 = vperm.slane %v4481_v58, %v5498_v18  ;;  %v8471_v36 = vperm.slane %v4751_v35, %v5498_v18  ;;  %v8484_v48 = vperm.slane %v8913_v22, %v5498_v18 }
 0x889   : > { %v4410_v0 = vsel %vm774_vm7, %v4409_v31, %v8053_v42  ;;  %v8912_v42 = vld [vmem:[#allocation33_spill] sm:$0xff]  ;;  %v8475_v31 = vperm.slane %v7991_v55, %v5498_v18  ;;  %v4706_v22 = vrot.slane %v8151_v41, 4 }
 0x88a   : > { %v8427_v26 = vperm.slane %v8912_v42, %v5498_v18 }
 0x88c   : > { %3925 = vrot.lane.b32.xlu2 %v8389_v15, %s5337_s26  ;;  %4555 = vrot.lane.b32.xlu0 %v4491_v53, %s5338_s27  ;;  %v4120_v10 = vrot.slane %v8427_v26, 4  ;;  %v4492_v53 = vrot.slane %v8233_v11, 4 }
 0x88d   : > { %4809 = vrot.lane.b32.xlu1 %v8393_v29, %s5336_s25 }
 0x88e   : > { %v8405_v57 = vpop.permute.xlu2 %3539  ;;  %v8407_v14 = vpop.permute.xlu0 %3325 }
 0x88f   : > { %v4384_v2 = vpop.permute.xlu1 %4383 }
 0x890   : > { %v4411_v40 = vsel %vm776_vm8, %v4410_v0, %v4384_v2  ;;  %v4493_v0 = vsel %vm258_vm0, 0.0, %v4492_v53  ;;  %v4522_v2 = vrot.slane %v8251_v6, 4  ;;  %v4704_v6 = vrot.slane %v8484_v48, 4 }
 0x891   : > { %v4412_v30 = vsel %vm778_vm9, %v4411_v40, %v8170_v25 }
 0x892   : > { %v4413_v25 = vsel %vm780_vm10, %v4412_v30, %v8205_v61  ;;  %v4537_v61 = vsel %vm258_vm0, %v8137_v4, %v4536_v54  ;;  %v4762_v30 = vrot.slane %v8264_v19, 4  ;;  %v4523_v44 = vsel %vm258_vm0, %v4522_v2, %v8220_v28  ;;  %v8914_v54 = vld [vmem:[#allocation32_spill] sm:$0xff] }
 0x893   : > { %v4414_v1 = vsel %vm782_vm11, %v4413_v25, %v8253_v20  ;;  %v8453_v21 = vperm.slane %v4537_v61, %v5498_v18  ;;  %v4121_v20 = vsel %vm258_vm0, 0.0, %v4120_v10  ;;  %v8500_v42 = vperm.slane %v4523_v44, %v5498_v18 }
 0x894   : > { %4797 = vrot.lane.b32.xlu0 %v4761_v60, %s5338_s27  ;;  %4169 = vrot.lane.b32.xlu2 %v8417_v43, %s5336_s25  ;;  %v4763_v60 = vsel %vm258_vm0, 0.0, %v4762_v30  ;;  %v8504_v25 = vperm.slane %v8914_v54, %v5498_v18  ;;  %v4705_v19 = vsel %vm258_vm0, 0.0, %v4704_v6  ;;  %v4122_v2 = vrot.slane %v8312_v38, 4 }
 0x895   : > { %3953 = vrot.lane.b32.xlu1 %v8423_v16, %s5337_s26  ;;  %v4546_v58 = vrot.slane %v8500_v42, 4  ;;  %v8535_v44 = vperm.slane %v8014_v37, %v5498_v18  ;;  %v4707_v54 = vsel %vm258_vm0, 0.0, %v4706_v22  ;;  %v8916_v22 = vld [vmem:[#allocation37_spill] sm:$0xff] }
 0x896   : > { %v8437_v27 = vpop.permute.xlu2 %3293  ;;  %v8439_v63 = vpop.permute.xlu0 %3511  ;;  %v3856_v10 = vrot.slane %v8504_v25, 4  ;;  %v4123_v6 = vsel %vm258_vm0, 0.0, %v4122_v2 }
 0x897   : > { %v4400_v32 = vpop.permute.xlu1 %4399  ;;  %v4547_v61 = vsel %vm258_vm0, 0.0, %v4546_v58  ;;  %v3912_v37 = vrot.slane %v8535_v44, 4  ;;  %v4494_v58 = vrot.slane %v8364_v45, 4 }
 0x898   : > { %v4415_v9 = vsel %vm784_vm12, %v4414_v1, %v4400_v32  ;;  %v3857_v8 = vsel %vm258_vm0, 0.0, %v3856_v10 }
 0x899   : > { %4417 = vst [vmem:[#allocation2 + $0x20] sm:$0xf] %v4415_v9  ;;  %v4064_v9 = vrot.slane %v8512_v24, 4  ;;  %v3913_v45 = vsel %vm258_vm0, 0.0, %v3912_v37 }
 0x89b   : > { %v4065_v17 = vsel %vm258_vm0, 0.0, %v4064_v9 }
 0x89c   : > { %4575 = vrot.lane.b32.xlu2 %v8450_v33, %s5335_s18  ;;  %4157 = vrot.lane.b32.xlu0 %v4121_v20, %s5338_s27 }
 0x89d   : > { %4603 = vrot.lane.b32.xlu1 %v8453_v21, %s5335_s18 }
 0x89e   : > { %v8461_v13 = vpop.permute.xlu2 %3305  ;;  %v8463_v4 = vpop.permute.xlu0 %3523 }
 0x89f   : > { %v8465_v39 = vpop.permute.xlu1 %3297  ;;  %v3339_v9 = vsel %vm772_vm6, %v8062_v46, %v8461_v13 }
 0x8a4   : > { %4817 = vrot.lane.b32.xlu2 %v8471_v36, %s5335_s18  ;;  %4563 = vrot.lane.b32.xlu0 %v4493_v0, %s5334_s24  ;;  %v4548_v0 = vrot.slane %v8268_v52, 4 }
 0x8a5   : > { %4149 = vrot.lane.b32.xlu1 %v8475_v31, %s5335_s18 }
 0x8a6   : > { %v8488_v11 = vpop.permute.xlu2 %3329  ;;  %v3278_v55 = vpop.permute.xlu0 %3277  ;;  %v4549_v30 = vsel %vm258_vm0, 0.0, %v4548_v0 }
 0x8a7   : > { %v3310_v40 = vpop.permute.xlu1 %3309 }
 0x8ac   : > { %3961 = vrot.lane.b32.xlu2 %v8496_v50, %s5336_s25  ;;  %4805 = vrot.lane.b32.xlu0 %v4763_v60, %s5334_s24  ;;  %v3332_v60 = vsel %vm772_vm6, %v7983_v3, %v3278_v55  ;;  %v4066_v55 = vrot.slane %v8301_v7, 4 }
 0x8ad   : > { %4769 = vrot.lane.b32.xlu1 %v4705_v19, %s5338_s27  ;;  %v3333_v19 = vsel %vm774_vm7, %v3332_v60, %v8279_v62  ;;  %v3340_v62 = vsel %vm774_vm7, %v3339_v9, %v3310_v40  ;;  %v4708_v60 = vrot.slane %v8357_v34, 4  ;;  %v3858_v9 = vrot.slane %v8389_v15, 4 }
 0x8ae   : > { %v3492_v28 = vpop.permute.xlu2 %3491  ;;  %v3302_v32 = vpop.permute.xlu0 %3301  ;;  %v4067_v46 = vsel %vm258_vm0, 0.0, %v4066_v55 }
 0x8af   : > { %v3496_v1 = vpop.permute.xlu1 %3495 }
 0x8b4   : > { %4583 = vrot.lane.b32.xlu2 %v4547_v61, %s5338_s27  ;;  %3921 = vrot.lane.b32.xlu0 %v3857_v8, %s5338_s27 }
 0x8b5   : > { %4129 = vrot.lane.b32.xlu1 %v4065_v17, %s5338_s27  ;;  %v4495_v17 = vsel %vm258_vm0, 0.0, %v4494_v58 }
 0x8b6   : > { %v8524_v20 = vpop.permute.xlu2 %3515  ;;  %v3314_v35 = vpop.permute.xlu0 %3313 }
 0x8b7   : > { %v8526_v53 = vpop.permute.xlu1 %3531  ;;  %v3341_v7 = vsel %vm776_vm8, %v3340_v62, %v3314_v35  ;;  %v8915_v35 = vld [vmem:[#allocation16_spill] sm:$0xff] }
 0x8b8   : > { %v3342_v0 = vsel %vm778_vm9, %v3341_v7, %v8332_v5  ;;  %v4550_v2 = vrot.slane %v8915_v35, 4  ;;  %v4552_v7 = vrot.slane %v8453_v21, 4 }
 0x8ba   : > { %v4551_v37 = vsel %vm258_vm0, 0.0, %v4550_v2  ;;  %v4553_v2 = vsel %vm258_vm0, 0.0, %v4552_v7 }
 0x8bc   : > { %4591 = vrot.lane.b32.xlu2 %v4549_v30, %s5334_s24  ;;  %4165 = vrot.lane.b32.xlu0 %v4123_v6, %s5334_s24  ;;  %v3546_v30 = vsel %vm772_vm6, %v8916_v22, %v3492_v28  ;;  %v4709_v28 = vsel %vm258_vm0, 0.0, %v4708_v60 }
 0x8bd   : > { %4777 = vrot.lane.b32.xlu1 %v4707_v54, %s5334_s24 }
 0x8be   : > { %v8543_v41 = vpop.permute.xlu2 %3527  ;;  %v3500_v52 = vpop.permute.xlu0 %3499 }
 0x8bf   : > { %v3286_v38 = vpop.permute.xlu1 %3285 }
 0x8c0   : > { %v3334_v3 = vsel %vm776_vm8, %v3333_v19, %v3286_v38  ;;  %v3547_v19 = vsel %vm774_vm7, %v3546_v30, %v3496_v1 }
 0x8c1   : > { %v3335_v10 = vsel %vm778_vm9, %v3334_v3, %v8381_v56  ;;  %v3548_v58 = vsel %vm776_vm8, %v3547_v19, %v3500_v52  ;;  %v8917_v3 = vld [vmem:[#allocation26_spill] sm:$0xff]  ;;  %v3914_v52 = vrot.slane %v8423_v16, 4 }
 0x8c2   : > { %v3336_v61 = vsel %vm780_vm10, %v3335_v10, %v8437_v27  ;;  %v3549_v1 = vsel %vm778_vm9, %v3548_v58, %v8379_v51  ;;  %v4068_v55 = vrot.slane %v8917_v3, 4  ;;  %v3859_v51 = vsel %vm258_vm0, 0.0, %v3858_v9 }
 0x8c3   : > { %v3337_v8 = vsel %vm782_vm11, %v3336_v61, %v8465_v39 }
 0x8c4   : > { %v3338_v56 = vsel %vm784_vm12, %v3337_v8, %v3302_v32  ;;  %3949 = vrot.lane.b32.xlu2 %v3913_v45, %s5338_s27  ;;  %4571 = vrot.lane.b32.xlu0 %v4495_v17, %s5332_s23  ;;  %v4764_v32 = vrot.slane %v8393_v29, 4  ;;  %v4069_v8 = vsel %vm258_vm0, 0.0, %v4068_v55  ;;  %v3915_v45 = vsel %vm258_vm0, 0.0, %v3914_v52  ;;  %v8918_v17 = vld [vmem:[#allocation22_spill] sm:$0xff]  ;;  %v8921_v55 = vld [vmem:[#allocation35_spill] sm:$0xff] }
 0x8c5   : > { %v3348_v27 = vrot.slane %v3338_v56, 4  ;;  %4137 = vrot.lane.b32.xlu1 %v4067_v46, %s5334_s24  ;;  %v8919_v56 = vld [vmem:[#allocation13_spill] sm:$0xff]  ;;  %v3855_v52 = vperm.slane %v8921_v55, %v5498_v18 }
 0x8c6   : > { %v8569_v13 = vpop.permute.xlu2 %4559  ;;  %v3536_v39 = vpop.permute.xlu0 %3535  ;;  %v4765_v29 = vsel %vm258_vm0, 0.0, %v4764_v32 }
 0x8c7   : > { %3352 = vst [vmem:[#allocation2 + $0x30] sm:$0xf0] %v3348_v27  ;;  %v3322_v40 = vpop.permute.xlu1 %3321  ;;  %v4124_v27 = vrot.slane %v8417_v43, 4 }
 0x8c8   : > { %v3343_v6 = vsel %vm780_vm10, %v3342_v0, %v3322_v40 }
 0x8c9   : > { %v3344_v54 = vsel %vm782_vm11, %v3343_v6, %v8407_v14  ;;  %v4125_v21 = vsel %vm258_vm0, 0.0, %v4124_v27  ;;  %v3860_v6 = vrot.slane %v8305_v59, 4 }
 0x8ca   : > { %v3345_v38 = vsel %vm784_vm12, %v3344_v54, %v8488_v11  ;;  %v4496_v54 = vrot.slane %v8450_v33, 4  ;;  %v4126_v33 = vrot.slane %v8361_v23, 4 }
 0x8cb   : > { %v3349_v5 = vrot.slane %v3345_v38, 4  ;;  %v3861_v38 = vsel %vm258_vm0, 0.0, %v3860_v6 }
 0x8cc   : > { %4599 = vrot.lane.b32.xlu2 %v4551_v37, %s5332_s23  ;;  %4813 = vrot.lane.b32.xlu0 %v4765_v29, %s5332_s23  ;;  %v4497_v19 = vsel %vm258_vm0, 0.0, %v4496_v54  ;;  %v8920_v37 = vld [vmem:[#allocation36_spill] sm:$0xff]  ;;  %v4127_v58 = vsel %vm258_vm0, 0.0, %v4126_v33 }
 0x8cd   : > { %3353 = vst [vmem:[#allocation2] sm:$0xf0] %v3349_v5  ;;  %4785 = vrot.lane.b32.xlu1 %v4709_v28, %s5332_s23  ;;  %v4766_v5 = vrot.slane %v8471_v36, 4  ;;  %v3911_v29 = vperm.slane %v8920_v37, %v5498_v18  ;;  %v4070_v36 = vrot.slane %v8475_v31, 4 }
 0x8ce   : > { %v8591_v34 = vpop.permute.xlu2 %4801  ;;  %v8593_v14 = vpop.permute.xlu0 %4773 }
 0x8cf   : > { %v3508_v11 = vpop.permute.xlu1 %3507  ;;  %v4767_v28 = vsel %vm258_vm0, 0.0, %v4766_v5  ;;  %v3918_v23 = vrot.slane %v3911_v29, 4  ;;  %v4071_v9 = vsel %vm258_vm0, 0.0, %v4070_v36 }
 0x8d0   : > { %v3550_v10 = vsel %vm780_vm10, %v3549_v1, %v3508_v11 }
 0x8d1   : > { %v3551_v61 = vsel %vm782_vm11, %v3550_v10, %v8439_v63  ;;  %v3919_v10 = vsel %vm258_vm0, 0.0, %v3918_v23 }
 0x8d2   : > { %v3552_v62 = vsel %vm784_vm12, %v3551_v61, %v8524_v20  ;;  %v4710_v20 = vrot.slane %v8918_v17, 4 }
 0x8d3   : > { %3560 = vst [vmem:[#allocation2 + $0x18] sm:$0xf] %v3552_v62 }
 0x8d4   : > { %4145 = vrot.lane.b32.xlu2 %v4069_v8, %s5332_s23  ;;  %3957 = vrot.lane.b32.xlu0 %v3915_v45, %s5334_s24  ;;  %v4711_v35 = vsel %vm258_vm0, 0.0, %v4710_v20  ;;  %v3862_v45 = vrot.slane %v3855_v52, 4 }
 0x8d5   : > { %3929 = vrot.lane.b32.xlu1 %v3859_v51, %s5334_s24  ;;  %v8922_v51 = vld [vmem:[#allocation19_spill] sm:$0xff] }
 0x8d6   : > { %v8611_v15 = vpop.permute.xlu2 %4133  ;;  %v8613_v16 = vpop.permute.xlu0 %4595  ;;  %v3704_v31 = vrot.slane %v8922_v51, 4 }
 0x8d7   : > { %v3520_v63 = vpop.permute.xlu1 %3519 }
 0x8d8   : > { %v3553_v46 = vsel %vm772_vm6, %v8919_v56, %v3520_v63  ;;  %v3863_v63 = vsel %vm258_vm0, 0.0, %v3862_v45  ;;  %v3705_v18 = vsel %vm258_vm0, 0.0, %v3704_v31 }
 0x8d9   : > { %v3554_v40 = vsel %vm774_vm7, %v3553_v46, %v8463_v4 }
 0x8da   : > { %v3555_v0 = vsel %vm776_vm8, %v3554_v40, %v8543_v41 }
 0x8db   : > { %v3556_v32 = vsel %vm778_vm9, %v3555_v0, %v8526_v53  ;;  %v3916_v53 = vrot.slane %v8496_v50, 4 }
 0x8dc   : > { %4793 = vrot.lane.b32.xlu2 %v4711_v35, %s5333_s22  ;;  %4607 = vrot.lane.b32.xlu0 %v4553_v2, %s5333_s22  ;;  %v3557_v43 = vsel %vm780_vm10, %v3556_v32, %v3536_v39 }
 0x8dd   : > { %4173 = vrot.lane.b32.xlu1 %v4125_v21, %s5332_s23  ;;  %v3558_v30 = vsel %vm782_vm11, %v3557_v43, %v8405_v57  ;;  %v3917_v39 = vsel %vm258_vm0, 0.0, %v3916_v53  ;;  %vm8923_vm0 = vcmask 1043456  }
 0x8de   : > { %v8633_v4 = vpop.permute.xlu2 %4781  ;;  %v8635_v41 = vpop.permute.xlu0 %4141  ;;  %vm8924_vm1 = vmmov %vm8923_vm0 }
 0x8df   : > { %v3544_v22 = vpop.permute.xlu1 %3543  ;;  %vm8927_vm4 = vmmov %vm8923_vm0 }
 0x8e0   : > { %v3559_v60 = vsel %vm784_vm12, %v3558_v30, %v3544_v22  ;;  %vm8928_vm5 = vmmov %vm8923_vm0 }
 0x8e1   : > { %3561 = vst [vmem:[#allocation2 + $0x10] sm:$0xf] %v3559_v60 }
 0x8e4   : > { %3965 = vrot.lane.b32.xlu2 %v3917_v39, %s5332_s23  ;;  %3937 = vrot.lane.b32.xlu0 %v3861_v38, %s5332_s23  ;;  %s4960_s23 = sshll.u32 %s217_s21, 4  ;;  %s4961_s23 = int_to_ptr.vmem [resolvable:$true] %s4960_s23 }
 0x8e5   : > { %4579 = vrot.lane.b32.xlu1 %v4497_v19, %s5333_s22 }
 0x8e6   : > { %v8649_v57 = vpop.permute.xlu2 %3925  ;;  %v8651_v59 = vpop.permute.xlu0 %4789 }
 0x8e7   : > { %v4588_v50 = vpop.permute.xlu1 %4587 }
 0x8ec   : > { %3969 = vrot.lane.b32.xlu2 %v3911_v29, %s5335_s18  ;;  %4181 = vrot.lane.b32.xlu0 %v4127_v58, %s5333_s22 }
 0x8ed   : > { %4821 = vrot.lane.b32.xlu1 %v4767_v28, %s5333_s22 }
 0x8ee   : > { %v4170_v11 = vpop.permute.xlu2 %4169  ;;  %v8662_v1 = vpop.permute.xlu0 %3933 }
 0x8ef   : > { %v4162_v3 = vpop.permute.xlu1 %4161 }
 0x8f4   : > { %3973 = vrot.lane.b32.xlu2 %v3919_v10, %s5333_s22  ;;  %3941 = vrot.lane.b32.xlu0 %v3855_v52, %s5335_s18 }
 0x8f5   : > { %4153 = vrot.lane.b32.xlu1 %v4071_v9, %s5333_s22 }
 0x8f6   : > { %v4576_v61 = vpop.permute.xlu2 %4575  ;;  %v8672_v62 = vpop.permute.xlu0 %4177 }
 0x8f7   : > { %v4568_v8 = vpop.permute.xlu1 %4567 }
 0x8fc   : > { %3945 = vrot.lane.b32.xlu0 %v3863_v63, %s5333_s22 }
 0x8fd   : > { %3759 = vrot.lane.b32.xlu1 %v3705_v18, %s5333_s22  ;;  %s4962_s22 = sshll.u32 %s4958_s20, 4  ;;  %s4963_s22 = int_to_ptr.hbm [resolvable:$true] %s4962_s22 }
 0x8fe   : > { %v4818_v17 = vpop.permute.xlu2 %4817  ;;  %v4556_v20 = vpop.permute.xlu0 %4555  ;;  %s5272_s24 = sshra.s32 %s4963_s22, 4  ;;  %s5273_s24 = int_to_ptr.hbm [resolvable:$true] %s5272_s24 }
 0x8ff   : > { %v4810_v7 = vpop.permute.xlu1 %4809  ;;  %v4610_v56 = vsel %vm772_vm6, %v8367_v49, %v4556_v20  ;;  %s5274_s18 = scalar_lea.hbm %s5273_s24, 8  ;;  %p5279_p9 = scmp.lt.s32.totalorder %s5273_s24, %s8812_s3 }
 0x900   : > { %v4611_v46 = vsel %vm774_vm7, %v4610_v56, %v8569_v13  ;;  %p5275_p1 = scmp.ne.s32.totalorder %s5273_s24, %s5274_s18  ;;  %p5280_p2 = scmp.lt.s32.totalorder %s5278_s17, %s5274_s18 }
 0x902   : > { %p5276_p4 = pnand %p5275_p1, %p5431_p3  ;;  %p5281_p10 = por %p5280_p2, %p5279_p9 }
 0x904   : > { %p5277_p8 = pneg %p5276_p4 }
 0x906   : > { %v3962_v27 = vpop.permute.xlu2 %3961  ;;  %v4798_v40 = vpop.permute.xlu0 %4797  ;;  %p5282_p11 = pnand %p5281_p10, %p5277_p8 }
 0x907   : > { %v3954_v0 = vpop.permute.xlu1 %3953  ;;  %v4831_v35 = vsel %vm772_vm6, %v8396_v47, %v4798_v40 }
 0x908   : > { %v4832_v2 = vsel %vm774_vm7, %v4831_v35, %v8591_v34 }
 0x90e   : > { %v4584_v32 = vpop.permute.xlu2 %4583  ;;  %v4158_v21 = vpop.permute.xlu0 %4157 }
 0x90f   : > { %v4604_v43 = vpop.permute.xlu1 %4603  ;;  %v4191_v22 = vsel %vm772_vm6, %v8427_v26, %v4158_v21  ;;  %v4617_v13 = vsel %vm772_vm6, %v8500_v42, %v4584_v32 }
 0x910   : > { %v4192_v49 = vsel %vm774_vm7, %v4191_v22, %v4162_v3  ;;  %v4618_v30 = vsel %vm774_vm7, %v4617_v13, %v4588_v50 }
 0x916   : > { %v4592_v53 = vpop.permute.xlu2 %4591  ;;  %v4564_v6 = vpop.permute.xlu0 %4563 }
 0x917   : > { %v4619_v47 = vsel %vm776_vm8, %v4618_v30, %v4592_v53  ;;  %v8694_v60 = vpop.permute.xlu1 %4149  ;;  %v4612_v34 = vsel %vm776_vm8, %v4611_v46, %v4564_v6 }
 0x918   : > { %v4620_v54 = vsel %vm778_vm9, %v4619_v47, %v8613_v16  ;;  %v4613_v26 = vsel %vm778_vm9, %v4612_v34, %v4568_v8 }
 0x91e   : > { %v3950_v39 = vpop.permute.xlu2 %3949  ;;  %v4806_v38 = vpop.permute.xlu0 %4805 }
 0x91f   : > { %v4770_v19 = vpop.permute.xlu1 %4769  ;;  %v4833_v42 = vsel %vm776_vm8, %v4832_v2, %v4806_v38 }
 0x920   : > { %v4834_v50 = vsel %vm778_vm9, %v4833_v42, %v4810_v7 }
 0x926   : > { %v4600_v33 = vpop.permute.xlu2 %4599  ;;  %v3922_v5 = vpop.permute.xlu0 %3921 }
 0x927   : > { %v4130_v37 = vpop.permute.xlu1 %4129  ;;  %v3976_v29 = vsel %vm772_vm6, %v8504_v25, %v3922_v5  ;;  %v4824_v25 = vsel %vm772_vm6, %v8484_v48, %v4770_v19 }
 0x928   : > { %v8706_v58 = vsel %vm774_vm7, %v3976_v29, %v8649_v57  ;;  %v4825_v57 = vsel %vm774_vm7, %v4824_v25, %v8593_v14  ;;  %v3983_v14 = vsel %vm772_vm6, %v8535_v44, %v3950_v39 }
 0x929   : > { %v3984_v46 = vsel %vm774_vm7, %v3983_v14, %v3954_v0 }
 0x92e   : > { %v8708_v16 = vpop.permute.xlu2 %4145  ;;  %v4166_v28 = vpop.permute.xlu0 %4165 }
 0x92f   : > { %v4778_v3 = vpop.permute.xlu1 %4777  ;;  %v4193_v23 = vsel %vm776_vm8, %v4192_v49, %v4166_v28 }
 0x930   : > { %v4194_v36 = vsel %vm778_vm9, %v4193_v23, %v4170_v11  ;;  %v4826_v45 = vsel %vm776_vm8, %v4825_v57, %v4778_v3 }
 0x931   : > { %v4827_v11 = vsel %vm778_vm9, %v4826_v45, %v8633_v4 }
 0x936   : > { %v4794_v55 = vpop.permute.xlu2 %4793  ;;  %v4572_v52 = vpop.permute.xlu0 %4571 }
 0x937   : > { %v4138_v10 = vpop.permute.xlu1 %4137  ;;  %v4614_v9 = vsel %vm780_vm10, %v4613_v26, %v4572_v52 }
 0x938   : > { %v4615_v8 = vsel %vm782_vm11, %v4614_v9, %v4576_v61 }
 0x93e   : > { %v3966_v51 = vpop.permute.xlu2 %3965  ;;  %v4814_v31 = vpop.permute.xlu0 %4813 }
 0x93f   : > { %v4786_v63 = vpop.permute.xlu1 %4785  ;;  %v4835_v18 = vsel %vm780_vm10, %v4834_v50, %v4814_v31  ;;  %v4840_v31 = vld [vmem:[#allocation8] sm:$0xf] }
 0x940   : > { %v4828_v20 = vsel %vm780_vm10, %v4827_v11, %v4786_v63  ;;  %v4836_v7 = vsel %vm782_vm11, %v4835_v18, %v4818_v17  ;;  %v4621_v17 = vsel %vm780_vm10, %v4620_v54, %v4600_v33  ;;  %v4184_v54 = vsel %vm772_vm6, %v8512_v24, %v4130_v37  ;;  %v4841_v63 = vld [vmem:[#allocation2 + $0x30] sm:$0xff]  ;;  %v4842_v11 = vld [vmem:[#allocation2] sm:$0xff]  ;;  %vm8929_vm6 = vmmov %vm8923_vm0 }
 0x941   : > { %v4829_v48 = vsel %vm782_vm11, %v4828_v20, %v8651_v59  ;;  %v4622_v22 = vsel %vm782_vm11, %v4621_v17, %v4604_v43  ;;  %v4185_v43 = vsel %vm774_vm7, %v4184_v54, %v8611_v15  ;;  %vm8930_vm7 = vmmov %vm8923_vm0 }
 0x942   : > { %v4830_v61 = vsel %vm784_vm12, %v4829_v48, %v4794_v55  ;;  %v4186_v39 = vsel %vm776_vm8, %v4185_v43, %v4138_v10 }
 0x943   : > { %4838 = vst [vmem:[#allocation2 + $0x40] sm:$0xf] %v4830_v61  ;;  %v4187_v24 = vsel %vm778_vm9, %v4186_v39, %v8635_v41 }
 0x944   : > { %v4188_v15 = vsel %vm780_vm10, %v4187_v24, %v8708_v16 }
 0x946   : > { %v3970_v56 = vpop.permute.xlu2 %3969  ;;  %v3958_v40 = vpop.permute.xlu0 %3957 }
 0x947   : > { %v3930_v4 = vpop.permute.xlu1 %3929  ;;  %v3985_v35 = vsel %vm776_vm8, %v3984_v46, %v3958_v40 }
 0x948   : > { %v3986_v2 = vsel %vm778_vm9, %v3985_v35, %v3962_v27 }
 0x949   : > { %v3987_v59 = vsel %vm780_vm10, %v3986_v2, %v3966_v51  ;;  %v4843_v51 = vld [vmem:[#allocation2 + $0x18] sm:$0xff] }
 0x94a   : > { %v4849_v32 = vld [vmem:[#allocation2 + $0x40] sm:$0xf]  ;;  %v3988_v44 = vsel %vm782_vm11, %v3987_v59, %v3970_v56 }
 0x94b   : > { %5073 = vmatpush.msk.msra.mxu2 %vm8923_vm0, %v4849_v32 }
 0x94e   : > { %v3974_v21 = vpop.permute.xlu2 %3973  ;;  %v4608_v49 = vpop.permute.xlu0 %4607 }
 0x94f   : > { %v3989_v0 = vsel %vm784_vm12, %v3988_v44, %v3974_v21  ;;  %v4174_v13 = vpop.permute.xlu1 %4173  ;;  %v4623_v30 = vsel %vm784_vm12, %v4622_v22, %v4608_v49 }
 0x950   : > { %3991 = vst [vmem:[#allocation2 + $0x28] sm:$0xf] %v3989_v0  ;;  %v4627_v27 = vrot.slane %v4623_v30, 4  ;;  %v4195_v26 = vsel %vm780_vm10, %v4194_v36, %v4174_v13  ;;  %v3978_v36 = vsel %vm776_vm8, %v8706_v58, %v3930_v4 }
 0x951   : > { %v4196_v38 = vsel %vm782_vm11, %v4195_v26, %v8672_v62  ;;  %v4189_v62 = vsel %vm782_vm11, %v4188_v15, %v8694_v60  ;;  %v3979_v16 = vsel %vm778_vm9, %v3978_v36, %v8662_v1  ;;  %v4932_v26 = vld.sshfl [vmem:[#allocation1] sm:$0xff pattern:$0x75316420] }
 0x952   : > { %4631 = vst [vmem:[#allocation2 + $0x20] sm:$0xf0] %v4627_v27 }
 0x956   : > { %v3938_v53 = vpop.permute.xlu0 %3937 }
 0x957   : > { %v4580_v6 = vpop.permute.xlu1 %4579  ;;  %v3980_v10 = vsel %vm780_vm10, %v3979_v16, %v3938_v53 }
 0x958   : > { %v4616_v47 = vsel %vm784_vm12, %v4615_v8, %v4580_v6 }
 0x959   : > { %v4626_v34 = vrot.slane %v4616_v47, 4  ;;  %v4848_v41 = vld [vmem:[#allocation2 + $0x20] sm:$0xff] }
 0x95a   : > { %v4933_v47 = vld.sshfl [vmem:[#allocation1 + $0x8] sm:$0xff pattern:$0x75316420] }
 0x95b   : > { %4630 = vst [vmem:[#allocation2 + $0x8] sm:$0xf0] %v4626_v34 }
 0x95e   : > { %v4182_v19 = vpop.permute.xlu0 %4181 }
 0x95f   : > { %v4822_v42 = vpop.permute.xlu1 %4821  ;;  %v4197_v50 = vsel %vm784_vm12, %v4196_v38, %v4182_v19 }
 0x960   : > { %v4837_v33 = vsel %vm784_vm12, %v4836_v7, %v4822_v42  ;;  %v4201_v5 = vrot.slane %v4197_v50, 4 }
 0x961   : > { %4839 = vst [vmem:[#allocation2 + $0x38] sm:$0xf] %v4837_v33 }
 0x962   : > { %4205 = vst [vmem:[#allocation2 + $0x28] sm:$0xf0] %v4201_v5  ;;  %v4847_v37 = vld [vmem:[#allocation2 + $0x8] sm:$0xff] }
 0x963   : > { %4872 = vmatpush.msra.mxu2 %v4847_v37 }
 0x966   : > { %v3942_v29 = vpop.permute.xlu0 %3941 }
 0x967   : > { %v4154_v28 = vpop.permute.xlu1 %4153  ;;  %v3981_v60 = vsel %vm782_vm11, %v3980_v10, %v3942_v29  ;;  %vm8931_vm11 = vmmov %vm8923_vm0 }
 0x968   : > { %v4190_v3 = vsel %vm784_vm12, %v4189_v62, %v4154_v28  ;;  %v4850_v23 = vld [vmem:[#allocation2 + $0x38] sm:$0xf] }
 0x969   : > { %v4200_v55 = vrot.slane %v4190_v3, 4  ;;  %5075 = vmatpush.msk.msra.mxu3 %vm8924_vm1, %v4850_v23  ;;  %v4846_v52 = vld [vmem:[#allocation2 + $0x28] sm:$0xff] }
 0x96b   : > { %4204 = vst [vmem:[#allocation2 + $0x48] sm:$0xf0] %v4200_v55  ;;  %4892 = vmatpush.msra.mxu3 %v4848_v41 }
 0x96d   : > { %4893 = vmatpush.msra.mxu3 %v4846_v52 }
 0x96e   : > { %v3946_v9 = vpop.permute.xlu0 %3945 }
 0x96f   : > { %v3760_v25 = vpop.permute.xlu1 %3759  ;;  %v3982_v8 = vsel %vm784_vm12, %v3981_v60, %v3946_v9 }
 0x970   : > { %v3775_v58 = vsel %vm784_vm12, %v8351_v12, %v3760_v25  ;;  %3990 = vst [vmem:[#allocation2 + $0x48] sm:$0xf] %v3982_v8 }
 0x971   : > { %v3779_v57 = vrot.slane %v3775_v58, 4 }
 0x973   : > { %3783 = vst [vmem:[#allocation2 + $0x10] sm:$0xf0] %v3779_v57 }
 0x977   : > { %v4845_v45 = vld [vmem:[#allocation2 + $0x48] sm:$0xff] }
 0x978   : > { %4873 = vmatpush.msra.mxu2 %v4845_v45 }
 0x97a   : > { %4874 = vmatpush.msra.mxu2 %v4843_v51  ;;  %v4844_v1 = vld [vmem:[#allocation2 + $0x10] sm:$0xff] }
 0x97b   : > { %4894 = vmatpush.msra.mxu3 %v4844_v1 }
 0x97c   : > { %4875 = vmatpush.msra.mxu2 %v4841_v63 }
 0x97d   : > { %4895 = vmatpush.msra.mxu3 %v4842_v11  ;;  %5074 = vmatmul.msk.f32.vlgmr.msra.gmra.mxu2 %vm8925_vm2, %v4840_v31 }
 0x97e   : > { %5076 = vmatmul.msk.f32.vlgmr.msra.gmra.mxu3 %vm8926_vm3, %v4840_v31 }
 0xa00   : > { %v4877_v18 = vpop.f32.mrf.mxu2 }
 0xa01   : > { %v4900_v12 = vsel %vm8927_vm4, %v4877_v18, 0.0  ;;  %v4906_v20 = vmul.f32 %v4877_v18, %v4877_v18  ;;  %v4897_v7 = vpop.f32.mrf.mxu3 }
 0xa02   : > { %v4901_v48 = vsel %vm8928_vm5, %v4897_v7, 0.0  ;;  %v4907_v61 = vmul.f32 %v4897_v7, %v4897_v7 }
 0xa03   : > { %v4908_v14 = vsel %vm8929_vm6, %v4906_v20, 0.0  ;;  %v4902_v56 = vadd.f32 %v4901_v48, %v4900_v12 }
 0xa04   : > { %v4909_v46 = vsel %vm8930_vm7, %v4907_v61, 0.0 }
 0xa05   : > { %4903 = vadd.xlane.f32.xlu1 %v4902_v56  ;;  %v4910_v40 = vadd.f32 %v4909_v46, %v4908_v14 }
 0xa07   : > { %4911 = vadd.xlane.f32.xlu0 %v4910_v40 }
 0xa78   : > { %v4904_v4 = vpop.xlane.xlu1 %4903 }
 0xa79   : > { %v4905_v35 = vmul.f32 0.00390625, %v4904_v4 }
 0xa7a   : > { %v4912_v2 = vpop.xlane.xlu0 %4911 }
 0xa7b   : > { %v4913_v32 = vmul.f32 0.00390625, %v4912_v2  ;;  %v4914_v17 = vmul.f32 %v4905_v35, %v4905_v35  ;;  %v4916_v27 = vsub.f32 %v4877_v18, %v4905_v35  ;;  %v4917_v53 = vsub.f32 %v4897_v7, %v4905_v35 }
 0xa7d   : > { %v4915_v59 = vsub.f32 %v4913_v32, %v4914_v17 }
 0xa7f   : > { %v4918_v21 = vadd.f32 1e-05, %v4915_v59 }
 0xa81   : > { %5166 = vrsqrt.f32 %v4918_v21  ;;  %vm4925_vm9 = vweird.f32 %v4918_v21 }
 0xa87   : > { %v5167_v44 = vpop.eup %5166 }
 0xa88   : > { %v4920_v22 = vmul.f32 %v5167_v44, %v4918_v21  ;;  %vm4926_vm8 = vweird.f32 %v5167_v44 }
 0xa89   : > { %vm4927_vm10 = vmor %vm4925_vm9, %vm4926_vm8 }
 0xa8a   : > { %v4921_v49 = vmul.f32 %v5167_v44, %v4920_v22 }
 0xa8c   : > { %v4922_v0 = vmul.f32 0.5, %v4921_v49 }
 0xa8e   : > { %v4923_v13 = vsub.f32 1.5, %v4922_v0 }
 0xa90   : > { %v4924_v30 = vmul.f32 %v5167_v44, %v4923_v13 }
 0xa92   : > { %v4928_v6 = vsel %vm4927_vm10, %v5167_v44, %v4924_v30 }
 0xa93   : > { %v4929_v34 = vmul.f32 %v4928_v6, %v4916_v27  ;;  %v4930_v54 = vmul.f32 %v4928_v6, %v4917_v53 }
 0xa95   : > { %v4937_v43 = vadd.f32 %v4933_v47, %v4930_v54  ;;  %v4936_v39 = vadd.f32 %v4932_v26, %v4929_v34 }
 0xa97   : > { %v4939_v38 = vmax.f32 %v4937_v43, 0.0  ;;  %v4938_v19 = vmax.f32 %v4936_v39, 0.0 }
 0xa99   : > { %v4942_v42 = vrot.slane %v4939_v38, 4 }
 0xa9b   : > { %v4943_v50 = vsel %vm8931_vm11, %v4938_v19, %v4942_v42 }
 0xa9c   : > { %4945 = vst [vmem:[%s217_s21] sm:$0xff] %v4943_v50 }
 0xa9d   : > { %5285 = shalt.err (!%p5282_p11)
}
 0xa9e   : > { %5094 = dma.vmem_to_hbm [thread:$0]  (%p5431_p3), %s4961_s23, 128, %s4963_s22, %s4947_s16  }
 0xa9f PF: > { %s4974_s9 = sand.u32 1, %s5316_s12   ;;  %p8932_p12 = scmp.ge.s32.totalorder %s5328_s15, 2 }
 0xaa0   : > { %s4975_s29 = scalar_lea.sflag [#allocation5], %s4974_s9 }
 0xaa1   : > { %p5108_p13 = pnand %p8932_p12, %p5400_p6 }
 0xaa3   : > { %p5109_p0 = pneg %p5108_p13 }
 0xaa5   : > { %5311 = dma.done.wait (%p5109_p0), %s4975_s29, 128  }
 0xaa6   : > { %5313 = vsyncadd (%p5109_p0), %s4975_s29, 4294967168  ;;  %p17_p5 = scmp.ge.s32.totalorder %s5421_s4, 4   ;;  %s8933_s12 = smov %s5320_s13 }
 0xaa7   : > { %s8934_s13 = smov %s5324_s14  ;;  %s8935_s14 = smov %s5437_s8 }
 0xaa8   : > { %s8936_s15 = smov %s5421_s4  ;;  %19 = sbr.rel (!%p17_p5) target bundleno = 6 (0x6), region = 92 }
 0xaad   :  { %4981 = vsyncpa [#allocation4], 1 }
 0xaae   :  { %4983 = vsyncpa [#allocation4 + $0x1], 1 }
 0xaaf   :  { %4984 = vsyncpa [#allocation7], 1 }
 0xab0   :  { %4985 = vsyncpa [#allocation5], 1 }
 0xab1   :  { %4987 = vsyncpa [#allocation5 + $0x1], 1 }

</bundles_post_ra>
